<compile_context>
chip_gen: v7x
topology: tpu7x:2x2x1
jax: 0.10.0
libtpu: 0.0.40
codegen_flags: <defaults>
</compile_context>

<pallas_src>
import functools

import numpy as np
import jax
import jax.numpy as jnp
from jax import lax
from jax.experimental import pallas as pl
from jax.experimental.pallas import tpu as pltpu


# ---------------------------------------------------------------------------
# Window helpers: the image lives flattened as (channels, H*W) with pixels in
# the lane dim; the window for tap offset (dy, dx) is a lane shift by dy*W+dx,
# and a precomputed 0/1 mask (one row per tap) zeroes out-of-image positions.
# ---------------------------------------------------------------------------
def _shift_lanes(x, off):
    """out[..., p] = x[..., p + off] (circular; wrapped lanes are masked later)."""
    n = x.shape[-1]
    off = off % n
    if off == 0:
        return x
    return jnp.concatenate([x[..., off:], x[..., :off]], axis=-1)


def _tap_offsets(W, ksz):
    r = ksz // 2
    return tuple((ky - r) * W + (kx - r) for ky in range(ksz) for kx in range(ksz))


def _tap_masks(H, W, ksz):
    r = ksz // 2
    ii, jj = np.meshgrid(np.arange(H), np.arange(W), indexing="ij")
    rows = []
    for ky in range(ksz):
        for kx in range(ksz):
            dy, dx = ky - r, kx - r
            ok = ((ii + dy >= 0) & (ii + dy < H) & (jj + dx >= 0) & (jj + dx < W))
            rows.append(ok.reshape(-1))
    return jnp.asarray(np.stack(rows, 0).astype(np.float32))       # (ksz^2, H*W)


def _pack_encoder_weights(w_enc, b_enc, *, d2, kk, kkp, cm, kenc):
    """torch (d2*kk, Cm, 3, 3) conv weights -> one (d2*kkp, kenc^2*Cm) bf16 matrix.

    Output row r = d*kkp + k  (softmax groups contiguous and 8-sublane aligned),
    column     q = (ky*kenc + kx)*Cm + c  (matches the in-kernel im2col slab).
    Padding rows (k >= kk) get zero weights and a -1e9 bias so they contribute
    exactly 0 after the softmax.
    """
    kk2 = kenc * kenc
    w_rows = jnp.transpose(w_enc, (0, 2, 3, 1)).reshape(d2 * kk, kk2 * cm)
    src = np.zeros((d2 * kkp,), np.int32)
    valid = np.zeros((d2 * kkp,), bool)
    for d in range(d2):
        for k in range(kk):
            src[d * kkp + k] = k * d2 + d           # torch out-channel o = k*d2 + d
            valid[d * kkp + k] = True
    srcj, validj = jnp.asarray(src), jnp.asarray(valid)
    w_mat = jnp.where(validj[:, None], jnp.take(w_rows, srcj, axis=0), 0.0)
    b_col = jnp.where(validj, jnp.take(b_enc, srcj, axis=0), -1e9)
    return (w_mat.astype(jnp.bfloat16),
            b_col.reshape(d2 * kkp, 1).astype(jnp.float32))


def _vmem_limit_bytes(C, cm, hw, d2, kkp, kk, out_c, kenc):
    f32 = 4
    live = hw * f32 * (C                        # x block
                       + 2 * cm                 # xd + one shifted window
                       + kenc * kenc * cm       # im2col slab (bf16; budget as f32)
                       + 3 * d2 * kkp           # logits / exp / softmax weights
                       + 2 * kk * C             # patch stack + weighted intermediate
                       + d2 * out_c             # output block
                       + kenc * kenc + kk)      # tap masks
    # 2x for the double-buffered pipeline + headroom; stay under v7x's 64 MiB VMEM.
    return int(min(max(2 * live + (4 << 20), 32 << 20), 60 << 20))


# ---------------------------------------------------------------------------
# Fused CARAFE kernel: one batch element per grid step, pixels in the lane dim.
# ---------------------------------------------------------------------------
def _carafe_kernel(x_ref, wdown_ref, bdown_ref, wenc_ref, benc_ref,
                   wout_ref, bout_ref, menc_ref, mup_ref, out_ref,
                   *, enc_offsets, up_offsets, d2, kkp, kk):
    hw = x_ref.shape[-1]
    xb = x_ref[0]                                                   # (C, HW) f32

    # -- fused 1x1 down conv (xd never leaves VMEM) --------------------------
    xd = (jnp.dot(wdown_ref[...], xb, preferred_element_type=jnp.float32)
          + bdown_ref[...])                                         # (Cm, HW) f32

    # -- encoder 3x3 conv: build the (kenc^2*Cm, HW) im2col slab in VMEM and
    #    issue ONE deep-K bf16 MXU dot; output is already (channels, HW) layout.
    wins = []
    for t, off in enumerate(enc_offsets):
        wins.append(_shift_lanes(xd, off) * menc_ref[t:t + 1, :])   # (Cm, HW)
    slab = jnp.concatenate(wins, axis=0).astype(jnp.bfloat16)       # (9*Cm, HW)
    logits = (jnp.dot(wenc_ref[...], slab, preferred_element_type=jnp.float32)
              + benc_ref[...])                                      # (d2*kkp, HW)

    # -- softmax over the Kup^2 taps, vectorized over all subpixels ----------
    lg = logits.reshape(d2, kkp, hw)
    m = jnp.max(lg, axis=1, keepdims=True)
    e = jnp.exp(lg - m)
    s = jnp.sum(e, axis=1, keepdims=True)
    wgt = e * pl.reciprocal(s, approx=True)                         # (d2, kkp, HW)

    # -- Kup^2 shifted input windows, generated once in VMEM (no HBM slab) ---
    pats = []
    for k, off in enumerate(up_offsets):
        pats.append(_shift_lanes(xb, off) * mup_ref[k:k + 1, :])    # (C, HW)
    patches = jnp.stack(pats, axis=0)                               # (kk, C, HW)

    # -- content-aware reassembly + fused 1x1 out conv, one subpixel at a time
    for d in range(d2):
        wd = wgt[d, :kk, :]                                         # (kk, HW)
        feat = jnp.sum(wd[:, None, :] * patches, axis=0)            # (C, HW)
        out_ref[0, d] = (jnp.dot(wout_ref[...], feat,
                                 preferred_element_type=jnp.float32)
                         + bout_ref[...])                           # (outC, HW)


# ---------------------------------------------------------------------------
# Full CARAFE forward (one pallas_call + thin JAX glue for the pixel shuffle)
# ---------------------------------------------------------------------------
def carafe_forward(x_nchw, params, *, kenc=3, delta=2, kup=5, cm=64):
    N, C, H, W = x_nchw.shape
    d2, kk = delta * delta, kup * kup
    kkp = ((kk + 7) // 8) * 8               # pad the tap axis to 8 sublanes (25 -> 32)
    hw = H * W

    w_down = params["w_down"].astype(jnp.float32)                   # (Cm, inC)
    b_down = params["b_down"].reshape(cm, 1).astype(jnp.float32)
    w_out = params["w_out"].astype(jnp.float32)                     # (outC, inC)
    b_out = params["b_out"].reshape(-1, 1).astype(jnp.float32)
    out_c = w_out.shape[0]
    w_enc_mat, b_enc_col = _pack_encoder_weights(
        params["w_enc"], params["b_enc"], d2=d2, kk=kk, kkp=kkp, cm=cm, kenc=kenc)

    x_flat = x_nchw.reshape(N, C, hw)       # free reshape: pixels -> lane dimension
    m_enc = _tap_masks(H, W, kenc)
    m_up = _tap_masks(H, W, kup)

    kernel = functools.partial(
        _carafe_kernel,
        enc_offsets=_tap_offsets(W, kenc), up_offsets=_tap_offsets(W, kup),
        d2=d2, kkp=kkp, kk=kk)

    # TODO(synk): for large H*W (v7x: 64 MiB VMEM) or N == 1, tile this grid over
    # image rows with a (kup//2)-row halo via manual make_async_copy so each block
    # fits VMEM and the grid still exposes >= 2 parallel steps per chip.
    out = pl.pallas_call(
        kernel,
        out_shape=jax.ShapeDtypeStruct((N, d2, out_c, hw), jnp.float32),
        grid=(N,),
        in_specs=[
            pl.BlockSpec((1, C, hw), lambda n: (n, 0, 0)),
            pl.BlockSpec((cm, C), lambda n: (0, 0)),
            pl.BlockSpec((cm, 1), lambda n: (0, 0)),
            pl.BlockSpec((d2 * kkp, kenc * kenc * cm), lambda n: (0, 0)),
            pl.BlockSpec((d2 * kkp, 1), lambda n: (0, 0)),
            pl.BlockSpec((out_c, C), lambda n: (0, 0)),
            pl.BlockSpec((out_c, 1), lambda n: (0, 0)),
            pl.BlockSpec((kenc * kenc, hw), lambda n: (0, 0)),
            pl.BlockSpec((kup * kup, hw), lambda n: (0, 0)),
        ],
        out_specs=pl.BlockSpec((1, d2, out_c, hw), lambda n: (n, 0, 0, 0)),
        compiler_params=pltpu.CompilerParams(
            dimension_semantics=("parallel",),
            vmem_limit_bytes=_vmem_limit_bytes(C, cm, hw, d2, kkp, kk, out_c, kenc)),
    )(x_flat, w_down, b_down, w_enc_mat, b_enc_col, w_out, b_out, m_enc, m_up)

    # pixel shuffle: subpixel d = di*delta + dj  ->  (n, o, H*delta, W*delta) NCHW
    up = out.reshape(N, delta, delta, out_c, H, W)
    return jnp.transpose(up, (0, 3, 4, 1, 5, 2)).reshape(
        N, out_c, H * delta, W * delta)


# ---------------------------------------------------------------------------
# Pure-JAX reference (mirrors the PyTorch forward exactly)
# ---------------------------------------------------------------------------
def carafe_reference(x, params, *, kenc=3, delta=2, kup=5, cm=64):
    N, C, H, W = x.shape
    d2, kk = delta * delta, kup * kup
    w_down, b_down = params["w_down"], params["b_down"]
    w_enc, b_enc = params["w_enc"], params["b_enc"]
    w_out, b_out = params["w_out"], params["b_out"]

    xd = jnp.einsum('nchw,oc->nohw', x, w_down) + b_down[None, :, None, None]
    enc = lax.conv_general_dilated(
        xd, w_enc, window_strides=(1, 1),
        padding=((kenc // 2, kenc // 2), (kenc // 2, kenc // 2)),
        dimension_numbers=('NCHW', 'OIHW', 'NCHW')) + b_enc[None, :, None, None]
    # pixel_shuffle(delta)
    ps = enc.reshape(N, kk, delta, delta, H, W).transpose(0, 1, 4, 2, 5, 3)
    ps = ps.reshape(N, kk, H * delta, W * delta)
    sm = jax.nn.softmax(ps, axis=1)
    # unfold/unfold/reshape/permute -> (N, H, W, kk, d2)
    kt = sm.reshape(N, kk, H, delta, W, delta).transpose(0, 2, 4, 1, 3, 5)
    kt = kt.reshape(N, H, W, kk, d2)
    # padded input patches -> (N, C, H, W, kk)
    xp = jnp.pad(x, ((0, 0), (0, 0), (kup // 2, kup // 2), (kup // 2, kup // 2)))
    patches = jnp.stack([xp[:, :, u:u + H, v:v + W]
                         for u in range(kup) for v in range(kup)], axis=-1)
    out = jnp.einsum('nchwk,nhwkd->nhwcd', patches, kt)              # (N,H,W,C,d2)
    up = out.reshape(N, H, W, C, delta, delta).transpose(0, 3, 1, 4, 2, 5)
    up = up.reshape(N, C, H * delta, W * delta)
    return jnp.einsum('nchw,oc->nohw', up, w_out) + b_out[None, :, None, None]


# ---------------------------------------------------------------------------
# Deterministic parameter init (shapes from the PyTorch __init__)
# ---------------------------------------------------------------------------
def init_params(key, inC, outC, kenc=3, kup=5, delta=2, cm=64):
    ks = jax.random.split(key, 6)
    s = 0.1
    return dict(
        w_down=s * jax.random.normal(ks[0], (cm, inC), jnp.float32),      # Conv2d(inC, Cm, 1)
        b_down=s * jax.random.normal(ks[1], (cm,), jnp.float32),
        w_enc=s * jax.random.normal(ks[2], (delta ** 2 * kup ** 2, cm, kenc, kenc),
                                    jnp.float32),                         # Conv2d(Cm, d2*Kup^2, 3, pad=1)
        b_enc=s * jax.random.normal(ks[3], (delta ** 2 * kup ** 2,), jnp.float32),
        w_out=s * jax.random.normal(ks[4], (outC, inC), jnp.float32),      # Conv2d(inC, outC, 1)
        b_out=s * jax.random.normal(ks[5], (outC,), jnp.float32),
    )


if __name__ == "__main__":
    key = jax.random.PRNGKey(0)
    kx_, kp_ = jax.random.split(key)
    N, inC, outC, H, W = 2, 4, 4, 16, 16
    x = jax.random.normal(kx_, (N, inC, H, W), jnp.float32)
    params = init_params(kp_, inC, outC)

    out = jax.block_until_ready(carafe_forward(x, params))
    assert out.shape == (N, outC, 2 * H, 2 * W), out.shape

    ref = jax.block_until_ready(carafe_reference(x, params))
    max_err = float(jnp.max(jnp.abs(out - ref)))
    assert np.allclose(np.asarray(out), np.asarray(ref), rtol=2e-2, atol=2e-2), \
        f"mismatch vs reference, max abs err = {max_err}"

    print("KERNEL_OK")
</pallas_src>

<mosaic_0001>
module attributes {stable_mosaic.version = 11 : i64} {
  func.func @_carafe_kernel(%arg0: i32, %arg1: memref<1x4x256xf32, #tpu.memory_space<vmem>>, %arg2: memref<64x4xf32, #tpu.memory_space<vmem>>, %arg3: memref<64x1xf32, #tpu.memory_space<vmem>>, %arg4: memref<128x576xbf16, #tpu.memory_space<vmem>>, %arg5: memref<128x1xf32, #tpu.memory_space<vmem>>, %arg6: memref<4x4xf32, #tpu.memory_space<vmem>>, %arg7: memref<4x1xf32, #tpu.memory_space<vmem>>, %arg8: memref<9x256xf32, #tpu.memory_space<vmem>>, %arg9: memref<25x256xf32, #tpu.memory_space<vmem>>, %arg10: memref<1x4x4x256xf32, #tpu.memory_space<vmem>>) attributes {dimension_semantics = [#tpu.dimension_semantics<parallel>], iteration_bounds = array<i64: 2>, scalar_prefetch = 0 : i64, scratch_operands = 0 : i64, tpu.core_type = #tpu.core_type<tc>, window_params = [{transform_indices = @transform_0, window_bounds = array<i64: 1, 4, 256>}, {pipeline_mode = #tpu.pipeline_mode<synchronous>, transform_indices = @transform_1, window_bounds = array<i64: 64, 4>}, {pipeline_mode = #tpu.pipeline_mode<synchronous>, transform_indices = @transform_2, window_bounds = array<i64: 64, 1>}, {pipeline_mode = #tpu.pipeline_mode<synchronous>, transform_indices = @transform_3, window_bounds = array<i64: 128, 576>}, {pipeline_mode = #tpu.pipeline_mode<synchronous>, transform_indices = @transform_4, window_bounds = array<i64: 128, 1>}, {pipeline_mode = #tpu.pipeline_mode<synchronous>, transform_indices = @transform_5, window_bounds = array<i64: 4, 4>}, {pipeline_mode = #tpu.pipeline_mode<synchronous>, transform_indices = @transform_6, window_bounds = array<i64: 4, 1>}, {pipeline_mode = #tpu.pipeline_mode<synchronous>, transform_indices = @transform_7, window_bounds = array<i64: 9, 256>}, {pipeline_mode = #tpu.pipeline_mode<synchronous>, transform_indices = @transform_8, window_bounds = array<i64: 25, 256>}, {transform_indices = @transform_9, window_bounds = array<i64: 1, 4, 4, 256>}]} {
    %c0 = arith.constant 0 : index
    %c0_0 = arith.constant 0 : index
    %c0_1 = arith.constant 0 : index
    %0 = vector.load %arg1[%c0, %c0_0, %c0_1] : memref<1x4x256xf32, #tpu.memory_space<vmem>>, vector<1x4x256xf32>
    %1 = vector.shape_cast %0 : vector<1x4x256xf32> to vector<4x256xf32>
    %c0_2 = arith.constant 0 : index
    %c0_3 = arith.constant 0 : index
    %2 = vector.load %arg2[%c0_2, %c0_3] : memref<64x4xf32, #tpu.memory_space<vmem>>, vector<64x4xf32>
    %cst = arith.constant dense<0.000000e+00> : vector<64x256xf32>
    %3 = tpu.matmul %2, %1, %cst {dimension_numbers = #tpu.dot_dimension_numbers<[1], [0], [0], [1], [0, 0, 1, 1], [], []>} : vector<64x4xf32>, vector<4x256xf32>, vector<64x256xf32> -> vector<64x256xf32>
    %c0_4 = arith.constant 0 : index
    %c0_5 = arith.constant 0 : index
    %4 = vector.load %arg3[%c0_4, %c0_5] : memref<64x1xf32, #tpu.memory_space<vmem>>, vector<64x1xf32>
    %5 = vector.broadcast %4 : vector<64x1xf32> to vector<64x256xf32>
    %6 = arith.addf %3, %5 : vector<64x256xf32>
    %7 = vector.extract_strided_slice %6 {offsets = [0, 239], sizes = [64, 17], strides = [1, 1]} : vector<64x256xf32> to vector<64x17xf32>
    %8 = vector.extract_strided_slice %6 {offsets = [0, 0], sizes = [64, 239], strides = [1, 1]} : vector<64x256xf32> to vector<64x239xf32>
    %9 = tpu.concatenate %7, %8 in 1 : vector<64x17xf32>, vector<64x239xf32> -> vector<64x256xf32>
    %c0_6 = arith.constant 0 : index
    %c0_7 = arith.constant 0 : index
    %10 = vector.load %arg8[%c0_6, %c0_7] : memref<9x256xf32, #tpu.memory_space<vmem>>, vector<1x256xf32>
    %11 = vector.broadcast %10 : vector<1x256xf32> to vector<64x256xf32>
    %12 = arith.mulf %9, %11 : vector<64x256xf32>
    %13 = vector.extract_strided_slice %6 {offsets = [0, 240], sizes = [64, 16], strides = [1, 1]} : vector<64x256xf32> to vector<64x16xf32>
    %14 = vector.extract_strided_slice %6 {offsets = [0, 0], sizes = [64, 240], strides = [1, 1]} : vector<64x256xf32> to vector<64x240xf32>
    %15 = tpu.concatenate %13, %14 in 1 : vector<64x16xf32>, vector<64x240xf32> -> vector<64x256xf32>
    %c1 = arith.constant 1 : index
    %c0_8 = arith.constant 0 : index
    %16 = vector.load %arg8[%c1, %c0_8] : memref<9x256xf32, #tpu.memory_space<vmem>>, vector<1x256xf32>
    %17 = vector.broadcast %16 : vector<1x256xf32> to vector<64x256xf32>
    %18 = arith.mulf %15, %17 : vector<64x256xf32>
    %19 = vector.extract_strided_slice %6 {offsets = [0, 241], sizes = [64, 15], strides = [1, 1]} : vector<64x256xf32> to vector<64x15xf32>
    %20 = vector.extract_strided_slice %6 {offsets = [0, 0], sizes = [64, 241], strides = [1, 1]} : vector<64x256xf32> to vector<64x241xf32>
    %21 = tpu.concatenate %19, %20 in 1 : vector<64x15xf32>, vector<64x241xf32> -> vector<64x256xf32>
    %c2 = arith.constant 2 : index
    %c0_9 = arith.constant 0 : index
    %22 = vector.load %arg8[%c2, %c0_9] : memref<9x256xf32, #tpu.memory_space<vmem>>, vector<1x256xf32>
    %23 = vector.broadcast %22 : vector<1x256xf32> to vector<64x256xf32>
    %24 = arith.mulf %21, %23 : vector<64x256xf32>
    %25 = vector.extract_strided_slice %6 {offsets = [0, 255], sizes = [64, 1], strides = [1, 1]} : vector<64x256xf32> to vector<64x1xf32>
    %26 = vector.extract_strided_slice %6 {offsets = [0, 0], sizes = [64, 255], strides = [1, 1]} : vector<64x256xf32> to vector<64x255xf32>
    %27 = tpu.concatenate %25, %26 in 1 : vector<64x1xf32>, vector<64x255xf32> -> vector<64x256xf32>
    %c3 = arith.constant 3 : index
    %c0_10 = arith.constant 0 : index
    %28 = vector.load %arg8[%c3, %c0_10] : memref<9x256xf32, #tpu.memory_space<vmem>>, vector<1x256xf32>
    %29 = vector.broadcast %28 : vector<1x256xf32> to vector<64x256xf32>
    %30 = arith.mulf %27, %29 : vector<64x256xf32>
    %c4 = arith.constant 4 : index
    %c0_11 = arith.constant 0 : index
    %31 = vector.load %arg8[%c4, %c0_11] : memref<9x256xf32, #tpu.memory_space<vmem>>, vector<1x256xf32>
    %32 = vector.broadcast %31 : vector<1x256xf32> to vector<64x256xf32>
    %33 = arith.mulf %6, %32 : vector<64x256xf32>
    %34 = vector.extract_strided_slice %6 {offsets = [0, 1], sizes = [64, 255], strides = [1, 1]} : vector<64x256xf32> to vector<64x255xf32>
    %35 = vector.extract_strided_slice %6 {offsets = [0, 0], sizes = [64, 1], strides = [1, 1]} : vector<64x256xf32> to vector<64x1xf32>
    %36 = tpu.concatenate %34, %35 in 1 : vector<64x255xf32>, vector<64x1xf32> -> vector<64x256xf32>
    %c5 = arith.constant 5 : index
    %c0_12 = arith.constant 0 : index
    %37 = vector.load %arg8[%c5, %c0_12] : memref<9x256xf32, #tpu.memory_space<vmem>>, vector<1x256xf32>
    %38 = vector.broadcast %37 : vector<1x256xf32> to vector<64x256xf32>
    %39 = arith.mulf %36, %38 : vector<64x256xf32>
    %40 = vector.extract_strided_slice %6 {offsets = [0, 15], sizes = [64, 241], strides = [1, 1]} : vector<64x256xf32> to vector<64x241xf32>
    %41 = vector.extract_strided_slice %6 {offsets = [0, 0], sizes = [64, 15], strides = [1, 1]} : vector<64x256xf32> to vector<64x15xf32>
    %42 = tpu.concatenate %40, %41 in 1 : vector<64x241xf32>, vector<64x15xf32> -> vector<64x256xf32>
    %c6 = arith.constant 6 : index
    %c0_13 = arith.constant 0 : index
    %43 = vector.load %arg8[%c6, %c0_13] : memref<9x256xf32, #tpu.memory_space<vmem>>, vector<1x256xf32>
    %44 = vector.broadcast %43 : vector<1x256xf32> to vector<64x256xf32>
    %45 = arith.mulf %42, %44 : vector<64x256xf32>
    %46 = vector.extract_strided_slice %6 {offsets = [0, 16], sizes = [64, 240], strides = [1, 1]} : vector<64x256xf32> to vector<64x240xf32>
    %47 = vector.extract_strided_slice %6 {offsets = [0, 0], sizes = [64, 16], strides = [1, 1]} : vector<64x256xf32> to vector<64x16xf32>
    %48 = tpu.concatenate %46, %47 in 1 : vector<64x240xf32>, vector<64x16xf32> -> vector<64x256xf32>
    %c7 = arith.constant 7 : index
    %c0_14 = arith.constant 0 : index
    %49 = vector.load %arg8[%c7, %c0_14] : memref<9x256xf32, #tpu.memory_space<vmem>>, vector<1x256xf32>
    %50 = vector.broadcast %49 : vector<1x256xf32> to vector<64x256xf32>
    %51 = arith.mulf %48, %50 : vector<64x256xf32>
    %52 = vector.extract_strided_slice %6 {offsets = [0, 17], sizes = [64, 239], strides = [1, 1]} : vector<64x256xf32> to vector<64x239xf32>
    %53 = vector.extract_strided_slice %6 {offsets = [0, 0], sizes = [64, 17], strides = [1, 1]} : vector<64x256xf32> to vector<64x17xf32>
    %54 = tpu.concatenate %52, %53 in 1 : vector<64x239xf32>, vector<64x17xf32> -> vector<64x256xf32>
    %c8 = arith.constant 8 : index
    %c0_15 = arith.constant 0 : index
    %55 = vector.load %arg8[%c8, %c0_15] : memref<9x256xf32, #tpu.memory_space<vmem>>, vector<1x256xf32>
    %56 = vector.broadcast %55 : vector<1x256xf32> to vector<64x256xf32>
    %57 = arith.mulf %54, %56 : vector<64x256xf32>
    %58 = tpu.concatenate %12, %18, %24, %30, %33, %39, %45, %51, %57 in 0 : vector<64x256xf32>, vector<64x256xf32>, vector<64x256xf32>, vector<64x256xf32>, vector<64x256xf32>, vector<64x256xf32>, vector<64x256xf32>, vector<64x256xf32>, vector<64x256xf32> -> vector<576x256xf32>
    %59 = arith.truncf %58 : vector<576x256xf32> to vector<576x256xbf16>
    %c0_16 = arith.constant 0 : index
    %c0_17 = arith.constant 0 : index
    %60 = vector.load %arg4[%c0_16, %c0_17] : memref<128x576xbf16, #tpu.memory_space<vmem>>, vector<128x576xbf16>
    %cst_18 = arith.constant dense<0.000000e+00> : vector<128x256xf32>
    %61 = tpu.matmul %60, %59, %cst_18 {dimension_numbers = #tpu.dot_dimension_numbers<[1], [0], [0], [1], [0, 0, 1, 1], [], []>} : vector<128x576xbf16>, vector<576x256xbf16>, vector<128x256xf32> -> vector<128x256xf32>
    %c0_19 = arith.constant 0 : index
    %c0_20 = arith.constant 0 : index
    %62 = vector.load %arg5[%c0_19, %c0_20] : memref<128x1xf32, #tpu.memory_space<vmem>>, vector<128x1xf32>
    %63 = vector.broadcast %62 : vector<128x1xf32> to vector<128x256xf32>
    %64 = arith.addf %61, %63 : vector<128x256xf32>
    %65 = vector.shape_cast %64 : vector<128x256xf32> to vector<4x32x256xf32>
    %cst_21 = arith.constant dense<0xFF800000> : vector<4x256xf32>
    %66 = vector.multi_reduction <maximumf>, %65, %cst_21 [1] : vector<4x32x256xf32> to vector<4x256xf32>
    %67 = vector.shape_cast %66 : vector<4x256xf32> to vector<4x1x256xf32>
    %68 = vector.broadcast %67 : vector<4x1x256xf32> to vector<4x32x256xf32>
    %69 = arith.subf %65, %68 : vector<4x32x256xf32>
    %70 = math.exp %69 : vector<4x32x256xf32>
    %cst_22 = arith.constant dense<0.000000e+00> : vector<4x256xf32>
    %71 = vector.multi_reduction <add>, %70, %cst_22 [1] : vector<4x32x256xf32> to vector<4x256xf32>
    %72 = vector.shape_cast %71 : vector<4x256xf32> to vector<4x1x256xf32>
    %73 = tpu.reciprocal %72 {approx = true} : vector<4x1x256xf32> -> vector<4x1x256xf32>
    %74 = vector.broadcast %73 : vector<4x1x256xf32> to vector<4x32x256xf32>
    %75 = arith.mulf %70, %74 : vector<4x32x256xf32>
    %76 = vector.extract_strided_slice %1 {offsets = [0, 222], sizes = [4, 34], strides = [1, 1]} : vector<4x256xf32> to vector<4x34xf32>
    %77 = vector.extract_strided_slice %1 {offsets = [0, 0], sizes = [4, 222], strides = [1, 1]} : vector<4x256xf32> to vector<4x222xf32>
    %78 = tpu.concatenate %76, %77 in 1 : vector<4x34xf32>, vector<4x222xf32> -> vector<4x256xf32>
    %c0_23 = arith.constant 0 : index
    %c0_24 = arith.constant 0 : index
    %79 = vector.load %arg9[%c0_23, %c0_24] : memref<25x256xf32, #tpu.memory_space<vmem>>, vector<1x256xf32>
    %80 = vector.broadcast %79 : vector<1x256xf32> to vector<4x256xf32>
    %81 = arith.mulf %78, %80 : vector<4x256xf32>
    %82 = vector.extract_strided_slice %1 {offsets = [0, 223], sizes = [4, 33], strides = [1, 1]} : vector<4x256xf32> to vector<4x33xf32>
    %83 = vector.extract_strided_slice %1 {offsets = [0, 0], sizes = [4, 223], strides = [1, 1]} : vector<4x256xf32> to vector<4x223xf32>
    %84 = tpu.concatenate %82, %83 in 1 : vector<4x33xf32>, vector<4x223xf32> -> vector<4x256xf32>
    %c1_25 = arith.constant 1 : index
    %c0_26 = arith.constant 0 : index
    %85 = vector.load %arg9[%c1_25, %c0_26] : memref<25x256xf32, #tpu.memory_space<vmem>>, vector<1x256xf32>
    %86 = vector.broadcast %85 : vector<1x256xf32> to vector<4x256xf32>
    %87 = arith.mulf %84, %86 : vector<4x256xf32>
    %88 = vector.extract_strided_slice %1 {offsets = [0, 224], sizes = [4, 32], strides = [1, 1]} : vector<4x256xf32> to vector<4x32xf32>
    %89 = vector.extract_strided_slice %1 {offsets = [0, 0], sizes = [4, 224], strides = [1, 1]} : vector<4x256xf32> to vector<4x224xf32>
    %90 = tpu.concatenate %88, %89 in 1 : vector<4x32xf32>, vector<4x224xf32> -> vector<4x256xf32>
    %c2_27 = arith.constant 2 : index
    %c0_28 = arith.constant 0 : index
    %91 = vector.load %arg9[%c2_27, %c0_28] : memref<25x256xf32, #tpu.memory_space<vmem>>, vector<1x256xf32>
    %92 = vector.broadcast %91 : vector<1x256xf32> to vector<4x256xf32>
    %93 = arith.mulf %90, %92 : vector<4x256xf32>
    %94 = vector.extract_strided_slice %1 {offsets = [0, 225], sizes = [4, 31], strides = [1, 1]} : vector<4x256xf32> to vector<4x31xf32>
    %95 = vector.extract_strided_slice %1 {offsets = [0, 0], sizes = [4, 225], strides = [1, 1]} : vector<4x256xf32> to vector<4x225xf32>
    %96 = tpu.concatenate %94, %95 in 1 : vector<4x31xf32>, vector<4x225xf32> -> vector<4x256xf32>
    %c3_29 = arith.constant 3 : index
    %c0_30 = arith.constant 0 : index
    %97 = vector.load %arg9[%c3_29, %c0_30] : memref<25x256xf32, #tpu.memory_space<vmem>>, vector<1x256xf32>
    %98 = vector.broadcast %97 : vector<1x256xf32> to vector<4x256xf32>
    %99 = arith.mulf %96, %98 : vector<4x256xf32>
    %100 = vector.extract_strided_slice %1 {offsets = [0, 226], sizes = [4, 30], strides = [1, 1]} : vector<4x256xf32> to vector<4x30xf32>
    %101 = vector.extract_strided_slice %1 {offsets = [0, 0], sizes = [4, 226], strides = [1, 1]} : vector<4x256xf32> to vector<4x226xf32>
    %102 = tpu.concatenate %100, %101 in 1 : vector<4x30xf32>, vector<4x226xf32> -> vector<4x256xf32>
    %c4_31 = arith.constant 4 : index
    %c0_32 = arith.constant 0 : index
    %103 = vector.load %arg9[%c4_31, %c0_32] : memref<25x256xf32, #tpu.memory_space<vmem>>, vector<1x256xf32>
    %104 = vector.broadcast %103 : vector<1x256xf32> to vector<4x256xf32>
    %105 = arith.mulf %102, %104 : vector<4x256xf32>
    %106 = vector.extract_strided_slice %1 {offsets = [0, 238], sizes = [4, 18], strides = [1, 1]} : vector<4x256xf32> to vector<4x18xf32>
    %107 = vector.extract_strided_slice %1 {offsets = [0, 0], sizes = [4, 238], strides = [1, 1]} : vector<4x256xf32> to vector<4x238xf32>
    %108 = tpu.concatenate %106, %107 in 1 : vector<4x18xf32>, vector<4x238xf32> -> vector<4x256xf32>
    %c5_33 = arith.constant 5 : index
    %c0_34 = arith.constant 0 : index
    %109 = vector.load %arg9[%c5_33, %c0_34] : memref<25x256xf32, #tpu.memory_space<vmem>>, vector<1x256xf32>
    %110 = vector.broadcast %109 : vector<1x256xf32> to vector<4x256xf32>
    %111 = arith.mulf %108, %110 : vector<4x256xf32>
    %112 = vector.extract_strided_slice %1 {offsets = [0, 239], sizes = [4, 17], strides = [1, 1]} : vector<4x256xf32> to vector<4x17xf32>
    %113 = vector.extract_strided_slice %1 {offsets = [0, 0], sizes = [4, 239], strides = [1, 1]} : vector<4x256xf32> to vector<4x239xf32>
    %114 = tpu.concatenate %112, %113 in 1 : vector<4x17xf32>, vector<4x239xf32> -> vector<4x256xf32>
    %c6_35 = arith.constant 6 : index
    %c0_36 = arith.constant 0 : index
    %115 = vector.load %arg9[%c6_35, %c0_36] : memref<25x256xf32, #tpu.memory_space<vmem>>, vector<1x256xf32>
    %116 = vector.broadcast %115 : vector<1x256xf32> to vector<4x256xf32>
    %117 = arith.mulf %114, %116 : vector<4x256xf32>
    %118 = vector.extract_strided_slice %1 {offsets = [0, 240], sizes = [4, 16], strides = [1, 1]} : vector<4x256xf32> to vector<4x16xf32>
    %119 = vector.extract_strided_slice %1 {offsets = [0, 0], sizes = [4, 240], strides = [1, 1]} : vector<4x256xf32> to vector<4x240xf32>
    %120 = tpu.concatenate %118, %119 in 1 : vector<4x16xf32>, vector<4x240xf32> -> vector<4x256xf32>
    %c7_37 = arith.constant 7 : index
    %c0_38 = arith.constant 0 : index
    %121 = vector.load %arg9[%c7_37, %c0_38] : memref<25x256xf32, #tpu.memory_space<vmem>>, vector<1x256xf32>
    %122 = vector.broadcast %121 : vector<1x256xf32> to vector<4x256xf32>
    %123 = arith.mulf %120, %122 : vector<4x256xf32>
    %124 = vector.extract_strided_slice %1 {offsets = [0, 241], sizes = [4, 15], strides = [1, 1]} : vector<4x256xf32> to vector<4x15xf32>
    %125 = vector.extract_strided_slice %1 {offsets = [0, 0], sizes = [4, 241], strides = [1, 1]} : vector<4x256xf32> to vector<4x241xf32>
    %126 = tpu.concatenate %124, %125 in 1 : vector<4x15xf32>, vector<4x241xf32> -> vector<4x256xf32>
    %c8_39 = arith.constant 8 : index
    %c0_40 = arith.constant 0 : index
    %127 = vector.load %arg9[%c8_39, %c0_40] : memref<25x256xf32, #tpu.memory_space<vmem>>, vector<1x256xf32>
    %128 = vector.broadcast %127 : vector<1x256xf32> to vector<4x256xf32>
    %129 = arith.mulf %126, %128 : vector<4x256xf32>
    %130 = vector.extract_strided_slice %1 {offsets = [0, 242], sizes = [4, 14], strides = [1, 1]} : vector<4x256xf32> to vector<4x14xf32>
    %131 = vector.extract_strided_slice %1 {offsets = [0, 0], sizes = [4, 242], strides = [1, 1]} : vector<4x256xf32> to vector<4x242xf32>
    %132 = tpu.concatenate %130, %131 in 1 : vector<4x14xf32>, vector<4x242xf32> -> vector<4x256xf32>
    %c9 = arith.constant 9 : index
    %c0_41 = arith.constant 0 : index
    %133 = vector.load %arg9[%c9, %c0_41] : memref<25x256xf32, #tpu.memory_space<vmem>>, vector<1x256xf32>
    %134 = vector.broadcast %133 : vector<1x256xf32> to vector<4x256xf32>
    %135 = arith.mulf %132, %134 : vector<4x256xf32>
    %136 = vector.extract_strided_slice %1 {offsets = [0, 254], sizes = [4, 2], strides = [1, 1]} : vector<4x256xf32> to vector<4x2xf32>
    %137 = vector.extract_strided_slice %1 {offsets = [0, 0], sizes = [4, 254], strides = [1, 1]} : vector<4x256xf32> to vector<4x254xf32>
    %138 = tpu.concatenate %136, %137 in 1 : vector<4x2xf32>, vector<4x254xf32> -> vector<4x256xf32>
    %c10 = arith.constant 10 : index
    %c0_42 = arith.constant 0 : index
    %139 = vector.load %arg9[%c10, %c0_42] : memref<25x256xf32, #tpu.memory_space<vmem>>, vector<1x256xf32>
    %140 = vector.broadcast %139 : vector<1x256xf32> to vector<4x256xf32>
    %141 = arith.mulf %138, %140 : vector<4x256xf32>
    %142 = vector.extract_strided_slice %1 {offsets = [0, 255], sizes = [4, 1], strides = [1, 1]} : vector<4x256xf32> to vector<4x1xf32>
    %143 = vector.extract_strided_slice %1 {offsets = [0, 0], sizes = [4, 255], strides = [1, 1]} : vector<4x256xf32> to vector<4x255xf32>
    %144 = tpu.concatenate %142, %143 in 1 : vector<4x1xf32>, vector<4x255xf32> -> vector<4x256xf32>
    %c11 = arith.constant 11 : index
    %c0_43 = arith.constant 0 : index
    %145 = vector.load %arg9[%c11, %c0_43] : memref<25x256xf32, #tpu.memory_space<vmem>>, vector<1x256xf32>
    %146 = vector.broadcast %145 : vector<1x256xf32> to vector<4x256xf32>
    %147 = arith.mulf %144, %146 : vector<4x256xf32>
    %c12 = arith.constant 12 : index
    %c0_44 = arith.constant 0 : index
    %148 = vector.load %arg9[%c12, %c0_44] : memref<25x256xf32, #tpu.memory_space<vmem>>, vector<1x256xf32>
    %149 = vector.broadcast %148 : vector<1x256xf32> to vector<4x256xf32>
    %150 = arith.mulf %1, %149 : vector<4x256xf32>
    %151 = vector.extract_strided_slice %1 {offsets = [0, 1], sizes = [4, 255], strides = [1, 1]} : vector<4x256xf32> to vector<4x255xf32>
    %152 = vector.extract_strided_slice %1 {offsets = [0, 0], sizes = [4, 1], strides = [1, 1]} : vector<4x256xf32> to vector<4x1xf32>
    %153 = tpu.concatenate %151, %152 in 1 : vector<4x255xf32>, vector<4x1xf32> -> vector<4x256xf32>
    %c13 = arith.constant 13 : index
    %c0_45 = arith.constant 0 : index
    %154 = vector.load %arg9[%c13, %c0_45] : memref<25x256xf32, #tpu.memory_space<vmem>>, vector<1x256xf32>
    %155 = vector.broadcast %154 : vector<1x256xf32> to vector<4x256xf32>
    %156 = arith.mulf %153, %155 : vector<4x256xf32>
    %157 = vector.extract_strided_slice %1 {offsets = [0, 2], sizes = [4, 254], strides = [1, 1]} : vector<4x256xf32> to vector<4x254xf32>
    %158 = vector.extract_strided_slice %1 {offsets = [0, 0], sizes = [4, 2], strides = [1, 1]} : vector<4x256xf32> to vector<4x2xf32>
    %159 = tpu.concatenate %157, %158 in 1 : vector<4x254xf32>, vector<4x2xf32> -> vector<4x256xf32>
    %c14 = arith.constant 14 : index
    %c0_46 = arith.constant 0 : index
    %160 = vector.load %arg9[%c14, %c0_46] : memref<25x256xf32, #tpu.memory_space<vmem>>, vector<1x256xf32>
    %161 = vector.broadcast %160 : vector<1x256xf32> to vector<4x256xf32>
    %162 = arith.mulf %159, %161 : vector<4x256xf32>
    %163 = vector.extract_strided_slice %1 {offsets = [0, 14], sizes = [4, 242], strides = [1, 1]} : vector<4x256xf32> to vector<4x242xf32>
    %164 = vector.extract_strided_slice %1 {offsets = [0, 0], sizes = [4, 14], strides = [1, 1]} : vector<4x256xf32> to vector<4x14xf32>
    %165 = tpu.concatenate %163, %164 in 1 : vector<4x242xf32>, vector<4x14xf32> -> vector<4x256xf32>
    %c15 = arith.constant 15 : index
    %c0_47 = arith.constant 0 : index
    %166 = vector.load %arg9[%c15, %c0_47] : memref<25x256xf32, #tpu.memory_space<vmem>>, vector<1x256xf32>
    %167 = vector.broadcast %166 : vector<1x256xf32> to vector<4x256xf32>
    %168 = arith.mulf %165, %167 : vector<4x256xf32>
    %169 = vector.extract_strided_slice %1 {offsets = [0, 15], sizes = [4, 241], strides = [1, 1]} : vector<4x256xf32> to vector<4x241xf32>
    %170 = vector.extract_strided_slice %1 {offsets = [0, 0], sizes = [4, 15], strides = [1, 1]} : vector<4x256xf32> to vector<4x15xf32>
    %171 = tpu.concatenate %169, %170 in 1 : vector<4x241xf32>, vector<4x15xf32> -> vector<4x256xf32>
    %c16 = arith.constant 16 : index
    %c0_48 = arith.constant 0 : index
    %172 = vector.load %arg9[%c16, %c0_48] : memref<25x256xf32, #tpu.memory_space<vmem>>, vector<1x256xf32>
    %173 = vector.broadcast %172 : vector<1x256xf32> to vector<4x256xf32>
    %174 = arith.mulf %171, %173 : vector<4x256xf32>
    %175 = vector.extract_strided_slice %1 {offsets = [0, 16], sizes = [4, 240], strides = [1, 1]} : vector<4x256xf32> to vector<4x240xf32>
    %176 = vector.extract_strided_slice %1 {offsets = [0, 0], sizes = [4, 16], strides = [1, 1]} : vector<4x256xf32> to vector<4x16xf32>
    %177 = tpu.concatenate %175, %176 in 1 : vector<4x240xf32>, vector<4x16xf32> -> vector<4x256xf32>
    %c17 = arith.constant 17 : index
    %c0_49 = arith.constant 0 : index
    %178 = vector.load %arg9[%c17, %c0_49] : memref<25x256xf32, #tpu.memory_space<vmem>>, vector<1x256xf32>
    %179 = vector.broadcast %178 : vector<1x256xf32> to vector<4x256xf32>
    %180 = arith.mulf %177, %179 : vector<4x256xf32>
    %181 = vector.extract_strided_slice %1 {offsets = [0, 17], sizes = [4, 239], strides = [1, 1]} : vector<4x256xf32> to vector<4x239xf32>
    %182 = vector.extract_strided_slice %1 {offsets = [0, 0], sizes = [4, 17], strides = [1, 1]} : vector<4x256xf32> to vector<4x17xf32>
    %183 = tpu.concatenate %181, %182 in 1 : vector<4x239xf32>, vector<4x17xf32> -> vector<4x256xf32>
    %c18 = arith.constant 18 : index
    %c0_50 = arith.constant 0 : index
    %184 = vector.load %arg9[%c18, %c0_50] : memref<25x256xf32, #tpu.memory_space<vmem>>, vector<1x256xf32>
    %185 = vector.broadcast %184 : vector<1x256xf32> to vector<4x256xf32>
    %186 = arith.mulf %183, %185 : vector<4x256xf32>
    %187 = vector.extract_strided_slice %1 {offsets = [0, 18], sizes = [4, 238], strides = [1, 1]} : vector<4x256xf32> to vector<4x238xf32>
    %188 = vector.extract_strided_slice %1 {offsets = [0, 0], sizes = [4, 18], strides = [1, 1]} : vector<4x256xf32> to vector<4x18xf32>
    %189 = tpu.concatenate %187, %188 in 1 : vector<4x238xf32>, vector<4x18xf32> -> vector<4x256xf32>
    %c19 = arith.constant 19 : index
    %c0_51 = arith.constant 0 : index
    %190 = vector.load %arg9[%c19, %c0_51] : memref<25x256xf32, #tpu.memory_space<vmem>>, vector<1x256xf32>
    %191 = vector.broadcast %190 : vector<1x256xf32> to vector<4x256xf32>
    %192 = arith.mulf %189, %191 : vector<4x256xf32>
    %193 = vector.extract_strided_slice %1 {offsets = [0, 30], sizes = [4, 226], strides = [1, 1]} : vector<4x256xf32> to vector<4x226xf32>
    %194 = vector.extract_strided_slice %1 {offsets = [0, 0], sizes = [4, 30], strides = [1, 1]} : vector<4x256xf32> to vector<4x30xf32>
    %195 = tpu.concatenate %193, %194 in 1 : vector<4x226xf32>, vector<4x30xf32> -> vector<4x256xf32>
    %c20 = arith.constant 20 : index
    %c0_52 = arith.constant 0 : index
    %196 = vector.load %arg9[%c20, %c0_52] : memref<25x256xf32, #tpu.memory_space<vmem>>, vector<1x256xf32>
    %197 = vector.broadcast %196 : vector<1x256xf32> to vector<4x256xf32>
    %198 = arith.mulf %195, %197 : vector<4x256xf32>
    %199 = vector.extract_strided_slice %1 {offsets = [0, 31], sizes = [4, 225], strides = [1, 1]} : vector<4x256xf32> to vector<4x225xf32>
    %200 = vector.extract_strided_slice %1 {offsets = [0, 0], sizes = [4, 31], strides = [1, 1]} : vector<4x256xf32> to vector<4x31xf32>
    %201 = tpu.concatenate %199, %200 in 1 : vector<4x225xf32>, vector<4x31xf32> -> vector<4x256xf32>
    %c21 = arith.constant 21 : index
    %c0_53 = arith.constant 0 : index
    %202 = vector.load %arg9[%c21, %c0_53] : memref<25x256xf32, #tpu.memory_space<vmem>>, vector<1x256xf32>
    %203 = vector.broadcast %202 : vector<1x256xf32> to vector<4x256xf32>
    %204 = arith.mulf %201, %203 : vector<4x256xf32>
    %205 = vector.extract_strided_slice %1 {offsets = [0, 32], sizes = [4, 224], strides = [1, 1]} : vector<4x256xf32> to vector<4x224xf32>
    %206 = vector.extract_strided_slice %1 {offsets = [0, 0], sizes = [4, 32], strides = [1, 1]} : vector<4x256xf32> to vector<4x32xf32>
    %207 = tpu.concatenate %205, %206 in 1 : vector<4x224xf32>, vector<4x32xf32> -> vector<4x256xf32>
    %c22 = arith.constant 22 : index
    %c0_54 = arith.constant 0 : index
    %208 = vector.load %arg9[%c22, %c0_54] : memref<25x256xf32, #tpu.memory_space<vmem>>, vector<1x256xf32>
    %209 = vector.broadcast %208 : vector<1x256xf32> to vector<4x256xf32>
    %210 = arith.mulf %207, %209 : vector<4x256xf32>
    %211 = vector.extract_strided_slice %1 {offsets = [0, 33], sizes = [4, 223], strides = [1, 1]} : vector<4x256xf32> to vector<4x223xf32>
    %212 = vector.extract_strided_slice %1 {offsets = [0, 0], sizes = [4, 33], strides = [1, 1]} : vector<4x256xf32> to vector<4x33xf32>
    %213 = tpu.concatenate %211, %212 in 1 : vector<4x223xf32>, vector<4x33xf32> -> vector<4x256xf32>
    %c23 = arith.constant 23 : index
    %c0_55 = arith.constant 0 : index
    %214 = vector.load %arg9[%c23, %c0_55] : memref<25x256xf32, #tpu.memory_space<vmem>>, vector<1x256xf32>
    %215 = vector.broadcast %214 : vector<1x256xf32> to vector<4x256xf32>
    %216 = arith.mulf %213, %215 : vector<4x256xf32>
    %217 = vector.extract_strided_slice %1 {offsets = [0, 34], sizes = [4, 222], strides = [1, 1]} : vector<4x256xf32> to vector<4x222xf32>
    %218 = vector.extract_strided_slice %1 {offsets = [0, 0], sizes = [4, 34], strides = [1, 1]} : vector<4x256xf32> to vector<4x34xf32>
    %219 = tpu.concatenate %217, %218 in 1 : vector<4x222xf32>, vector<4x34xf32> -> vector<4x256xf32>
    %c24 = arith.constant 24 : index
    %c0_56 = arith.constant 0 : index
    %220 = vector.load %arg9[%c24, %c0_56] : memref<25x256xf32, #tpu.memory_space<vmem>>, vector<1x256xf32>
    %221 = vector.broadcast %220 : vector<1x256xf32> to vector<4x256xf32>
    %222 = arith.mulf %219, %221 : vector<4x256xf32>
    %223 = vector.shape_cast %81 : vector<4x256xf32> to vector<1x4x256xf32>
    %224 = vector.shape_cast %87 : vector<4x256xf32> to vector<1x4x256xf32>
    %225 = vector.shape_cast %93 : vector<4x256xf32> to vector<1x4x256xf32>
    %226 = vector.shape_cast %99 : vector<4x256xf32> to vector<1x4x256xf32>
    %227 = vector.shape_cast %105 : vector<4x256xf32> to vector<1x4x256xf32>
    %228 = vector.shape_cast %111 : vector<4x256xf32> to vector<1x4x256xf32>
    %229 = vector.shape_cast %117 : vector<4x256xf32> to vector<1x4x256xf32>
    %230 = vector.shape_cast %123 : vector<4x256xf32> to vector<1x4x256xf32>
    %231 = vector.shape_cast %129 : vector<4x256xf32> to vector<1x4x256xf32>
    %232 = vector.shape_cast %135 : vector<4x256xf32> to vector<1x4x256xf32>
    %233 = vector.shape_cast %141 : vector<4x256xf32> to vector<1x4x256xf32>
    %234 = vector.shape_cast %147 : vector<4x256xf32> to vector<1x4x256xf32>
    %235 = vector.shape_cast %150 : vector<4x256xf32> to vector<1x4x256xf32>
    %236 = vector.shape_cast %156 : vector<4x256xf32> to vector<1x4x256xf32>
    %237 = vector.shape_cast %162 : vector<4x256xf32> to vector<1x4x256xf32>
    %238 = vector.shape_cast %168 : vector<4x256xf32> to vector<1x4x256xf32>
    %239 = vector.shape_cast %174 : vector<4x256xf32> to vector<1x4x256xf32>
    %240 = vector.shape_cast %180 : vector<4x256xf32> to vector<1x4x256xf32>
    %241 = vector.shape_cast %186 : vector<4x256xf32> to vector<1x4x256xf32>
    %242 = vector.shape_cast %192 : vector<4x256xf32> to vector<1x4x256xf32>
    %243 = vector.shape_cast %198 : vector<4x256xf32> to vector<1x4x256xf32>
    %244 = vector.shape_cast %204 : vector<4x256xf32> to vector<1x4x256xf32>
    %245 = vector.shape_cast %210 : vector<4x256xf32> to vector<1x4x256xf32>
    %246 = vector.shape_cast %216 : vector<4x256xf32> to vector<1x4x256xf32>
    %247 = vector.shape_cast %222 : vector<4x256xf32> to vector<1x4x256xf32>
    %248 = tpu.concatenate %223, %224, %225, %226, %227, %228, %229, %230, %231, %232, %233, %234, %235, %236, %237, %238 in 0 : vector<1x4x256xf32>, vector<1x4x256xf32>, vector<1x4x256xf32>, vector<1x4x256xf32>, vector<1x4x256xf32>, vector<1x4x256xf32>, vector<1x4x256xf32>, vector<1x4x256xf32>, vector<1x4x256xf32>, vector<1x4x256xf32>, vector<1x4x256xf32>, vector<1x4x256xf32>, vector<1x4x256xf32>, vector<1x4x256xf32>, vector<1x4x256xf32>, vector<1x4x256xf32> -> vector<16x4x256xf32>
    %249 = tpu.concatenate %239, %240, %241, %242, %243, %244, %245, %246, %247 in 0 : vector<1x4x256xf32>, vector<1x4x256xf32>, vector<1x4x256xf32>, vector<1x4x256xf32>, vector<1x4x256xf32>, vector<1x4x256xf32>, vector<1x4x256xf32>, vector<1x4x256xf32>, vector<1x4x256xf32> -> vector<9x4x256xf32>
    %250 = tpu.concatenate %248, %249 in 0 : vector<16x4x256xf32>, vector<9x4x256xf32> -> vector<25x4x256xf32>
    %251 = vector.extract_strided_slice %75 {offsets = [0, 0, 0], sizes = [1, 25, 256], strides = [1, 1, 1]} : vector<4x32x256xf32> to vector<1x25x256xf32>
    %252 = vector.shape_cast %251 : vector<1x25x256xf32> to vector<25x256xf32>
    %253 = vector.shape_cast %252 : vector<25x256xf32> to vector<25x1x256xf32>
    %254 = vector.broadcast %253 : vector<25x1x256xf32> to vector<25x4x256xf32>
    %255 = arith.mulf %254, %250 : vector<25x4x256xf32>
    %cst_57 = arith.constant dense<0.000000e+00> : vector<4x256xf32>
    %256 = vector.multi_reduction <add>, %255, %cst_57 [0] : vector<25x4x256xf32> to vector<4x256xf32>
    %c0_58 = arith.constant 0 : index
    %c0_59 = arith.constant 0 : index
    %257 = vector.load %arg6[%c0_58, %c0_59] : memref<4x4xf32, #tpu.memory_space<vmem>>, vector<4x4xf32>
    %cst_60 = arith.constant dense<0.000000e+00> : vector<4x256xf32>
    %258 = tpu.matmul %257, %256, %cst_60 {dimension_numbers = #tpu.dot_dimension_numbers<[1], [0], [0], [1], [0, 0, 1, 1], [], []>} : vector<4x4xf32>, vector<4x256xf32>, vector<4x256xf32> -> vector<4x256xf32>
    %c0_61 = arith.constant 0 : index
    %c0_62 = arith.constant 0 : index
    %259 = vector.load %arg7[%c0_61, %c0_62] : memref<4x1xf32, #tpu.memory_space<vmem>>, vector<4x1xf32>
    %260 = vector.broadcast %259 : vector<4x1xf32> to vector<4x256xf32>
    %261 = arith.addf %258, %260 : vector<4x256xf32>
    %c0_63 = arith.constant 0 : index
    %c0_64 = arith.constant 0 : index
    %c0_65 = arith.constant 0 : index
    %c0_66 = arith.constant 0 : index
    %262 = vector.load %arg10[%c0_63, %c0_64, %c0_65, %c0_66] : memref<1x4x4x256xf32, #tpu.memory_space<vmem>>, vector<1x1x4x256xf32>
    %263 = vector.shape_cast %262 : vector<1x1x4x256xf32> to vector<4x256xf32>
    %264 = vector.shape_cast %261 : vector<4x256xf32> to vector<1x1x4x256xf32>
    tpu.vector_store %arg10[%c0_63, %c0_64, %c0_65, %c0_66], %264 {strides = array<i32>} : memref<1x4x4x256xf32, #tpu.memory_space<vmem>>, vector<1x1x4x256xf32>,
    %265 = vector.extract_strided_slice %75 {offsets = [1, 0, 0], sizes = [1, 25, 256], strides = [1, 1, 1]} : vector<4x32x256xf32> to vector<1x25x256xf32>
    %266 = vector.shape_cast %265 : vector<1x25x256xf32> to vector<25x256xf32>
    %267 = vector.shape_cast %266 : vector<25x256xf32> to vector<25x1x256xf32>
    %268 = vector.broadcast %267 : vector<25x1x256xf32> to vector<25x4x256xf32>
    %269 = arith.mulf %268, %250 : vector<25x4x256xf32>
    %cst_67 = arith.constant dense<0.000000e+00> : vector<4x256xf32>
    %270 = vector.multi_reduction <add>, %269, %cst_67 [0] : vector<25x4x256xf32> to vector<4x256xf32>
    %c0_68 = arith.constant 0 : index
    %c0_69 = arith.constant 0 : index
    %271 = vector.load %arg6[%c0_68, %c0_69] : memref<4x4xf32, #tpu.memory_space<vmem>>, vector<4x4xf32>
    %cst_70 = arith.constant dense<0.000000e+00> : vector<4x256xf32>
    %272 = tpu.matmul %271, %270, %cst_70 {dimension_numbers = #tpu.dot_dimension_numbers<[1], [0], [0], [1], [0, 0, 1, 1], [], []>} : vector<4x4xf32>, vector<4x256xf32>, vector<4x256xf32> -> vector<4x256xf32>
    %c0_71 = arith.constant 0 : index
    %c0_72 = arith.constant 0 : index
    %273 = vector.load %arg7[%c0_71, %c0_72] : memref<4x1xf32, #tpu.memory_space<vmem>>, vector<4x1xf32>
    %274 = vector.broadcast %273 : vector<4x1xf32> to vector<4x256xf32>
    %275 = arith.addf %272, %274 : vector<4x256xf32>
    %c0_73 = arith.constant 0 : index
    %c1_74 = arith.constant 1 : index
    %c0_75 = arith.constant 0 : index
    %c0_76 = arith.constant 0 : index
    %276 = vector.load %arg10[%c0_73, %c1_74, %c0_75, %c0_76] : memref<1x4x4x256xf32, #tpu.memory_space<vmem>>, vector<1x1x4x256xf32>
    %277 = vector.shape_cast %276 : vector<1x1x4x256xf32> to vector<4x256xf32>
    %278 = vector.shape_cast %275 : vector<4x256xf32> to vector<1x1x4x256xf32>
    tpu.vector_store %arg10[%c0_73, %c1_74, %c0_75, %c0_76], %278 {strides = array<i32>} : memref<1x4x4x256xf32, #tpu.memory_space<vmem>>, vector<1x1x4x256xf32>,
    %279 = vector.extract_strided_slice %75 {offsets = [2, 0, 0], sizes = [1, 25, 256], strides = [1, 1, 1]} : vector<4x32x256xf32> to vector<1x25x256xf32>
    %280 = vector.shape_cast %279 : vector<1x25x256xf32> to vector<25x256xf32>
    %281 = vector.shape_cast %280 : vector<25x256xf32> to vector<25x1x256xf32>
    %282 = vector.broadcast %281 : vector<25x1x256xf32> to vector<25x4x256xf32>
    %283 = arith.mulf %282, %250 : vector<25x4x256xf32>
    %cst_77 = arith.constant dense<0.000000e+00> : vector<4x256xf32>
    %284 = vector.multi_reduction <add>, %283, %cst_77 [0] : vector<25x4x256xf32> to vector<4x256xf32>
    %c0_78 = arith.constant 0 : index
    %c0_79 = arith.constant 0 : index
    %285 = vector.load %arg6[%c0_78, %c0_79] : memref<4x4xf32, #tpu.memory_space<vmem>>, vector<4x4xf32>
    %cst_80 = arith.constant dense<0.000000e+00> : vector<4x256xf32>
    %286 = tpu.matmul %285, %284, %cst_80 {dimension_numbers = #tpu.dot_dimension_numbers<[1], [0], [0], [1], [0, 0, 1, 1], [], []>} : vector<4x4xf32>, vector<4x256xf32>, vector<4x256xf32> -> vector<4x256xf32>
    %c0_81 = arith.constant 0 : index
    %c0_82 = arith.constant 0 : index
    %287 = vector.load %arg7[%c0_81, %c0_82] : memref<4x1xf32, #tpu.memory_space<vmem>>, vector<4x1xf32>
    %288 = vector.broadcast %287 : vector<4x1xf32> to vector<4x256xf32>
    %289 = arith.addf %286, %288 : vector<4x256xf32>
    %c0_83 = arith.constant 0 : index
    %c2_84 = arith.constant 2 : index
    %c0_85 = arith.constant 0 : index
    %c0_86 = arith.constant 0 : index
    %290 = vector.load %arg10[%c0_83, %c2_84, %c0_85, %c0_86] : memref<1x4x4x256xf32, #tpu.memory_space<vmem>>, vector<1x1x4x256xf32>
    %291 = vector.shape_cast %290 : vector<1x1x4x256xf32> to vector<4x256xf32>
    %292 = vector.shape_cast %289 : vector<4x256xf32> to vector<1x1x4x256xf32>
    tpu.vector_store %arg10[%c0_83, %c2_84, %c0_85, %c0_86], %292 {strides = array<i32>} : memref<1x4x4x256xf32, #tpu.memory_space<vmem>>, vector<1x1x4x256xf32>,
    %293 = vector.extract_strided_slice %75 {offsets = [3, 0, 0], sizes = [1, 25, 256], strides = [1, 1, 1]} : vector<4x32x256xf32> to vector<1x25x256xf32>
    %294 = vector.shape_cast %293 : vector<1x25x256xf32> to vector<25x256xf32>
    %295 = vector.shape_cast %294 : vector<25x256xf32> to vector<25x1x256xf32>
    %296 = vector.broadcast %295 : vector<25x1x256xf32> to vector<25x4x256xf32>
    %297 = arith.mulf %296, %250 : vector<25x4x256xf32>
    %cst_87 = arith.constant dense<0.000000e+00> : vector<4x256xf32>
    %298 = vector.multi_reduction <add>, %297, %cst_87 [0] : vector<25x4x256xf32> to vector<4x256xf32>
    %c0_88 = arith.constant 0 : index
    %c0_89 = arith.constant 0 : index
    %299 = vector.load %arg6[%c0_88, %c0_89] : memref<4x4xf32, #tpu.memory_space<vmem>>, vector<4x4xf32>
    %cst_90 = arith.constant dense<0.000000e+00> : vector<4x256xf32>
    %300 = tpu.matmul %299, %298, %cst_90 {dimension_numbers = #tpu.dot_dimension_numbers<[1], [0], [0], [1], [0, 0, 1, 1], [], []>} : vector<4x4xf32>, vector<4x256xf32>, vector<4x256xf32> -> vector<4x256xf32>
    %c0_91 = arith.constant 0 : index
    %c0_92 = arith.constant 0 : index
    %301 = vector.load %arg7[%c0_91, %c0_92] : memref<4x1xf32, #tpu.memory_space<vmem>>, vector<4x1xf32>
    %302 = vector.broadcast %301 : vector<4x1xf32> to vector<4x256xf32>
    %303 = arith.addf %300, %302 : vector<4x256xf32>
    %c0_93 = arith.constant 0 : index
    %c3_94 = arith.constant 3 : index
    %c0_95 = arith.constant 0 : index
    %c0_96 = arith.constant 0 : index
    %304 = vector.load %arg10[%c0_93, %c3_94, %c0_95, %c0_96] : memref<1x4x4x256xf32, #tpu.memory_space<vmem>>, vector<1x1x4x256xf32>
    %305 = vector.shape_cast %304 : vector<1x1x4x256xf32> to vector<4x256xf32>
    %306 = vector.shape_cast %303 : vector<4x256xf32> to vector<1x1x4x256xf32>
    tpu.vector_store %arg10[%c0_93, %c3_94, %c0_95, %c0_96], %306 {strides = array<i32>} : memref<1x4x4x256xf32, #tpu.memory_space<vmem>>, vector<1x1x4x256xf32>,
    return
  }
  func.func @transform_0(%arg0: i32) -> (i32, i32, i32) {
    %c0_i32 = arith.constant 0 : i32
    %c0_i32_0 = arith.constant 0 : i32
    %c0_i32_1 = arith.constant 0 : i32
    return %arg0, %c0_i32, %c0_i32_0 : i32, i32, i32
  }
  func.func @transform_1(%arg0: i32) -> (i32, i32) {
    %c0_i32 = arith.constant 0 : i32
    %c0_i32_0 = arith.constant 0 : i32
    %c0_i32_1 = arith.constant 0 : i32
    return %c0_i32, %c0_i32_0 : i32, i32
  }
  func.func @transform_2(%arg0: i32) -> (i32, i32) {
    %c0_i32 = arith.constant 0 : i32
    %c0_i32_0 = arith.constant 0 : i32
    %c0_i32_1 = arith.constant 0 : i32
    return %c0_i32, %c0_i32_0 : i32, i32
  }
  func.func @transform_3(%arg0: i32) -> (i32, i32) {
    %c0_i32 = arith.constant 0 : i32
    %c0_i32_0 = arith.constant 0 : i32
    %c0_i32_1 = arith.constant 0 : i32
    return %c0_i32, %c0_i32_0 : i32, i32
  }
  func.func @transform_4(%arg0: i32) -> (i32, i32) {
    %c0_i32 = arith.constant 0 : i32
    %c0_i32_0 = arith.constant 0 : i32
    %c0_i32_1 = arith.constant 0 : i32
    return %c0_i32, %c0_i32_0 : i32, i32
  }
  func.func @transform_5(%arg0: i32) -> (i32, i32) {
    %c0_i32 = arith.constant 0 : i32
    %c0_i32_0 = arith.constant 0 : i32
    %c0_i32_1 = arith.constant 0 : i32
    return %c0_i32, %c0_i32_0 : i32, i32
  }
  func.func @transform_6(%arg0: i32) -> (i32, i32) {
    %c0_i32 = arith.constant 0 : i32
    %c0_i32_0 = arith.constant 0 : i32
    %c0_i32_1 = arith.constant 0 : i32
    return %c0_i32, %c0_i32_0 : i32, i32
  }
  func.func @transform_7(%arg0: i32) -> (i32, i32) {
    %c0_i32 = arith.constant 0 : i32
    %c0_i32_0 = arith.constant 0 : i32
    %c0_i32_1 = arith.constant 0 : i32
    return %c0_i32, %c0_i32_0 : i32, i32
  }
  func.func @transform_8(%arg0: i32) -> (i32, i32) {
    %c0_i32 = arith.constant 0 : i32
    %c0_i32_0 = arith.constant 0 : i32
    %c0_i32_1 = arith.constant 0 : i32
    return %c0_i32, %c0_i32_0 : i32, i32
  }
  func.func @transform_9(%arg0: i32) -> (i32, i32, i32, i32) {
    %c0_i32 = arith.constant 0 : i32
    %c0_i32_0 = arith.constant 0 : i32
    %c0_i32_1 = arith.constant 0 : i32
    %c0_i32_2 = arith.constant 0 : i32
    return %arg0, %c0_i32, %c0_i32_0, %c0_i32_1 : i32, i32, i32, i32
  }
}

</mosaic_0001>

<bundles_post_ra>
// kernel: tpu_custom_call.1
= control target key start
LH: loop header
LB: loop body
LE: loop exit
PB: predicated region body
PF: predicated region fallthrough
CT: control target
= control target key end

     0   :  { %14 = vsyncpa [#allocation3], 0  ;;  %s10640_s0 = inlined_call_operand.vmem [shape: f32[2,4,256], index: 0, kind: input, shape index: {}]   ;;  %s10641_s1 = inlined_call_operand.vmem [shape: f32[64,4], index: 1, kind: input, shape index: {}]   ;;  %s10642_s2 = inlined_call_operand.vmem [shape: f32[64,1], index: 2, kind: input, shape index: {}]   ;;  %s10643_s3 = inlined_call_operand.vmem [shape: bf16[128,576], index: 3, kind: input, shape index: {}]   ;;  %s10644_s4 = inlined_call_operand.vmem [shape: f32[128,1], index: 4, kind: input, shape index: {}]   ;;  %s10645_s5 = inlined_call_operand.vmem [shape: f32[4,4], index: 5, kind: input, shape index: {}]   ;;  %s10646_s6 = inlined_call_operand.vmem [shape: f32[4,1], index: 6, kind: input, shape index: {}]   ;;  %s10647_s7 = inlined_call_operand.vmem [shape: f32[9,256], index: 7, kind: input, shape index: {}]   ;;  %s10648_s8 = inlined_call_operand.vmem [shape: f32[25,256], index: 8, kind: input, shape index: {}]   ;;  %s10649_s9 = inlined_call_operand.hbm [shape: f32[2,4,4,256], index: 9, kind: output, shape index: {}]  }
   0x1   :  { %16 = vsyncpa [#allocation3 + $0x1], 0  ;;  %s6393_s30 = smov 0   ;;  %s6395_s10 = smov 0  }
   0x2   :  { %s6397_s11 = smov 0   ;;  %s6399_s12 = smov 0  }
   0x3 LB: > { %s6414_s13 = sadd.s32 4294967295, %s6311_s12   ;;  %s5793_s14 = sadd.s32 4294967294, %s6311_s12   ;;  %s6311_s12 = sphi %s6399_s12, %s11479_s12   ;;  %s6307_s11 = sphi %s6397_s11, %s11478_s11   ;;  %s6303_s10 = sphi %s6395_s10, %s11477_s10   ;;  %s6299_s30 = sphi %s6393_s30, %s11476_s30  }
   0x4   : > { %s6418_s15 = sadd.s32 1, %s6311_s12   ;;  %s223_s16 = sadd.s32 1, %s6307_s11 }
   0x5   : > { %s220_s17 = ssub.s32 %s6311_s12, %s6418_s15  ;;  %p233_p0 = scmp.ne.s32.totalorder %s6307_s11, %s6303_s10 }
   0x6   : > { %p221_p1 = scmp.eq.s32.totalorder %s220_s17, 0  ;;  %p234_p2 = scmp.eq.s32.totalorder %s6414_s13, 1 }
   0x7   : > { %p239_p3 = scmp.ne.s32.totalorder %s6303_s10, %s6299_s30  ;;  %p240_p4 = scmp.eq.s32.totalorder %s5793_s14, 1 }
   0x8   : > { %s6429_s18 = scalar_select %p221_p1, %s6307_s11, %s223_s16  }
   0x9   : > { %p6431_p5 = por %p234_p2, %p233_p0  ;;  %p6435_p6 = por %p240_p4, %p239_p3 }
   0xa   : > { %p5796_p7 = scmp.ge.s32.totalorder %s6311_s12, 1  ;;  %p290_p8 = scmp.lt.s32.totalorder %s6311_s12, 3 }
   0xc   : > { %p291_p9 = pnand %p5796_p7, %p290_p8 }
   0xe   : > { %294 = sbr.rel (%p291_p9) target bundleno = 1471 (0x5bf), region = 56 }
  0x15   : > { %p326_p10 = scmp.lt.s32.totalorder %s6414_s13, 1  ;;  %v10650_v0 = vmov 0.0   ;;  %v10652_v1 = vmov 0   ;;  %v341_v2 = vld [vmem:[%s10642_s2] sm:$0xff]  ;;  %v343_v3 = vld [vmem:[%s10642_s2 + $0x10] sm:$0xff]  ;;  %v342_v4 = vld [vmem:[%s10642_s2 + $0x8] sm:$0xff]  ;;  %v625_v20 = vlaneseq }
  0x16   : > { %485 = vmatprep.mubr.f32.mxu0 %v10650_v0  ;;  %6108 = vset.pattern.permute.xlu0 %v10652_v1  ;;  %v344_v5 = vld [vmem:[%s10642_s2 + $0x18] sm:$0xff]  ;;  %vm416_vm0 = vcmask 1043456   ;;  %v333_v7 = vld [vmem:[%s10641_s1] sm:$0xff]  ;;  %vm391_vm1 = vcmask 31744   ;;  %v346_v10 = vld [vmem:[%s10642_s2 + $0x28] sm:$0xff]  ;;  %s10679_s26 = smov 127  }
  0x17   : > { %s327_s21 = scalar_select %p326_p10, %s6414_s13, 1  ;;  %6109 = vset.pattern.permute.xlu1 %v10652_v1  ;;  %351 = vperm.xlu0 %6108, %v341_v2   ;;  %v345_v9 = vld [vmem:[%s10642_s2 + $0x20] sm:$0xff]  ;;  %v334_v11 = vld [vmem:[%s10641_s1 + $0x8] sm:$0xff]  ;;  %v347_v12 = vld [vmem:[%s10642_s2 + $0x30] sm:$0xff]  ;;  %v6520_v21 = vshrl.u32 %v625_v20, 7  ;;  %vm590_vm2 = vcmask 138240  }
  0x18   : > { %361 = vperm.xlu1 %6109, %v343_v3   ;;  %v348_v13 = vld [vmem:[%s10642_s2 + $0x38] sm:$0xff]  ;;  %v335_v14 = vld [vmem:[%s10641_s1 + $0x10] sm:$0xff]  ;;  %v337_v16 = vld [vmem:[%s10641_s1 + $0x20] sm:$0xff]  ;;  %s6316_s27 = smov 17   ;;  %s10677_s28 = smov 113   ;;  %vm1018_vm3 = vcmask 1039360  }
  0x19   : > { %s5910_s24 = sshll.u32 %s327_s21, 3  ;;  %v336_v15 = vld [vmem:[%s10641_s1 + $0x18] sm:$0xff]  ;;  %v338_v17 = vld [vmem:[%s10641_s1 + $0x28] sm:$0xff]  ;;  %v339_v18 = vld [vmem:[%s10641_s1 + $0x30] sm:$0xff]  ;;  %10899 = vst [vmem:[#allocation5_spill] sm:$0xff] %v6520_v21  ;;  %v6523_v24 = vsub.s32 1, %v6520_v21 }
  0x1a   : > { %s6455_s29 = scalar_lea.vmem %s10640_s0, %s5910_s24  ;;  %v340_v19 = vld [vmem:[%s10641_s1 + $0x38] sm:$0xff]  ;;  %v5813_v27 = vld [vmem:[%s10647_s7 + $0x4] ss:$8 sm:$0x3]  ;;  %v6531_v28 = vsub.s32 0, %v6520_v21  ;;  %s10675_s14 = smov 112  }
  0x1b   : > { %v332_v6 = vld [vmem:[%s6455_s29] sm:$0xff]  ;;  %356 = vperm.xlu0 %6108, %v342_v4   ;;  %10900 = vst [vmem:[#allocation6_spill] sm:$0xff] %v6523_v24  ;;  %v6540_v32 = vrot.slane %v5813_v27, %v6523_v24  ;;  %s6319_s16 = smov 16   ;;  %s6320_s17 = smov 15   ;;  %vm1120_vm4 = vcmask 924672   ;;  %vm1222_vm5 = vcmask 916480  }
  0x1c   : > { %v6467_v8 = vcombine.high %v332_v6, %v332_v6  ;;  %366 = vperm.xlu1 %6109, %v344_v5   ;;  %10901 = vst [vmem:[#allocation7_spill] sm:$0xff] %v6531_v28  ;;  %v6545_v36 = vrot.slane %v5813_v27, %v6531_v28  ;;  %s10683_s25 = smov 1   ;;  %s10681_s22 = smov 111   ;;  %vm691_vm6 = vcmask 130048   ;;  %vm793_vm7 = vcmask 121856  }
  0x1d   : > { %s6323_s23 = smov 34   ;;  %s6324_s24 = smov 33   ;;  %vm895_vm8 = vcmask 7168   ;;  %vm1324_vm9 = vcmask 908288   ;;  %vm1810_vm10 = vcmask 523264   ;;  %vm2459_vm11 = vcmask 277504  }
  0x1e   : > { %5800 = vmatprep.subr.msk.mxu0 %vm416_vm0, %v6467_v8  ;;  %s6337_s21 = smov 95   ;;  %vm2483_vm12 = vcmask 269312   ;;  %vm2508_vm13 = vcmask 261120   ;;  %vm2533_vm14 = vcmask 252928   ;;  %vm2558_vm15 = vcmask 244736  }
  0x1f   : > { %5801 = vmatpush1.msk.msra.mxu0 %vm416_vm0, %v332_v6  ;;  %371 = vperm.xlu0 %6108, %v345_v9  }
  0x20   : > { %5802 = vmatmul.mubr.msk.f32.vlgmr.msra.gmra.mrb[0].mxu0 %vm391_vm1, %v333_v7  ;;  %376 = vperm.xlu1 %6109, %v346_v10  }
  0x21   : > { %491 = vmatprep.mubr.f32.mxu0 %v10650_v0 }
  0x23   : > { %381 = vperm.xlu0 %6108, %v347_v12  }
  0x24   : > { %5803 = vmatmul.mubr.msk.f32.gmra.mrb[2].mxu0 %vm391_vm1, %v334_v11  ;;  %386 = vperm.xlu1 %6109, %v348_v13  }
  0x25   : > { %497 = vmatprep.mubr.f32.mxu0 %v10650_v0 }
  0x28   : > { %5804 = vmatmul.mubr.msk.f32.gmra.mrb[4].mxu0 %vm391_vm1, %v335_v14 }
  0x29   : > { %503 = vmatprep.mubr.f32.mxu0 %v10650_v0 }
  0x2c   : > { %5805 = vmatmul.mubr.msk.f32.gmra.mrb[6].mxu0 %vm391_vm1, %v336_v15 }
  0x2d   : > { %509 = vmatprep.mubr.f32.mxu0 %v10650_v0 }
  0x30   : > { %5806 = vmatmul.mubr.msk.f32.gmra.mrb[8].mxu0 %vm391_vm1, %v337_v16 }
  0x31   : > { %515 = vmatprep.mubr.f32.mxu0 %v10650_v0 }
  0x34   : > { %5807 = vmatmul.mubr.msk.f32.gmra.mrb[10].mxu0 %vm391_vm1, %v338_v17 }
  0x35   : > { %521 = vmatprep.mubr.f32.mxu0 %v10650_v0 }
  0x38   : > { %5808 = vmatmul.mubr.msk.f32.gmra.mrb[12].mxu0 %vm391_vm1, %v339_v18 }
  0x39   : > { %527 = vmatprep.mubr.f32.mxu0 %v10650_v0 }
  0x3c   : > { %5809 = vmatmul.mubr.msk.f32.gmra.mrb[14].mxu0 %vm391_vm1, %v340_v19 }
  0x96   : > { %v352_v22 = vpop.permute.xlu0 %351 }
  0x97   : > { %v362_v35 = vpop.permute.xlu1 %361 }
  0x9a   : > { %v357_v30 = vpop.permute.xlu0 %356 }
  0x9b   : > { %v367_v48 = vpop.permute.xlu1 %366 }
  0x9e   : > { %v372_v62 = vpop.permute.xlu0 %371 }
  0x9f   : > { %v377_v60 = vpop.permute.xlu1 %376 }
  0xa2   : > { %v382_v16 = vpop.permute.xlu0 %381 }
  0xa3   : > { %v387_v14 = vpop.permute.xlu1 %386 }
  0xf3   : > { %v487_v23 = vpop.f32.mrb[0].mxu0 }
  0xf4   : > { %v6525_v25 = vadd.f32 %v487_v23, %v352_v22  ;;  %v489_v26 = vpop.f32.mrb[1].mxu0 }
  0xf5   : > { %v6533_v29 = vadd.f32 %v489_v26, %v352_v22 }
  0xf6   : > { %986 = vrot.lane.b32.xlu0 %v6525_v25, %s10679_s26  ;;  %v970_v44 = vmul.f32 %v6545_v36, %v6525_v25 }
  0xf7   : > { %v493_v31 = vpop.f32.mrb[2].mxu0  ;;  %988 = vrot.lane.b32.xlu1 %v6533_v29, %s10679_s26  ;;  %v971_v40 = vmul.f32 %v6540_v32, %v6533_v29 }
  0xf8   : > { %v6542_v33 = vadd.f32 %v493_v31, %v357_v30  ;;  %v495_v34 = vpop.f32.mrb[3].mxu0 }
  0xf9   : > { %v6547_v37 = vadd.f32 %v495_v34, %v357_v30 }
  0xfa   : > { %574 = vrot.lane.b32.xlu0 %v6525_v25, %s6316_s27  ;;  %v972_v38 = vmul.f32 %v6545_v36, %v6542_v33 }
  0xfb   : > { %1090 = vrot.lane.b32.xlu1 %v6533_v29, %s10677_s28  ;;  %v499_v39 = vpop.f32.mrb[4].mxu0  ;;  %v973_v41 = vmul.f32 %v6540_v32, %v6547_v37 }
  0xfc   : > { %v6559_v42 = vadd.f32 %v499_v39, %v362_v35  ;;  %v501_v43 = vpop.f32.mrb[5].mxu0  ;;  %v6569_v47 = vpack.c.bf16 %v972_v38, %v970_v44 }
  0xfd   : > { %v6563_v45 = vpack.c.bf16 %v973_v41, %v971_v40  ;;  %v6565_v46 = vadd.f32 %v501_v43, %v362_v35 }
  0xfe   : > { %1088 = vrot.lane.b32.xlu0 %v6525_v25, %s10677_s28  ;;  %10903 = vst [vmem:[#allocation9_spill] sm:$0xff] %v6569_v47  ;;  %v974_v52 = vmul.f32 %v6545_v36, %v6559_v42 }
  0xff   : > { %10902 = vst [vmem:[#allocation8_spill] sm:$0xff] %v6563_v45  ;;  %1192 = vrot.lane.b32.xlu1 %v6533_v29, %s10675_s14  ;;  %5912 = vmatprep.subr.bf16.mxu1 %v6563_v45  ;;  %v505_v49 = vpop.f32.mrb[6].mxu0  ;;  %v975_v54 = vmul.f32 %v6540_v32, %v6565_v46 }
 0x100   : > { %5928 = vmatpush1.bf16.msra.mxu1 %v6569_v47  ;;  %v507_v50 = vpop.f32.mrb[7].mxu0  ;;  %v6575_v51 = vadd.f32 %v505_v49, %v367_v48 }
 0x101   : > { %v6579_v53 = vadd.f32 %v507_v50, %v367_v48 }
 0x102   : > { %675 = vrot.lane.b32.xlu0 %v6525_v25, %s6319_s16  ;;  %v976_v55 = vmul.f32 %v6545_v36, %v6575_v51 }
 0x103   : > { %v511_v56 = vpop.f32.mrb[8].mxu0  ;;  %576 = vrot.lane.b32.xlu1 %v6542_v33, %s6316_s27  ;;  %v977_v57 = vmul.f32 %v6540_v32, %v6579_v53 }
 0x104   : > { %v513_v58 = vpop.f32.mrb[9].mxu0  ;;  %v6591_v59 = vpack.c.bf16 %v976_v55, %v974_v52  ;;  %v6602_v3 = vadd.f32 %v511_v56, %v372_v62  ;;  %v623_v55 = vld [vmem:[%s10647_s7] ss:$8 sm:$0x3] }
 0x105   : > { %v6593_v61 = vpack.c.bf16 %v977_v57, %v975_v54  ;;  %v6597_v63 = vadd.f32 %v513_v58, %v372_v62  ;;  %v6787_v58 = vrot.slane %v623_v55, %v6531_v28 }
 0x106   : > { %10904 = vst [vmem:[#allocation10_spill] sm:$0xff] %v6591_v59  ;;  %1190 = vrot.lane.b32.xlu0 %v6525_v25, %s10675_s14  ;;  %v978_v13 = vmul.f32 %v6545_v36, %v6602_v3 }
 0x107   : > { %10905 = vst [vmem:[#allocation11_spill] sm:$0xff] %v6593_v61  ;;  %v517_v2 = vpop.f32.mrb[10].mxu0  ;;  %677 = vrot.lane.b32.xlu1 %v6542_v33, %s6319_s16  ;;  %5913 = vmatprep.subr.bf16.mxu1 %v6593_v61  ;;  %v979_v10 = vmul.f32 %v6540_v32, %v6597_v63 }
 0x108   : > { %v6604_v4 = vadd.f32 %v517_v2, %v377_v60  ;;  %v519_v5 = vpop.f32.mrb[11].mxu0  ;;  %5929 = vmatpush1.bf16.msra.mxu1 %v6591_v59 }
 0x109   : > { %v6607_v6 = vadd.f32 %v519_v5, %v377_v60  ;;  %v6790_v60 = vrot.slane %v623_v55, %v6523_v24 }
 0x10a   : > { %777 = vrot.lane.b32.xlu0 %v6525_v25, %s6320_s17  ;;  %v980_v7 = vmul.f32 %v6545_v36, %v6604_v4 }
 0x10b   : > { %v523_v9 = vpop.f32.mrb[12].mxu0  ;;  %779 = vrot.lane.b32.xlu1 %v6542_v33, %s6320_s17  ;;  %v981_v11 = vmul.f32 %v6540_v32, %v6607_v6 }
 0x10c   : > { %v525_v12 = vpop.f32.mrb[13].mxu0  ;;  %v6625_v17 = vpack.c.bf16 %v980_v7, %v978_v13  ;;  %v6632_v20 = vadd.f32 %v523_v9, %v382_v16 }
 0x10d   : > { %v6621_v15 = vpack.c.bf16 %v981_v11, %v979_v10  ;;  %v6627_v18 = vadd.f32 %v525_v12, %v382_v16  ;;  %v5814_v11 = vld [vmem:[%s10647_s7 + $0x5] ss:$8 sm:$0x3] }
 0x10e   : > { %542 = vrot.lane.b32.xlu0 %v6533_v29, %s6316_s27  ;;  %10907 = vst [vmem:[#allocation13_spill] sm:$0xff] %v6625_v17  ;;  %v982_v34 = vmul.f32 %v6545_v36, %v6632_v20 }
 0x10f   : > { %10906 = vst [vmem:[#allocation12_spill] sm:$0xff] %v6621_v15  ;;  %v529_v19 = vpop.f32.mrb[14].mxu0  ;;  %992 = vrot.lane.b32.xlu1 %v6547_v37, %s10679_s26  ;;  %5914 = vmatprep.subr.bf16.mxu1 %v6621_v15  ;;  %v983_v30 = vmul.f32 %v6540_v32, %v6627_v18 }
 0x110   : > { %v6634_v22 = vadd.f32 %v529_v19, %v387_v14  ;;  %v531_v23 = vpop.f32.mrb[15].mxu0  ;;  %5930 = vmatpush1.bf16.msra.mxu1 %v6625_v17 }
 0x111   : > { %v6637_v26 = vadd.f32 %v531_v23, %v387_v14 }
 0x112   : > { %651 = vrot.lane.b32.xlu0 %v6533_v29, %s6319_s16  ;;  %v984_v27 = vmul.f32 %v6545_v36, %v6634_v22 }
 0x113   : > { %544 = vrot.lane.b32.xlu1 %v6547_v37, %s6316_s27  ;;  %v985_v31 = vmul.f32 %v6540_v32, %v6637_v26 }
 0x114   : > { %v6655_v38 = vpack.c.bf16 %v984_v27, %v982_v34  ;;  %v6819_v34 = vrot.slane %v5814_v11, %v6523_v24 }
 0x115   : > { %v6651_v35 = vpack.c.bf16 %v985_v31, %v983_v30  ;;  %v6816_v31 = vrot.slane %v5814_v11, %v6531_v28 }
 0x116   : > { %753 = vrot.lane.b32.xlu0 %v6533_v29, %s6320_s17  ;;  %10909 = vst [vmem:[#allocation15_spill] sm:$0xff] %v6655_v38 }
 0x117   : > { %10908 = vst [vmem:[#allocation14_spill] sm:$0xff] %v6651_v35  ;;  %1094 = vrot.lane.b32.xlu1 %v6547_v37, %s10677_s28  ;;  %5915 = vmatprep.subr.bf16.mxu1 %v6651_v35 }
 0x118   : > { %5931 = vmatpush1.bf16.msra.mxu1 %v6655_v38 }
 0x11a   : > { %990 = vrot.lane.b32.xlu0 %v6542_v33, %s10679_s26 }
 0x11b   : > { %653 = vrot.lane.b32.xlu1 %v6547_v37, %s6319_s16 }
 0x11e   : > { %1092 = vrot.lane.b32.xlu0 %v6542_v33, %s10677_s28 }
 0x11f   : > { %1196 = vrot.lane.b32.xlu1 %v6547_v37, %s10675_s14 }
 0x122   : > { %1194 = vrot.lane.b32.xlu0 %v6542_v33, %s10675_s14 }
 0x123   : > { %755 = vrot.lane.b32.xlu1 %v6547_v37, %s6320_s17 }
 0x126   : > { %994 = vrot.lane.b32.xlu0 %v6559_v42, %s10679_s26 }
 0x127   : > { %996 = vrot.lane.b32.xlu1 %v6565_v46, %s10679_s26 }
 0x12a   : > { %578 = vrot.lane.b32.xlu0 %v6559_v42, %s6316_s27 }
 0x12b   : > { %1098 = vrot.lane.b32.xlu1 %v6565_v46, %s10677_s28 }
 0x12e   : > { %1096 = vrot.lane.b32.xlu0 %v6559_v42, %s10677_s28 }
 0x12f   : > { %1200 = vrot.lane.b32.xlu1 %v6565_v46, %s10675_s14 }
 0x132   : > { %679 = vrot.lane.b32.xlu0 %v6559_v42, %s6319_s16 }
 0x133   : > { %580 = vrot.lane.b32.xlu1 %v6575_v51, %s6316_s27 }
 0x136   : > { %1198 = vrot.lane.b32.xlu0 %v6559_v42, %s10675_s14 }
 0x137   : > { %681 = vrot.lane.b32.xlu1 %v6575_v51, %s6319_s16 }
 0x13a   : > { %781 = vrot.lane.b32.xlu0 %v6559_v42, %s6320_s17 }
 0x13b   : > { %783 = vrot.lane.b32.xlu1 %v6575_v51, %s6320_s17 }
 0x13e   : > { %546 = vrot.lane.b32.xlu0 %v6565_v46, %s6316_s27 }
 0x13f   : > { %1000 = vrot.lane.b32.xlu1 %v6579_v53, %s10679_s26 }
 0x142   : > { %655 = vrot.lane.b32.xlu0 %v6565_v46, %s6319_s16 }
 0x143   : > { %548 = vrot.lane.b32.xlu1 %v6579_v53, %s6316_s27 }
 0x146   : > { %757 = vrot.lane.b32.xlu0 %v6565_v46, %s6320_s17 }
 0x147   : > { %1102 = vrot.lane.b32.xlu1 %v6579_v53, %s10677_s28 }
 0x14a   : > { %998 = vrot.lane.b32.xlu0 %v6575_v51, %s10679_s26 }
 0x14b   : > { %657 = vrot.lane.b32.xlu1 %v6579_v53, %s6319_s16 }
 0x14e   : > { %1100 = vrot.lane.b32.xlu0 %v6575_v51, %s10677_s28 }
 0x14f   : > { %1204 = vrot.lane.b32.xlu1 %v6579_v53, %s10675_s14 }
 0x152   : > { %1202 = vrot.lane.b32.xlu0 %v6575_v51, %s10675_s14 }
 0x153   : > { %759 = vrot.lane.b32.xlu1 %v6579_v53, %s6320_s17 }
 0x156   : > { %1002 = vrot.lane.b32.xlu0 %v6602_v3, %s10679_s26 }
 0x157   : > { %1004 = vrot.lane.b32.xlu1 %v6597_v63, %s10679_s26 }
 0x15a   : > { %582 = vrot.lane.b32.xlu0 %v6602_v3, %s6316_s27 }
 0x15b   : > { %1106 = vrot.lane.b32.xlu1 %v6597_v63, %s10677_s28 }
 0x15e   : > { %1104 = vrot.lane.b32.xlu0 %v6602_v3, %s10677_s28 }
 0x15f   : > { %1208 = vrot.lane.b32.xlu1 %v6597_v63, %s10675_s14 }
 0x162   : > { %683 = vrot.lane.b32.xlu0 %v6602_v3, %s6319_s16 }
 0x163   : > { %584 = vrot.lane.b32.xlu1 %v6604_v4, %s6316_s27 }
 0x166   : > { %1206 = vrot.lane.b32.xlu0 %v6602_v3, %s10675_s14 }
 0x167   : > { %685 = vrot.lane.b32.xlu1 %v6604_v4, %s6319_s16 }
 0x168   : > { %v987_v32 = vpop.permute.xlu0 %986 }
 0x169   : > { %v989_v36 = vpop.permute.xlu1 %988 }
 0x16a   : > { %785 = vrot.lane.b32.xlu0 %v6602_v3, %s6320_s17 }
 0x16b   : > { %787 = vrot.lane.b32.xlu1 %v6604_v4, %s6320_s17 }
 0x16c   : > { %v575_v39 = vpop.permute.xlu0 %574 }
 0x16d   : > { %v6745_v40 = vpop.permute.xlu1 %1090 }
 0x16e   : > { %550 = vrot.lane.b32.xlu0 %v6597_v63, %s6316_s27 }
 0x16f   : > { %1008 = vrot.lane.b32.xlu1 %v6607_v6, %s10679_s26 }
 0x170   : > { %v6751_v41 = vpop.permute.xlu0 %1088 }
 0x171   : > { %v6753_v43 = vpop.permute.xlu1 %1192 }
 0x172   : > { %659 = vrot.lane.b32.xlu0 %v6597_v63, %s6319_s16 }
 0x173   : > { %552 = vrot.lane.b32.xlu1 %v6607_v6, %s6316_s27 }
 0x174   : > { %v6759_v44 = vpop.permute.xlu0 %675 }
 0x175   : > { %v577_v48 = vpop.permute.xlu1 %576 }
 0x176   : > { %761 = vrot.lane.b32.xlu0 %v6597_v63, %s6320_s17 }
 0x177   : > { %1110 = vrot.lane.b32.xlu1 %v6607_v6, %s10677_s28 }
 0x178   : > { %v6765_v49 = vpop.permute.xlu0 %1190 }
 0x179   : > { %v6767_v50 = vpop.permute.xlu1 %677 }
 0x17a   : > { %1006 = vrot.lane.b32.xlu0 %v6604_v4, %s10679_s26 }
 0x17b   : > { %661 = vrot.lane.b32.xlu1 %v6607_v6, %s6319_s16 }
 0x17c   : > { %v6773_v52 = vpop.permute.xlu0 %777 }
 0x17d   : > { %v6775_v54 = vpop.permute.xlu1 %779 }
 0x17e   : > { %1108 = vrot.lane.b32.xlu0 %v6604_v4, %s10677_s28 }
 0x17f   : > { %1212 = vrot.lane.b32.xlu1 %v6607_v6, %s10675_s14 }
 0x180   : > { %v543_v56 = vpop.permute.xlu0 %542 }
 0x181   : > { %v993_v57 = vpop.permute.xlu1 %992  ;;  %v591_v62 = vsel %vm590_vm2, %v575_v39, %v543_v56  ;;  %v615_v2 = vsel %vm590_vm2, %v543_v56, %v575_v39  ;;  %v1019_v39 = vsel %vm1018_vm3, %v987_v32, %v989_v36 }
 0x182   : > { %1210 = vrot.lane.b32.xlu0 %v6604_v4, %s10675_s14  ;;  %v635_v12 = vmul.f32 %v6787_v58, %v615_v2  ;;  %v636_v13 = vmul.f32 %v6790_v60, %v591_v62 }
 0x183   : > { %763 = vrot.lane.b32.xlu1 %v6607_v6, %s6320_s17 }
 0x184   : > { %v6796_v5 = vpop.permute.xlu0 %651 }
 0x185   : > { %v545_v7 = vpop.permute.xlu1 %544 }
 0x186   : > { %v592_v9 = vsel %vm590_vm2, %v577_v48, %v545_v7  ;;  %v616_v10 = vsel %vm590_vm2, %v545_v7, %v577_v48  ;;  %1010 = vrot.lane.b32.xlu0 %v6632_v20, %s10679_s26  ;;  %v1051_v48 = vsel %vm1018_vm3, %v989_v36, %v987_v32  ;;  %v1072_v7 = vmul.f32 %v6816_v31, %v1019_v39 }
 0x187   : > { %v637_v14 = vmul.f32 %v6787_v58, %v616_v10  ;;  %v638_v16 = vmul.f32 %v6790_v60, %v592_v9  ;;  %1012 = vrot.lane.b32.xlu1 %v6627_v18, %s10679_s26  ;;  %v1073_v9 = vmul.f32 %v6819_v34, %v1051_v48 }
 0x188   : > { %v6811_v19 = vpop.permute.xlu0 %753 }
 0x189   : > { %v1394_v23 = vpack.c.bf16 %v637_v14, %v635_v12  ;;  %v6813_v27 = vpop.permute.xlu1 %1094  ;;  %v1395_v30 = vpack.c.bf16 %v638_v16, %v636_v13 }
 0x18a   : > { %586 = vrot.lane.b32.xlu0 %v6632_v20, %s6316_s27 }
 0x18b   : > { %1114 = vrot.lane.b32.xlu1 %v6627_v18, %s10677_s28  ;;  %1835 = vmatprep.subr.bf16.mxu0 %v1395_v30 }
 0x18c   : > { %1836 = vmatpush1.bf16.msra.mxu0 %v1394_v23  ;;  %v991_v55 = vpop.permute.xlu0 %990 }
 0x18d   : > { %v1020_v56 = vsel %vm1018_vm3, %v991_v55, %v993_v57  ;;  %v1052_v62 = vsel %vm1018_vm3, %v993_v57, %v991_v55  ;;  %v6829_v2 = vpop.permute.xlu1 %653 }
 0x18e   : > { %v1074_v10 = vmul.f32 %v6816_v31, %v1020_v56  ;;  %v1075_v32 = vmul.f32 %v6819_v34, %v1052_v62  ;;  %1112 = vrot.lane.b32.xlu0 %v6632_v20, %s10677_s28 }
 0x18f   : > { %1216 = vrot.lane.b32.xlu1 %v6627_v18, %s10675_s14 }
 0x190   : > { %v6839_v36 = vpop.permute.xlu0 %1092  ;;  %v6841_v11 = vpack.c.bf16 %v1075_v32, %v1073_v9  ;;  %v6843_v57 = vpack.c.bf16 %v1074_v10, %v1072_v7 }
 0x191   : > { %v6845_v12 = vpop.permute.xlu1 %1196 }
 0x192   : > { %10910 = vst [vmem:[#allocation16_spill] sm:$0xff] %v6841_v11  ;;  %10911 = vst [vmem:[#allocation17_spill] sm:$0xff] %v6843_v57  ;;  %687 = vrot.lane.b32.xlu0 %v6632_v20, %s6319_s16  ;;  %5916 = vmatprep.subr.bf16.mxu1 %v6841_v11 }
 0x193   : > { %588 = vrot.lane.b32.xlu1 %v6634_v22, %s6316_s27  ;;  %5932 = vmatpush1.bf16.msra.mxu1 %v6843_v57 }
 0x194   : > { %v6853_v13 = vpop.permute.xlu0 %1194 }
 0x195   : > { %v6855_v14 = vpop.permute.xlu1 %755 }
 0x196   : > { %1214 = vrot.lane.b32.xlu0 %v6632_v20, %s10675_s14 }
 0x197   : > { %689 = vrot.lane.b32.xlu1 %v6634_v22, %s6319_s16 }
 0x198   : > { %v995_v16 = vpop.permute.xlu0 %994 }
 0x199   : > { %v997_v23 = vpop.permute.xlu1 %996 }
 0x19a   : > { %554 = vrot.lane.b32.xlu0 %v6627_v18, %s6316_s27 }
 0x19b   : > { %791 = vrot.lane.b32.xlu1 %v6634_v22, %s6320_s17 }
 0x19c   : > { %v579_v30 = vpop.permute.xlu0 %578 }
 0x19d   : > { %v6865_v39 = vpop.permute.xlu1 %1098 }
 0x19e   : > { %663 = vrot.lane.b32.xlu0 %v6627_v18, %s6319_s16 }
 0x19f   : > { %1016 = vrot.lane.b32.xlu1 %v6637_v26, %s10679_s26 }
 0x1a0   : > { %v6871_v48 = vpop.permute.xlu0 %1096 }
 0x1a1   : > { %v6873_v55 = vpop.permute.xlu1 %1200 }
 0x1a2   : > { %1014 = vrot.lane.b32.xlu0 %v6634_v22, %s10679_s26  ;;  %s6325_s26 = smov 32  }
 0x1a3   : > { %556 = vrot.lane.b32.xlu1 %v6637_v26, %s6316_s27 }
 0x1a4   : > { %v6879_v56 = vpop.permute.xlu0 %679 }
 0x1a5   : > { %v581_v62 = vpop.permute.xlu1 %580 }
 0x1a6   : > { %765 = vrot.lane.b32.xlu0 %v6627_v18, %s6320_s17 }
 0x1a7   : > { %857 = vrot.lane.b32.xlu1 %v6547_v37, %s10683_s25 }
 0x1a8   : > { %v6885_v7 = vpop.permute.xlu0 %1198 }
 0x1a9   : > { %v6887_v9 = vpop.permute.xlu1 %681 }
 0x1aa   : > { %789 = vrot.lane.b32.xlu0 %v6632_v20, %s6320_s17 }
 0x1ab   : > { %881 = vrot.lane.b32.xlu1 %v6542_v33, %s10683_s25 }
 0x1ac   : > { %v6893_v10 = vpop.permute.xlu0 %781 }
 0x1ad   : > { %v6895_v32 = vpop.permute.xlu1 %783 }
 0x1ae   : > { %10912 = vst [vmem:[#allocation18_spill] sm:$0xff] %v6895_v32  ;;  %855 = vrot.lane.b32.xlu0 %v6533_v29, %s10683_s25 }
 0x1af   : > { %1118 = vrot.lane.b32.xlu1 %v6637_v26, %s10677_s28 }
 0x1b0   : > { %v547_v0 = vpop.permute.xlu0 %546 }
 0x1b1   : > { %v1001_v1 = vpop.permute.xlu1 %1000  ;;  %v593_v21 = vsel %vm590_vm2, %v579_v30, %v547_v0  ;;  %v617_v57 = vsel %vm590_vm2, %v547_v0, %v579_v30 }
 0x1b2   : > { %1116 = vrot.lane.b32.xlu0 %v6634_v22, %s10677_s28  ;;  %v639_v15 = vmul.f32 %v6787_v58, %v617_v57  ;;  %v640_v59 = vmul.f32 %v6790_v60, %v593_v21  ;;  %v1021_v57 = vsel %vm1018_vm3, %v995_v16, %v997_v23  ;;  %v1053_v21 = vsel %vm1018_vm3, %v997_v23, %v995_v16  ;;  %v6113_v23 = vld [vmem:[%s10643_s3 + $0x5c] ss:$20 sps:$4 sm:$0xff]   ;;  %s6326_s28 = smov 31  }
 0x1b3   : > { %665 = vrot.lane.b32.xlu1 %v6637_v26, %s6319_s16  ;;  %2000 = vmatprep.mubr.bf16.mxu1 %v6113_v23 }
 0x1b4   : > { %v6907_v11 = vpop.permute.xlu0 %655 }
 0x1b5   : > { %v549_v38 = vpop.permute.xlu1 %548 }
 0x1b6   : > { %v594_v35 = vsel %vm590_vm2, %v581_v62, %v549_v38  ;;  %v618_v17 = vsel %vm590_vm2, %v549_v38, %v581_v62  ;;  %1218 = vrot.lane.b32.xlu0 %v6634_v22, %s10675_s14 }
 0x1b7   : > { %v641_v61 = vmul.f32 %v6787_v58, %v618_v17  ;;  %v642_v47 = vmul.f32 %v6790_v60, %v594_v35  ;;  %861 = vrot.lane.b32.xlu1 %v6579_v53, %s10683_s25 }
 0x1b8   : > { %v6919_v0 = vpop.permute.xlu0 %757 }
 0x1b9   : > { %v1396_v30 = vpack.c.bf16 %v641_v61, %v639_v15  ;;  %v6921_v45 = vpop.permute.xlu1 %1102  ;;  %v1397_v38 = vpack.c.bf16 %v642_v47, %v640_v59  ;;  %v1076_v47 = vmul.f32 %v6816_v31, %v1021_v57  ;;  %v1077_v59 = vmul.f32 %v6819_v34, %v1053_v21 }
 0x1ba   : > { %879 = vrot.lane.b32.xlu0 %v6525_v25, %s10683_s25 }
 0x1bb   : > { %885 = vrot.lane.b32.xlu1 %v6575_v51, %s10683_s25  ;;  %1837 = vmatprep.subr.bf16.mxu0 %v1397_v38 }
 0x1bc   : > { %1838 = vmatpush1.bf16.msra.mxu0 %v1396_v30  ;;  %v999_v17 = vpop.permute.xlu0 %998 }
 0x1bd   : > { %v1022_v35 = vsel %vm1018_vm3, %v999_v17, %v1001_v1  ;;  %v1054_v61 = vsel %vm1018_vm3, %v1001_v1, %v999_v17  ;;  %v6931_v15 = vpop.permute.xlu1 %657 }
 0x1be   : > { %v1078_v62 = vmul.f32 %v6816_v31, %v1022_v35  ;;  %v1079_v16 = vmul.f32 %v6819_v34, %v1054_v61  ;;  %859 = vrot.lane.b32.xlu0 %v6565_v46, %s10683_s25 }
 0x1bf   : > { %1220 = vrot.lane.b32.xlu1 %v6637_v26, %s10675_s14  ;;  %s6331_s14 = smov 126  }
 0x1c0   : > { %v6944_v1 = vpop.permute.xlu0 %1100  ;;  %v6946_v30 = vpack.c.bf16 %v1079_v16, %v1077_v59  ;;  %v6948_v38 = vpack.c.bf16 %v1078_v62, %v1076_v47  ;;  %v6119_v62 = vld [vmem:[%s10643_s3 + $0x4] ss:$20 sps:$4 sm:$0xff]  }
 0x1c1   : > { %v6950_v57 = vpop.permute.xlu1 %1204  ;;  %1867 = vmatprep.mubr.bf16.mxu0 %v6119_v62 }
 0x1c2   : > { %10913 = vst [vmem:[#allocation19_spill] sm:$0xff] %v6946_v30  ;;  %10914 = vst [vmem:[#allocation20_spill] sm:$0xff] %v6948_v38  ;;  %883 = vrot.lane.b32.xlu0 %v6559_v42, %s10683_s25  ;;  %5917 = vmatprep.subr.bf16.mxu1 %v6946_v30 }
 0x1c3   : > { %10915 = vst [vmem:[#allocation21_spill] sm:$0xff] %v6950_v57  ;;  %767 = vrot.lane.b32.xlu1 %v6637_v26, %s6320_s17  ;;  %5933 = vmatpush1.bf16.msra.mxu1 %v6948_v38 }
 0x1c4   : > { %v6958_v21 = vpop.permute.xlu0 %1202 }
 0x1c5   : > { %10916 = vst [vmem:[#allocation22_spill] sm:$0xff] %v6958_v21  ;;  %v6960_v17 = vpop.permute.xlu1 %759 }
 0x1c6   : > { %10917 = vst [vmem:[#allocation23_spill] sm:$0xff] %v6960_v17  ;;  %863 = vrot.lane.b32.xlu0 %v6597_v63, %s10683_s25 }
 0x1c7   : > { %865 = vrot.lane.b32.xlu1 %v6607_v6, %s10683_s25 }
 0x1c8   : > { %v1003_v35 = vpop.permute.xlu0 %1002 }
 0x1c9   : > { %v1005_v61 = vpop.permute.xlu1 %1004 }
 0x1ca   : > { %887 = vrot.lane.b32.xlu0 %v6602_v3, %s10683_s25 }
 0x1cb   : > { %889 = vrot.lane.b32.xlu1 %v6604_v4, %s10683_s25 }
 0x1cc   : > { %v583_v47 = vpop.permute.xlu0 %582 }
 0x1cd   : > { %v6970_v59 = vpop.permute.xlu1 %1106 }
 0x1ce   : > { %867 = vrot.lane.b32.xlu0 %v6627_v18, %s10683_s25 }
 0x1cf   : > { %893 = vrot.lane.b32.xlu1 %v6634_v22, %s10683_s25 }
 0x1d0   : > { %v6979_v16 = vpop.permute.xlu0 %1104 }
 0x1d1   : > { %10918 = vst [vmem:[#allocation24_spill] sm:$0xff] %v6979_v16  ;;  %v6981_v23 = vpop.permute.xlu1 %1208 }
 0x1d2   : > { %10919 = vst [vmem:[#allocation25_spill] sm:$0xff] %v6981_v23  ;;  %891 = vrot.lane.b32.xlu0 %v6632_v20, %s10683_s25 }
 0x1d3   : > { %869 = vrot.lane.b32.xlu1 %v6637_v26, %s10683_s25  ;;  %s6327_s25 = smov 30  }
 0x1d4   : > { %v6987_v38 = vpop.permute.xlu0 %683 }
 0x1d5   : > { %10920 = vst [vmem:[#allocation26_spill] sm:$0xff] %v6987_v38  ;;  %v585_v30 = vpop.permute.xlu1 %584 }
 0x1d6   : > { %1292 = vrot.lane.b32.xlu0 %v6525_v25, %s10681_s22 }
 0x1d7   : > { %1294 = vrot.lane.b32.xlu1 %v6533_v29, %s10681_s22 }
 0x1d8   : > { %v6993_v17 = vpop.permute.xlu0 %1206 }
 0x1d9   : > { %10921 = vst [vmem:[#allocation27_spill] sm:$0xff] %v6993_v17  ;;  %v6995_v62 = vpop.permute.xlu1 %685 }
 0x1da   : > { %1296 = vrot.lane.b32.xlu0 %v6542_v33, %s10681_s22 }
 0x1db   : > { %1298 = vrot.lane.b32.xlu1 %v6547_v37, %s10681_s22 }
 0x1dc   : > { %v7001_v23 = vpop.permute.xlu0 %785 }
 0x1dd   : > { %10922 = vst [vmem:[#allocation28_spill] sm:$0xff] %v7001_v23  ;;  %v7003_v32 = vpop.permute.xlu1 %787 }
 0x1de   : > { %10923 = vst [vmem:[#allocation29_spill] sm:$0xff] %v7003_v32  ;;  %1300 = vrot.lane.b32.xlu0 %v6559_v42, %s10681_s22 }
 0x1df   : > { %1302 = vrot.lane.b32.xlu1 %v6565_v46, %s10681_s22 }
 0x1e0   : > { %v551_v25 = vpop.permute.xlu0 %550 }
 0x1e1   : > { %v1009_v29 = vpop.permute.xlu1 %1008  ;;  %v595_v33 = vsel %vm590_vm2, %v583_v47, %v551_v25  ;;  %v619_v37 = vsel %vm590_vm2, %v551_v25, %v583_v47 }
 0x1e2   : > { %1304 = vrot.lane.b32.xlu0 %v6575_v51, %s10681_s22  ;;  %v643_v46 = vmul.f32 %v6787_v58, %v619_v37  ;;  %v644_v51 = vmul.f32 %v6790_v60, %v595_v33 }
 0x1e3   : > { %1306 = vrot.lane.b32.xlu1 %v6579_v53, %s10681_s22 }
 0x1e4   : > { %v7015_v23 = vpop.permute.xlu0 %659 }
 0x1e5   : > { %10924 = vst [vmem:[#allocation30_spill] sm:$0xff] %v7015_v23  ;;  %v553_v17 = vpop.permute.xlu1 %552 }
 0x1e6   : > { %v596_v42 = vsel %vm590_vm2, %v585_v30, %v553_v17  ;;  %v620_v32 = vsel %vm590_vm2, %v553_v17, %v585_v30  ;;  %1308 = vrot.lane.b32.xlu0 %v6602_v3, %s10681_s22  ;;  %v1023_v3 = vsel %vm1018_vm3, %v1003_v35, %v1005_v61  ;;  %v1055_v17 = vsel %vm1018_vm3, %v1005_v61, %v1003_v35 }
 0x1e7   : > { %v645_v53 = vmul.f32 %v6787_v58, %v620_v32  ;;  %v646_v38 = vmul.f32 %v6790_v60, %v596_v42  ;;  %1310 = vrot.lane.b32.xlu1 %v6597_v63, %s10681_s22 }
 0x1e8   : > { %v7027_v47 = vpop.permute.xlu0 %761 }
 0x1e9   : > { %10925 = vst [vmem:[#allocation31_spill] sm:$0xff] %v7027_v47  ;;  %v1398_v25 = vpack.c.bf16 %v645_v53, %v643_v46  ;;  %v7029_v23 = vpop.permute.xlu1 %1110  ;;  %v1399_v30 = vpack.c.bf16 %v646_v38, %v644_v51  ;;  %v1080_v38 = vmul.f32 %v6816_v31, %v1023_v3  ;;  %v1515_v51 = vld [vmem:[%s10644_s4 + $0x8] sm:$0xff]  ;;  %v1518_v3 = vld [vmem:[%s10644_s4 + $0x20] sm:$0xff] }
 0x1ea   : > { %1312 = vrot.lane.b32.xlu0 %v6604_v4, %s10681_s22  ;;  %v1081_v4 = vmul.f32 %v6819_v34, %v1055_v17 }
 0x1eb   : > { %1314 = vrot.lane.b32.xlu1 %v6607_v6, %s10681_s22  ;;  %1839 = vmatprep.subr.bf16.mxu0 %v1399_v30 }
 0x1ec   : > { %1840 = vmatpush1.bf16.msra.mxu0 %v1398_v25  ;;  %v1007_v32 = vpop.permute.xlu0 %1006  ;;  %v1517_v25 = vld [vmem:[%s10644_s4 + $0x18] sm:$0xff] }
 0x1ed   : > { %v1024_v63 = vsel %vm1018_vm3, %v1007_v32, %v1009_v29  ;;  %v1056_v33 = vsel %vm1018_vm3, %v1009_v29, %v1007_v32  ;;  %v7039_v37 = vpop.permute.xlu1 %661  ;;  %v1519_v32 = vld [vmem:[%s10644_s4 + $0x28] sm:$0xff] }
 0x1ee   : > { %v1082_v42 = vmul.f32 %v6816_v31, %v1024_v63  ;;  %v1083_v35 = vmul.f32 %v6819_v34, %v1056_v33  ;;  %1316 = vrot.lane.b32.xlu0 %v6632_v20, %s10681_s22  ;;  %v5815_v33 = vld [vmem:[%s10647_s7 + $0x6] ss:$8 sm:$0x3] }
 0x1ef   : > { %1318 = vrot.lane.b32.xlu1 %v6627_v18, %s10681_s22  ;;  %v1514_v18 = vld [vmem:[%s10644_s4] sm:$0xff] }
 0x1f0   : > { %v7049_v6 = vpop.permute.xlu0 %1108  ;;  %v7051_v61 = vpack.c.bf16 %v1083_v35, %v1081_v4  ;;  %v7053_v29 = vpack.c.bf16 %v1082_v42, %v1080_v38  ;;  %v1520_v38 = vld [vmem:[%s10644_s4 + $0x30] sm:$0xff]  ;;  %v1521_v42 = vld [vmem:[%s10644_s4 + $0x38] sm:$0xff]  ;;  %v5816_v35 = vld [vmem:[%s10647_s7 + $0x7] ss:$8 sm:$0x3] }
 0x1f1   : > { %v7055_v46 = vpop.permute.xlu1 %1212 }
 0x1f2   : > { %10926 = vst [vmem:[#allocation32_spill] sm:$0xff] %v7051_v61  ;;  %10927 = vst [vmem:[#allocation33_spill] sm:$0xff] %v7053_v29  ;;  %1320 = vrot.lane.b32.xlu0 %v6634_v22, %s10681_s22  ;;  %5918 = vmatprep.subr.bf16.mxu1 %v7051_v61  ;;  %v1516_v22 = vld [vmem:[%s10644_s4 + $0x10] sm:$0xff]  ;;  %v7128_v61 = vrot.slane %v5816_v35, %v6531_v28 }
 0x1f3   : > { %10928 = vst [vmem:[#allocation34_spill] sm:$0xff] %v7055_v46  ;;  %1322 = vrot.lane.b32.xlu1 %v6637_v26, %s10681_s22  ;;  %5934 = vmatpush1.bf16.msra.mxu1 %v7053_v29  ;;  %v7125_v29 = vrot.slane %v5815_v33, %v6523_v24  ;;  %s6328_s22 = smov 18  }
 0x1f4   : > { %v7066_v20 = vpop.permute.xlu0 %1210 }
 0x1f5   : > { %10929 = vst [vmem:[#allocation35_spill] sm:$0xff] %v7066_v20  ;;  %v7071_v53 = vpop.permute.xlu1 %763 }
 0x1f6   : > { %10930 = vst [vmem:[#allocation36_spill] sm:$0xff] %v7071_v53  ;;  %1532 = vperm.xlu0 %6108, %v1514_v18  }
 0x1f7   : > { %1537 = vperm.xlu1 %6109, %v1515_v51   ;;  %v7110_v51 = vrot.slane %v5815_v33, %v6531_v28 }
 0x1f8   : > { %v7076_v26 = vpop.permute.xlu0 %1010 }
 0x1f9   : > { %v7081_v30 = vpop.permute.xlu1 %1012 }
 0x1fa   : > { %1542 = vperm.xlu0 %6108, %v1516_v22   ;;  %v5810_v22 = vld [vmem:[%s10647_s7 + $0x1] ss:$8 sm:$0x3] }
 0x1fb   : > { %1547 = vperm.xlu1 %6109, %v1517_v25   ;;  %v5811_v25 = vld [vmem:[%s10647_s7 + $0x2] ss:$8 sm:$0x3]  ;;  %v7139_v47 = vrot.slane %v5810_v22, %v6531_v28  ;;  %v7142_v53 = vrot.slane %v5810_v22, %v6523_v24  ;;  %v1255_v22 = vsel %vm1222_vm5, %v6753_v43, %v6765_v49 }
 0x1fc   : > { %v7086_v17 = vpop.permute.xlu0 %586  ;;  %v7145_v33 = vrot.slane %v5811_v25, %v6531_v28 }
 0x1fd   : > { %v7091_v63 = vpop.permute.xlu1 %1114 }
 0x1fe   : > { %10931 = vst [vmem:[#allocation37_spill] sm:$0xff] %v7091_v63  ;;  %1552 = vperm.xlu0 %6108, %v1518_v3   ;;  %v1121_v3 = vsel %vm1120_vm4, %v6751_v41, %v6745_v40  ;;  %v693_v63 = vsel %vm691_vm6, %v6767_v50, %v6829_v2 }
 0x1ff   : > { %1557 = vperm.xlu1 %6109, %v1519_v32   ;;  %v1522_v32 = vld [vmem:[%s10644_s4 + $0x40] sm:$0xff]  ;;  %v1174_v20 = vmul.f32 %v7110_v51, %v1121_v3  ;;  %v7212_v21 = vmul.f32 %v7142_v53, %v693_v63 }
 0x200   : > { %v7099_v4 = vpop.permute.xlu0 %1112 }
 0x201   : > { %10932 = vst [vmem:[#allocation38_spill] sm:$0xff] %v7099_v4  ;;  %v7107_v18 = vpop.permute.xlu1 %1216  ;;  %v7157_v4 = vrot.slane %v5811_v25, %v6523_v24  ;;  %v1524_v25 = vld [vmem:[%s10644_s4 + $0x50] sm:$0xff] }
 0x202   : > { %10933 = vst [vmem:[#allocation39_spill] sm:$0xff] %v7107_v18  ;;  %1562 = vperm.xlu0 %6108, %v1520_v38   ;;  %v7131_v18 = vrot.slane %v5816_v35, %v6523_v24  ;;  %v1153_v35 = vsel %vm1120_vm4, %v6745_v40, %v6751_v41  ;;  %v717_v40 = vsel %vm691_vm6, %v6829_v2, %v6767_v50 }
 0x203   : > { %1567 = vperm.xlu1 %6109, %v1521_v42   ;;  %v1523_v42 = vld [vmem:[%s10644_s4 + $0x48] sm:$0xff]  ;;  %v1154_v41 = vsel %vm1120_vm4, %v6813_v27, %v6839_v36  ;;  %v1122_v50 = vsel %vm1120_vm4, %v6839_v36, %v6813_v27  ;;  %v1256_v2 = vsel %vm1222_vm5, %v6845_v12, %v6853_v13  ;;  %v819_v27 = vsel %vm793_vm7, %v6855_v14, %v6775_v54 }
 0x204   : > { %v7133_v38 = vpop.permute.xlu0 %687  ;;  %v7209_v57 = vmul.f32 %v7139_v47, %v717_v40  ;;  %v7229_v40 = vmul.f32 %v7145_v33, %v819_v27 }
 0x205   : > { %10934 = vst [vmem:[#allocation40_spill] sm:$0xff] %v7133_v38  ;;  %v7147_v46 = vpop.permute.xlu1 %588  ;;  %v1223_v38 = vsel %vm1222_vm5, %v6765_v49, %v6753_v43  ;;  %v692_v43 = vsel %vm691_vm6, %v6759_v44, %v6796_v5  ;;  %v716_v49 = vsel %vm691_vm6, %v6796_v5, %v6759_v44  ;;  %v1224_v44 = vsel %vm1222_vm5, %v6853_v13, %v6845_v12 }
 0x206   : > { %1572 = vperm.xlu0 %6108, %v1522_v32   ;;  %v1525_v32 = vld [vmem:[%s10644_s4 + $0x58] sm:$0xff]  ;;  %v795_v5 = vsel %vm793_vm7, %v6775_v54, %v6855_v14  ;;  %v1177_v12 = vmul.f32 %v7125_v29, %v1154_v41  ;;  %v1175_v13 = vmul.f32 %v7125_v29, %v1153_v35  ;;  %v7217_v16 = vmul.f32 %v7139_v47, %v716_v49 }
 0x207   : > { %1577 = vperm.xlu1 %6109, %v1523_v42   ;;  %v794_v42 = vsel %vm793_vm7, %v6773_v52, %v6811_v19  ;;  %v1176_v54 = vmul.f32 %v7110_v51, %v1122_v50  ;;  %v1279_v14 = vmul.f32 %v7131_v18, %v1256_v2  ;;  %v1278_v63 = vmul.f32 %v7128_v61, %v1224_v44 }
 0x208   : > { %v7186_v3 = vpop.permute.xlu0 %1214  ;;  %v7232_v35 = vmul.f32 %v7157_v4, %v795_v5  ;;  %v1276_v49 = vmul.f32 %v7128_v61, %v1223_v38  ;;  %v1277_v50 = vmul.f32 %v7131_v18, %v1255_v22  ;;  %v7243_v2 = vmul.f32 %v7157_v4, %v794_v42  ;;  %v5812_v38 = vld [vmem:[%s10647_s7 + $0x3] ss:$8 sm:$0x3] }
 0x209   : > { %10935 = vst [vmem:[#allocation41_spill] sm:$0xff] %v7186_v3  ;;  %v7203_v36 = vpop.permute.xlu1 %689  ;;  %v818_v3 = vsel %vm793_vm7, %v6811_v19, %v6773_v52  ;;  %v1526_v52 = vld [vmem:[%s10644_s4 + $0x60] sm:$0xff]  ;;  %v7225_v19 = vmul.f32 %v7142_v53, %v692_v43  ;;  %v1123_v5 = vsel %vm1120_vm4, %v6871_v48, %v6865_v39  ;;  %v7252_v27 = vpack.c.bf16 %v1177_v12, %v1175_v13  ;;  %v1528_v12 = vld [vmem:[%s10644_s4 + $0x70] sm:$0xff] }
 0x20a   : > { %1582 = vperm.xlu0 %6108, %v1524_v25   ;;  %v1527_v25 = vld [vmem:[%s10644_s4 + $0x68] sm:$0xff]  ;;  %v7240_v43 = vmul.f32 %v7145_v33, %v818_v3  ;;  %v1155_v3 = vsel %vm1120_vm4, %v6865_v39, %v6871_v48  ;;  %v1225_v42 = vsel %vm1222_vm5, %v6885_v7, %v6873_v55  ;;  %v7268_v13 = vpack.c.bf16 %v1176_v54, %v1174_v20 }
 0x20b   : > { %1587 = vperm.xlu1 %6109, %v1525_v32   ;;  %v1257_v39 = vsel %vm1222_vm5, %v6873_v55, %v6885_v7  ;;  %v7284_v20 = vpack.c.bf16 %v1278_v63, %v1276_v49  ;;  %v7287_v54 = vmul.f32 %v7110_v51, %v1123_v5  ;;  %v7293_v55 = vrot.slane %v5812_v38, %v6531_v28 }
 0x20c   : > { %v555_v41 = vpop.permute.xlu0 %554  ;;  %v7296_v7 = vrot.slane %v5812_v38, %v6523_v24  ;;  %v7299_v44 = vmul.f32 %v7125_v29, %v1155_v3  ;;  %v7302_v63 = vmul.f32 %v7128_v61, %v1225_v42  ;;  %v1025_v49 = vsel %vm1018_vm3, %v7076_v26, %v7081_v30 }
 0x20d   : > { %v7245_v32 = vpop.permute.xlu1 %791  ;;  %10936 = vst [vmem:[#allocation42_spill] sm:$0xff] %v7293_v55  ;;  %v1057_v5 = vsel %vm1018_vm3, %v7081_v30, %v7076_v26  ;;  %v7311_v22 = vmul.f32 %v7131_v18, %v1257_v39  ;;  %v694_v38 = vsel %vm691_vm6, %v6879_v56, %v6907_v11  ;;  %v718_v3 = vsel %vm691_vm6, %v6907_v11, %v6879_v56 }
 0x20e   : > { %1592 = vperm.xlu0 %6108, %v1526_v52   ;;  %v7270_v52 = vpack.c.bf16 %v1279_v14, %v1277_v50  ;;  %v719_v14 = vsel %vm691_vm6, %v6931_v15, %v6887_v9  ;;  %v695_v42 = vsel %vm691_vm6, %v6887_v9, %v6931_v15  ;;  %v1156_v26 = vsel %vm1120_vm4, %v6921_v45, %v6944_v1 }
 0x20f   : > { %1597 = vperm.xlu1 %6109, %v1527_v25   ;;  %v1529_v25 = vld [vmem:[%s10644_s4 + $0x78] sm:$0xff]  ;;  %v7323_v24 = vmul.f32 %v7139_v47, %v719_v14  ;;  %v597_v30 = vsel %vm590_vm2, %v7086_v17, %v555_v41  ;;  %v1084_v11 = vmul.f32 %v6816_v31, %v1025_v49  ;;  %v1085_v56 = vmul.f32 %v6819_v34, %v1057_v5 }
 0x210   : > { %v7277_v48 = vpop.permute.xlu0 %663  ;;  %v648_v49 = vmul.f32 %v6790_v60, %v597_v30 }
 0x211   : > { %v1017_v50 = vpop.permute.xlu1 %1016 }
 0x212   : > { %1602 = vperm.xlu0 %6108, %v1528_v12   ;;  %v621_v12 = vsel %vm590_vm2, %v555_v41, %v7086_v17 }
 0x213   : > { %1607 = vperm.xlu1 %6109, %v1529_v25   ;;  %v647_v41 = vmul.f32 %v6787_v58, %v621_v12 }
 0x214   : > { %v1015_v39 = vpop.permute.xlu0 %1014 }
 0x215   : > { %v1026_v9 = vsel %vm1018_vm3, %v1015_v39, %v1017_v50  ;;  %v1058_v15 = vsel %vm1018_vm3, %v1017_v50, %v1015_v39  ;;  %v557_v25 = vpop.permute.xlu1 %556 }
 0x216   : > { %v1086_v14 = vmul.f32 %v6816_v31, %v1026_v9  ;;  %v1087_v28 = vmul.f32 %v6819_v34, %v1058_v15  ;;  %v598_v55 = vsel %vm590_vm2, %v7147_v46, %v557_v25  ;;  %v622_v17 = vsel %vm590_vm2, %v557_v25, %v7147_v46  ;;  %2454 = vrot.lane.b32.xlu0 %v6467_v8, %s6323_s23  ;;  %v7348_v31 = vld [vmem:[%s6455_s29] sm:$0xff]  ;;  %v10939_v25 = vld [vmem:[#allocation22_spill] sm:$0xff] }
 0x217   : > { %v649_v50 = vmul.f32 %v6787_v58, %v622_v17  ;;  %v650_v5 = vmul.f32 %v6790_v60, %v598_v55  ;;  %2457 = vrot.lane.b32.xlu1 %v7348_v31, %s6323_s23  ;;  %v7352_v34 = vmul.f32 %v7139_v47, %v718_v3  ;;  %v1124_v46 = vsel %vm1120_vm4, %v6944_v1, %v6921_v45  ;;  %s6330_s23 = smov 2  }
 0x218   : > { %v7357_v39 = vpop.permute.xlu0 %765  ;;  %v7359_v12 = vpack.c.bf16 %v1087_v28, %v1085_v56  ;;  %v7361_v30 = vpack.c.bf16 %v1086_v14, %v1084_v11  ;;  %v742_v58 = vmul.f32 %v7142_v53, %v694_v38  ;;  %v744_v60 = vmul.f32 %v7142_v53, %v695_v42  ;;  %v10937_v11 = vld [vmem:[#allocation24_spill] sm:$0xff]  ;;  %v10940_v14 = vld [vmem:[#allocation21_spill] sm:$0xff] }
 0x219   : > { %v1400_v55 = vpack.c.bf16 %v649_v50, %v647_v41  ;;  %v7365_v9 = vpop.permute.xlu1 %857  ;;  %v1401_v15 = vpack.c.bf16 %v650_v5, %v648_v49  ;;  %v7370_v3 = vsel %vm793_vm7, %v6893_v10, %v6919_v0  ;;  %v7375_v28 = vsel %vm793_vm7, %v6919_v0, %v6893_v10  ;;  %v10941_v41 = vld [vmem:[#allocation30_spill] sm:$0xff] }
 0x21a   : > { %v1181_v45 = vmul.f32 %v7125_v29, %v1156_v26  ;;  %2478 = vrot.lane.b32.xlu0 %v6467_v8, %s6324_s24  ;;  %5919 = vmatprep.subr.bf16.mxu1 %v7359_v12  ;;  %v1404_v1 = vpack.c.bf16 %v7323_v24, %v7352_v34  ;;  %v1180_v38 = vmul.f32 %v7110_v51, %v1124_v46  ;;  %v10942_v49 = vld [vmem:[#allocation26_spill] sm:$0xff] }
 0x21b   : > { %v697_v42 = vsel %vm691_vm6, %v6995_v62, %v7039_v37  ;;  %2481 = vrot.lane.b32.xlu1 %v7348_v31, %s6324_s24  ;;  %1841 = vmatprep.subr.bf16.mxu0 %v1401_v15  ;;  %v721_v10 = vsel %vm691_vm6, %v7039_v37, %v6995_v62  ;;  %v1126_v0 = vsel %vm1120_vm4, %v7049_v6, %v7029_v23  ;;  %s10962_s24 = smov 1  }
 0x21c   : > { %v1158_v24 = vsel %vm1120_vm4, %v7029_v23, %v7049_v6  ;;  %5935 = vmatpush1.bf16.msra.mxu1 %v7361_v30  ;;  %1842 = vmatpush1.bf16.msra.mxu0 %v1400_v55  ;;  %v7397_v26 = vpop.permute.xlu0 %789  ;;  %v1125_v56 = vsel %vm1120_vm4, %v10937_v11, %v6970_v59  ;;  %v1157_v62 = vsel %vm1120_vm4, %v6970_v59, %v10937_v11 }
 0x21d   : > { %5920 = vmatprep.subr.bf16.mxu1 %v7252_v27  ;;  %v7406_v37 = vpop.permute.xlu1 %881  ;;  %v10938_v23 = vpack.c.bf16 %v7212_v21, %v7225_v19  ;;  %v1405_v6 = vpack.c.bf16 %v744_v60, %v742_v58  ;;  %v1258_v17 = vsel %vm1222_vm5, %v10940_v14, %v10939_v25  ;;  %v696_v50 = vsel %vm691_vm6, %v10942_v49, %v10941_v41 }
 0x21e   : > { %v720_v59 = vsel %vm691_vm6, %v10941_v41, %v10942_v49  ;;  %2503 = vrot.lane.b32.xlu0 %v6467_v8, %s6325_s26  ;;  %v7422_v5 = vpack.c.bf16 %v1181_v45, %v7299_v44  ;;  %v747_v21 = vmul.f32 %v7139_v47, %v721_v10  ;;  %v748_v19 = vmul.f32 %v7142_v53, %v697_v42  ;;  %v10944_v10 = vld [vmem:[#allocation37_spill] sm:$0xff] }
 0x21f   : > { %1843 = vmatprep.subr.bf16.mxu0 %v10938_v23  ;;  %v1184_v34 = vmul.f32 %v7110_v51, %v1126_v0  ;;  %v1185_v46 = vmul.f32 %v7125_v29, %v1158_v24  ;;  %2506 = vrot.lane.b32.xlu1 %v7348_v31, %s6325_s26  ;;  %v1182_v58 = vmul.f32 %v7110_v51, %v1125_v56  ;;  %v10945_v0 = vld [vmem:[#allocation38_spill] sm:$0xff]  ;;  %s6335_s26 = smov 97  }
 0x220   : > { %v1183_v60 = vmul.f32 %v7125_v29, %v1157_v62  ;;  %5936 = vmatpush1.bf16.msra.mxu1 %v7268_v13  ;;  %v10943_v44 = vpack.c.bf16 %v7209_v57, %v7217_v16  ;;  %v7435_v55 = vpop.permute.xlu0 %855  ;;  %v7438_v15 = vpack.c.bf16 %v1180_v38, %v7287_v54  ;;  %v745_v45 = vmul.f32 %v7139_v47, %v720_v59  ;;  %v10946_v54 = vld [vmem:[#allocation18_spill] sm:$0xff]  ;;  %v10947_v38 = vld [vmem:[#allocation23_spill] sm:$0xff] }
 0x221   : > { %v746_v42 = vmul.f32 %v7142_v53, %v696_v50  ;;  %v1127_v24 = vsel %vm1120_vm4, %v10945_v0, %v10944_v10  ;;  %5921 = vmatprep.subr.bf16.mxu1 %v7422_v5  ;;  %v1119_v11 = vpop.permute.xlu1 %1118  ;;  %v1226_v57 = vsel %vm1222_vm5, %v10939_v25, %v10940_v14  ;;  %v1283_v16 = vmul.f32 %v7131_v18, %v1258_v17  ;;  %v10948_v17 = vld [vmem:[#allocation40_spill] sm:$0xff] }
 0x222   : > { %1844 = vmatpush1.bf16.msra.mxu0 %v10943_v44  ;;  %v821_v56 = vsel %vm793_vm7, %v10947_v38, %v10946_v54  ;;  %v1159_v62 = vsel %vm1120_vm4, %v10944_v10, %v10945_v0  ;;  %2528 = vrot.lane.b32.xlu0 %v6467_v8, %s6326_s28  ;;  %v1406_v23 = vpack.c.bf16 %v747_v21, %v745_v45 }
 0x223   : > { %1845 = vmatprep.subr.bf16.mxu0 %v1405_v6  ;;  %2531 = vrot.lane.b32.xlu1 %v7348_v31, %s6326_s28  ;;  %v7458_v6 = vpack.c.bf16 %v1185_v46, %v1183_v60  ;;  %v1407_v41 = vpack.c.bf16 %v748_v19, %v746_v42  ;;  %v7460_v25 = vpack.c.bf16 %v1184_v34, %v1182_v58  ;;  %s6333_s28 = smov 110  }
 0x224   : > { %v1186_v14 = vmul.f32 %v7110_v51, %v1127_v24  ;;  %v698_v49 = vsel %vm691_vm6, %v10948_v17, %v7277_v48  ;;  %v722_v50 = vsel %vm691_vm6, %v7277_v48, %v10948_v17  ;;  %5937 = vmatpush1.bf16.msra.mxu1 %v7438_v15  ;;  %v1117_v59 = vpop.permute.xlu0 %1116  ;;  %v1187_v21 = vmul.f32 %v7125_v29, %v1159_v62  ;;  %v10951_v17 = vld [vmem:[#allocation29_spill] sm:$0xff] }
 0x225   : > { %v1128_v19 = vsel %vm1120_vm4, %v1117_v59, %v1119_v11  ;;  %v1160_v34 = vsel %vm1120_vm4, %v1119_v11, %v1117_v59  ;;  %5922 = vmatprep.subr.bf16.mxu1 %v7458_v6  ;;  %v666_v46 = vpop.permute.xlu1 %665  ;;  %v749_v44 = vmul.f32 %v7139_v47, %v722_v50  ;;  %v750_v45 = vmul.f32 %v7142_v53, %v698_v49  ;;  %v10952_v49 = vld [vmem:[#allocation36_spill] sm:$0xff]  ;;  %v10954_v50 = vld [vmem:[#allocation25_spill] sm:$0xff] }
 0x226   : > { %1846 = vmatpush1.bf16.msra.mxu0 %v1404_v1  ;;  %v1188_v58 = vmul.f32 %v7110_v51, %v1128_v19  ;;  %v1189_v60 = vmul.f32 %v7125_v29, %v1160_v34  ;;  %v699_v48 = vsel %vm691_vm6, %v7203_v36, %v666_v46  ;;  %v723_v1 = vsel %vm691_vm6, %v666_v46, %v7203_v36 }
 0x227   : > { %1847 = vmatprep.subr.bf16.mxu0 %v1407_v41  ;;  %2553 = vrot.lane.b32.xlu0 %v6467_v8, %s6327_s25  ;;  %v751_v42 = vmul.f32 %v7139_v47, %v723_v1  ;;  %v752_v10 = vmul.f32 %v7142_v53, %v699_v48  ;;  %v797_v29 = vsel %vm793_vm7, %v10946_v54, %v10947_v38  ;;  %v10950_v41 = vld [vmem:[#allocation34_spill] sm:$0xff] }
 0x228   : > { %2556 = vrot.lane.b32.xlu1 %v7348_v31, %s6327_s25  ;;  %5938 = vmatpush1.bf16.msra.mxu1 %v7460_v25  ;;  %v1219_v51 = vpop.permute.xlu0 %1218  ;;  %v7490_v36 = vpack.c.bf16 %v1189_v60, %v1187_v21  ;;  %v7492_v0 = vpack.c.bf16 %v1188_v58, %v1186_v14  ;;  %v7496_v24 = vmul.f32 %v7145_v33, %v7375_v28  ;;  %v10955_v58 = vld [vmem:[#allocation28_spill] sm:$0xff]  ;;  %v10956_v60 = vld [vmem:[#allocation31_spill] sm:$0xff]  ;;  %s10972_s25 = smov 112  }
 0x229   : > { %v844_v47 = vmul.f32 %v7157_v4, %v7370_v3  ;;  %v1408_v53 = vpack.c.bf16 %v751_v42, %v749_v44  ;;  %v7500_v11 = vpop.permute.xlu1 %861  ;;  %v1409_v62 = vpack.c.bf16 %v752_v10, %v750_v45  ;;  %v1282_v54 = vmul.f32 %v7128_v61, %v1226_v57 }
 0x22a   : > { %1848 = vmatpush1.bf16.msra.mxu0 %v1406_v23  ;;  %v845_v38 = vmul.f32 %v7145_v33, %v821_v56  ;;  %v10949_v23 = vld [vmem:[#allocation35_spill] sm:$0xff]  ;;  %5923 = vmatprep.subr.bf16.mxu1 %v7490_v36  ;;  %v846_v28 = vmul.f32 %v7157_v4, %v797_v29  ;;  %v823_v57 = vsel %vm793_vm7, %v10952_v49, %v10951_v17 }
 0x22b   : > { %v1260_v14 = vsel %vm1222_vm5, %v10950_v41, %v10949_v23  ;;  %2578 = vrot.lane.b32.xlu0 %v6467_v8, %s6328_s22  ;;  %v1228_v3 = vsel %vm1222_vm5, %v10949_v23, %v10950_v41  ;;  %1849 = vmatprep.subr.bf16.mxu0 %v1409_v62  ;;  %v10953_v56 = vld [vmem:[#allocation27_spill] sm:$0xff]  ;;  %v799_v21 = vsel %vm793_vm7, %v10951_v17, %v10952_v49  ;;  %v10958_v41 = vld [vmem:[#allocation41_spill] sm:$0xff] }
 0x22c   : > { %2581 = vrot.lane.b32.xlu1 %v7348_v31, %s6328_s22  ;;  %v1259_v59 = vsel %vm1222_vm5, %v10954_v50, %v10953_v56  ;;  %5939 = vmatpush1.bf16.msra.mxu1 %v7492_v0  ;;  %v880_v19 = vpop.permute.xlu0 %879  ;;  %v7525_v34 = vpack.c.bf16 %v1283_v16, %v7311_v22  ;;  %v1227_v46 = vsel %vm1222_vm5, %v10953_v56, %v10954_v50  ;;  %s6332_s22 = smov 114  }
 0x22d   : > { %v822_v48 = vsel %vm793_vm7, %v10956_v60, %v10955_v58  ;;  %v1287_v1 = vmul.f32 %v7131_v18, %v1260_v14  ;;  %5924 = vmatprep.subr.bf16.mxu1 %v7270_v52  ;;  %v7535_v44 = vpop.permute.xlu1 %885  ;;  %v10957_v45 = vpack.c.bf16 %v7232_v35, %v7243_v2  ;;  %v798_v22 = vsel %vm793_vm7, %v10955_v58, %v10956_v60  ;;  %v10959_v14 = vld [vmem:[#allocation39_spill] sm:$0xff] }
 0x22e   : > { %1850 = vmatpush1.bf16.msra.mxu0 %v1408_v53  ;;  %v1286_v16 = vmul.f32 %v7128_v61, %v1228_v3  ;;  %v849_v42 = vmul.f32 %v7145_v33, %v823_v57  ;;  %v7548_v10 = vpack.c.bf16 %v1282_v54, %v7302_v63  ;;  %v1412_v29 = vpack.c.bf16 %v845_v38, %v7496_v24 }
 0x22f   : > { %1851 = vmatprep.subr.bf16.mxu0 %v10957_v45  ;;  %2603 = vrot.lane.b32.xlu0 %v6467_v8, %s6316_s27  ;;  %v1285_v53 = vmul.f32 %v7131_v18, %v1259_v59  ;;  %v850_v35 = vmul.f32 %v7157_v4, %v799_v21  ;;  %v1413_v2 = vpack.c.bf16 %v846_v28, %v844_v47 }
 0x230   : > { %2606 = vrot.lane.b32.xlu1 %v7348_v31, %s6316_s27  ;;  %v1284_v62 = vmul.f32 %v7128_v61, %v1227_v46  ;;  %v847_v23 = vmul.f32 %v7145_v33, %v822_v48  ;;  %v1261_v3 = vsel %vm1222_vm5, %v10959_v14, %v10958_v41  ;;  %5940 = vmatpush1.bf16.msra.mxu1 %v7284_v20  ;;  %v860_v24 = vpop.permute.xlu0 %859  ;;  %s6329_s27 = smov 14  }
 0x231   : > { %v10960_v63 = vpack.c.bf16 %v7229_v40, %v7240_v43  ;;  %v848_v54 = vmul.f32 %v7157_v4, %v798_v22  ;;  %v824_v47 = vsel %vm793_vm7, %v7357_v39, %v7397_v26  ;;  %5925 = vmatprep.subr.bf16.mxu1 %v7525_v34  ;;  %v1221_v38 = vpop.permute.xlu1 %1220  ;;  %v7569_v28 = vpack.c.bf16 %v1287_v1, %v1285_v53 }
 0x232   : > { %v1414_v17 = vpack.c.bf16 %v849_v42, %v847_v23  ;;  %v800_v40 = vsel %vm793_vm7, %v7397_v26, %v7357_v39  ;;  %v1262_v43 = vsel %vm1222_vm5, %v1221_v38, %v1219_v51  ;;  %v7577_v49 = vpack.c.bf16 %v1286_v16, %v1284_v62 }
 0x233   : > { %1852 = vmatpush1.bf16.msra.mxu0 %v10960_v63  ;;  %2627 = vrot.lane.b32.xlu0 %v6467_v8, %s6319_s16  ;;  %v1289_v57 = vmul.f32 %v7131_v18, %v1261_v3  ;;  %v1230_v56 = vsel %vm1222_vm5, %v1219_v51, %v1221_v38  ;;  %v1291_v50 = vmul.f32 %v7131_v18, %v1262_v43  ;;  %v6111_v63 = vld [vmem:[%s10643_s3 + $0x58] ss:$20 sps:$4 sm:$0xff]  }
 0x234   : > { %1853 = vmatprep.subr.bf16.mxu0 %v1413_v2  ;;  %2630 = vrot.lane.b32.xlu1 %v7348_v31, %s6319_s16  ;;  %v1415_v59 = vpack.c.bf16 %v850_v35, %v848_v54  ;;  %v1229_v39 = vsel %vm1222_vm5, %v10958_v41, %v10959_v14  ;;  %v851_v26 = vmul.f32 %v7145_v33, %v824_v47  ;;  %v884_v46 = vpop.permute.xlu0 %883  ;;  %v6114_v47 = vld [vmem:[%s10643_s3 + $0x84] ss:$20 sps:$4 sm:$0xff]   ;;  %s10975_s16 = smov 111  }
 0x235   : > { %v896_v21 = vsel %vm895_vm8, %v880_v19, %v7435_v55  ;;  %5941 = vmatpush1.bf16.msra.mxu1 %v7548_v10  ;;  %v852_v51 = vmul.f32 %v7157_v4, %v800_v40  ;;  %v897_v18 = vsel %vm895_vm8, %v7406_v37, %v7365_v9  ;;  %v768_v58 = vpop.permute.xlu1 %767  ;;  %v7596_v60 = vpack.c.bf16 %v1291_v50, %v1289_v57 }
 0x236   : > { %5926 = vmatprep.subr.bf16.mxu1 %v7569_v28  ;;  %v920_v48 = vsel %vm895_vm8, %v7435_v55, %v880_v19  ;;  %v1290_v1 = vmul.f32 %v7128_v61, %v1230_v56  ;;  %v801_v45 = vsel %vm793_vm7, %v7245_v32, %v768_v58  ;;  %v825_v22 = vsel %vm793_vm7, %v768_v58, %v7245_v32 }
 0x237   : > { %1854 = vmatpush1.bf16.msra.mxu0 %v1412_v29  ;;  %2651 = vrot.lane.b32.xlu0 %v6467_v8, %s6320_s17  ;;  %v921_v16 = vsel %vm895_vm8, %v7365_v9, %v7406_v37  ;;  %v942_v42 = vmul.f32 %v7296_v7, %v896_v21  ;;  %v853_v29 = vmul.f32 %v7145_v33, %v825_v22  ;;  %v10961_v9 = vld [vmem:[#allocation42_spill] sm:$0xff] }
 0x238   : > { %1855 = vmatprep.subr.bf16.mxu0 %v1415_v59  ;;  %v854_v55 = vmul.f32 %v7157_v4, %v801_v45  ;;  %2654 = vrot.lane.b32.xlu1 %v7348_v31, %s6320_s17  ;;  %v1288_v19 = vmul.f32 %v7128_v61, %v1229_v39  ;;  %v898_v32 = vsel %vm895_vm8, %v884_v46, %v860_v24  ;;  %v864_v53 = vpop.permute.xlu0 %863  ;;  %v6120_v22 = vld [vmem:[%s10643_s3 + $0xac] ss:$20 sps:$4 sm:$0xff]   ;;  %s10969_s17 = smov 113  }
 0x239   : > { %5942 = vmatpush1.bf16.msra.mxu1 %v7577_v49  ;;  %v944_v35 = vmul.f32 %v7296_v7, %v897_v18  ;;  %v941_v37 = vmul.f32 %v10961_v9, %v920_v48  ;;  %v1416_v2 = vpack.c.bf16 %v853_v29, %v851_v26  ;;  %v866_v33 = vpop.permute.xlu1 %865  ;;  %v943_v62 = vmul.f32 %v10961_v9, %v921_v16 }
 0x23a   : > { %5927 = vmatprep.subr.bf16.mxu1 %v7596_v60  ;;  %v1417_v4 = vpack.c.bf16 %v854_v55, %v852_v51  ;;  %v899_v61 = vsel %vm895_vm8, %v7535_v44, %v7500_v11  ;;  %v7626_v23 = vpack.c.bf16 %v1290_v1, %v1288_v19  ;;  %v922_v41 = vsel %vm895_vm8, %v860_v24, %v884_v46  ;;  %v6116_v1 = vld [vmem:[%s10643_s3 + $0x80] ss:$20 sps:$4 sm:$0xff]  }
 0x23b   : > { %1856 = vmatpush1.bf16.msra.mxu0 %v1414_v17  ;;  %2675 = vrot.lane.b32.xlu0 %v6467_v8, %s6329_s27  ;;  %v946_v14 = vmul.f32 %v7296_v7, %v898_v32  ;;  %v1419_v3 = vpack.c.bf16 %v944_v35, %v942_v42  ;;  %v1418_v38 = vpack.c.bf16 %v943_v62, %v941_v37 }
 0x23c   : > { %2678 = vrot.lane.b32.xlu1 %v7348_v31, %s6329_s27  ;;  %1857 = vmatprep.subr.bf16.mxu0 %v1417_v4  ;;  %v888_v54 = vpop.permute.xlu0 %887  ;;  %v923_v24 = vsel %vm895_vm8, %v7500_v11, %v7535_v44  ;;  %v948_v17 = vmul.f32 %v7296_v7, %v899_v61  ;;  %v945_v57 = vmul.f32 %v10961_v9, %v922_v41  ;;  %s10963_s27 = smov 127  }
 0x23d   : > { %5943 = vmatpush1.bf16.msra.mxu1 %v7626_v23  ;;  %v900_v40 = vsel %vm895_vm8, %v888_v54, %v864_v53  ;;  %v890_v43 = vpop.permute.xlu1 %889  ;;  %v924_v56 = vsel %vm895_vm8, %v864_v53, %v888_v54  ;;  %v947_v26 = vmul.f32 %v10961_v9, %v923_v24  ;;  %v6117_v54 = vld [vmem:[%s10643_s3] ss:$20 sps:$4 sm:$0xff]   ;;  %v6122_v24 = vld [vmem:[%s10643_s3 + $0xa8] ss:$20 sps:$4 sm:$0xff]  }
 0x23e   : > { %v901_v50 = vsel %vm895_vm8, %v890_v43, %v866_v33  ;;  %v925_v59 = vsel %vm895_vm8, %v866_v33, %v890_v43  ;;  %v950_v39 = vmul.f32 %v7296_v7, %v900_v40  ;;  %v1421_v44 = vpack.c.bf16 %v948_v17, %v946_v14  ;;  %v5817_v33 = vld [vmem:[%s10647_s7 + $0x10] ss:$8 sm:$0x3]  ;;  %v6123_v43 = vld [vmem:[%s10643_s3 + $0x2c] ss:$20 sps:$4 sm:$0xff]  }
 0x23f   : > { %1858 = vmatpush1.bf16.msra.mxu0 %v1416_v2  ;;  %2700 = vrot.lane.b32.xlu0 %v6467_v8, %s6330_s23  ;;  %v952_v11 = vmul.f32 %v7296_v7, %v901_v50  ;;  %v949_v46 = vmul.f32 %v10961_v9, %v924_v56  ;;  %v951_v51 = vmul.f32 %v10961_v9, %v925_v59  ;;  %v10964_v14 = vld [vmem:[#allocation7_spill] sm:$0xff]  ;;  %v10966_v40 = vld [vmem:[#allocation8_spill] sm:$0xff] }
 0x240   : > { %1859 = vmatprep.subr.bf16.mxu0 %v1419_v3  ;;  %2703 = vrot.lane.b32.xlu1 %v7348_v31, %s6330_s23  ;;  %v868_v21 = vpop.permute.xlu0 %867  ;;  %v1420_v58 = vpack.c.bf16 %v947_v26, %v945_v57  ;;  %v7680_v3 = vrot.slane %v5817_v33, %v10964_v14  ;;  %v6125_v59 = vld [vmem:[%s10643_s3 + $0xd4] ss:$20 sps:$4 sm:$0xff]   ;;  %s6338_s23 = smov 94  }
 0x241   : > { %2001 = vmatmul.mubr.bf16.vlgmr.msra.gmra.mrb[0].mxu1 %v6111_v63  ;;  %v894_v18 = vpop.permute.xlu1 %893  ;;  %v1423_v48 = vpack.c.bf16 %v952_v11, %v950_v39  ;;  %v1422_v16 = vpack.c.bf16 %v951_v51, %v949_v46 }
 0x242   : > { %2010 = vmatprep.mubr.bf16.mxu1 %v6114_v47 }
 0x243   : > { %1860 = vmatpush1.bf16.msra.mxu0 %v1418_v38  ;;  %2725 = vrot.lane.b32.xlu0 %v6467_v8, %s10962_s24 }
 0x244   : > { %1861 = vmatprep.subr.bf16.mxu0 %v1421_v44  ;;  %2728 = vrot.lane.b32.xlu1 %v7348_v31, %s10962_s24  ;;  %v892_v45 = vpop.permute.xlu0 %891 }
 0x245   : > { %v902_v42 = vsel %vm895_vm8, %v892_v45, %v868_v21  ;;  %v926_v29 = vsel %vm895_vm8, %v868_v21, %v892_v45  ;;  %v870_v55 = vpop.permute.xlu1 %869  ;;  %v10967_v21 = vld [vmem:[#allocation9_spill] sm:$0xff] }
 0x246   : > { %v953_v19 = vmul.f32 %v10961_v9, %v926_v29  ;;  %v954_v32 = vmul.f32 %v7296_v7, %v902_v42  ;;  %v903_v53 = vsel %vm895_vm8, %v894_v18, %v870_v55  ;;  %v927_v35 = vsel %vm895_vm8, %v870_v55, %v894_v18  ;;  %v10968_v18 = vld [vmem:[#allocation11_spill] sm:$0xff]  ;;  %v10971_v55 = vld [vmem:[#allocation12_spill] sm:$0xff] }
 0x247   : > { %1862 = vmatpush1.bf16.msra.mxu0 %v1420_v58  ;;  %2763 = vrot.lane.b32.xlu0 %v7348_v31, %s10963_s27  ;;  %v955_v37 = vmul.f32 %v10961_v9, %v927_v35  ;;  %v956_v2 = vmul.f32 %v7296_v7, %v903_v53  ;;  %v10965_v7 = vld [vmem:[#allocation6_spill] sm:$0xff]  ;;  %v6128_v42 = vld [vmem:[%s10643_s3 + $0xd0] ss:$20 sps:$4 sm:$0xff]  }
 0x248   : > { %1863 = vmatprep.subr.bf16.mxu0 %v1423_v48  ;;  %2765 = vrot.lane.b32.xlu1 %v6467_v8, %s10963_s27  ;;  %v1293_v4 = vpop.permute.xlu0 %1292  ;;  %v7684_v9 = vrot.slane %v5817_v33, %v10965_v7  ;;  %s6334_s27 = smov 98  }
 0x249   : > { %2011 = vmatmul.mubr.bf16.gmra.mrb[4].mxu1 %v6116_v1  ;;  %v1424_v62 = vpack.c.bf16 %v955_v37, %v953_v19  ;;  %v1295_v61 = vpop.permute.xlu1 %1294  ;;  %v1425_v41 = vpack.c.bf16 %v956_v2, %v954_v32  ;;  %v6127_v1 = vld [vmem:[%s10643_s3 + $0x28] ss:$20 sps:$4 sm:$0xff]  }
 0x24a   : > { %2020 = vmatprep.mubr.bf16.mxu1 %v6120_v22  ;;  %v1325_v63 = vsel %vm1324_vm9, %v1293_v4, %v1295_v61  ;;  %v1357_v47 = vsel %vm1324_vm9, %v1295_v61, %v1293_v4  ;;  %v6129_v19 = vld [vmem:[%s10643_s3 + $0x54] ss:$20 sps:$4 sm:$0xff]   ;;  %v6131_v37 = vld [vmem:[%s10643_s3 + $0xfc] ss:$20 sps:$4 sm:$0xff]   ;;  %v10973_v61 = vld [vmem:[#allocation13_spill] sm:$0xff] }
 0x24b   : > { %1864 = vmatpush1.bf16.msra.mxu0 %v1422_v16  ;;  %2787 = vrot.lane.b32.xlu0 %v7348_v31, %s6331_s14  ;;  %v1378_v57 = vmul.f32 %v7680_v3, %v1325_v63  ;;  %v1379_v39 = vmul.f32 %v7684_v9, %v1357_v47  ;;  %v10970_v16 = vld [vmem:[#allocation10_spill] sm:$0xff] }
 0x24c   : > { %2789 = vrot.lane.b32.xlu1 %v6467_v8, %s6331_s14  ;;  %1865 = vmatprep.subr.bf16.mxu0 %v1425_v41  ;;  %v1297_v38 = vpop.permute.xlu0 %1296 }
 0x24d   : > { %v1299_v17 = vpop.permute.xlu1 %1298 }
 0x24e   : > { %v1326_v56 = vsel %vm1324_vm9, %v1297_v38, %v1299_v17  ;;  %v1358_v50 = vsel %vm1324_vm9, %v1299_v17, %v1297_v38 }
 0x24f   : > { %1866 = vmatpush1.bf16.msra.mxu0 %v1424_v62  ;;  %2812 = vrot.lane.b32.xlu0 %v7348_v31, %s6332_s22  ;;  %v1380_v11 = vmul.f32 %v7680_v3, %v1326_v56  ;;  %v1381_v44 = vmul.f32 %v7684_v9, %v1358_v50  ;;  %v10977_v50 = vld [vmem:[#allocation16_spill] sm:$0xff] }
 0x250   : > { %1948 = vmatprep.subr.bf16.mxu0 %v10966_v40  ;;  %2814 = vrot.lane.b32.xlu1 %v6467_v8, %s6332_s22  ;;  %v1301_v26 = vpop.permute.xlu0 %1300 }
 0x251   : > { %2021 = vmatmul.mubr.bf16.gmra.mrb[8].mxu1 %v6122_v24  ;;  %v1458_v46 = vpack.c.bf16 %v1380_v11, %v1378_v57  ;;  %v1303_v51 = vpop.permute.xlu1 %1302  ;;  %v1459_v58 = vpack.c.bf16 %v1381_v44, %v1379_v39  ;;  %v6133_v24 = vld [vmem:[%s10643_s3 + $0x50] ss:$20 sps:$4 sm:$0xff]   ;;  %v6134_v57 = vld [vmem:[%s10643_s3 + $0xf8] ss:$20 sps:$4 sm:$0xff]  }
 0x252   : > { %1868 = vmatmul.mubr.bf16.vlgmr.msra.gmra.mrb[16].mxu0 %v6117_v54  ;;  %2030 = vmatprep.mubr.bf16.mxu1 %v6125_v59  ;;  %v1327_v48 = vsel %vm1324_vm9, %v1301_v26, %v1303_v51  ;;  %v1359_v45 = vsel %vm1324_vm9, %v1303_v51, %v1301_v26  ;;  %v10974_v54 = vld [vmem:[#allocation14_spill] sm:$0xff]  ;;  %v6135_v59 = vld [vmem:[%s10643_s3 + $0x7c] ss:$20 sps:$4 sm:$0xff]   ;;  %v6137_v26 = vld [vmem:[%s10643_s3 + $0x124] ss:$20 sps:$4 sm:$0xff]  }
 0x253   : > { %1949 = vmatpush1.bf16.msra.mxu0 %v10967_v21  ;;  %1877 = vmatprep.mubr.bf16.mxu0 %v6123_v43  ;;  %v1382_v32 = vmul.f32 %v7680_v3, %v1327_v48  ;;  %v1383_v2 = vmul.f32 %v7684_v9, %v1359_v45  ;;  %v10976_v43 = vld [vmem:[#allocation15_spill] sm:$0xff] }
 0x254   : > { %1950 = vmatprep.subr.bf16.mxu0 %v10968_v18  ;;  %2837 = vrot.lane.b32.xlu0 %v7348_v31, %s10969_s17  ;;  %v1305_v22 = vpop.permute.xlu0 %1304  ;;  %v10979_v45 = vld [vmem:[#allocation19_spill] sm:$0xff] }
 0x255   : > { %2839 = vrot.lane.b32.xlu1 %v6467_v8, %s10969_s17  ;;  %2061 = vmatprep.subr.bf16.mxu1 %v1459_v58  ;;  %v1307_v29 = vpop.permute.xlu1 %1306  ;;  %v10978_v58 = vld [vmem:[#allocation17_spill] sm:$0xff] }
 0x256   : > { %2062 = vmatpush1.bf16.msra.mxu1 %v1458_v46  ;;  %v1328_v53 = vsel %vm1324_vm9, %v1305_v22, %v1307_v29  ;;  %v1360_v35 = vsel %vm1324_vm9, %v1307_v29, %v1305_v22 }
 0x257   : > { %1951 = vmatpush1.bf16.msra.mxu0 %v10970_v16  ;;  %v1384_v33 = vmul.f32 %v7680_v3, %v1328_v53  ;;  %v1385_v4 = vmul.f32 %v7684_v9, %v1360_v35  ;;  %v10981_v35 = vld [vmem:[#allocation32_spill] sm:$0xff] }
 0x258   : > { %1952 = vmatprep.subr.bf16.mxu0 %v10971_v55  ;;  %2861 = vrot.lane.b32.xlu0 %v7348_v31, %s10972_s25  ;;  %v1309_v62 = vpop.permute.xlu0 %1308 }
 0x259   : > { %2863 = vrot.lane.b32.xlu1 %v6467_v8, %s10972_s25  ;;  %2031 = vmatmul.mubr.bf16.gmra.mrb[12].mxu1 %v6128_v42  ;;  %v1460_v41 = vpack.c.bf16 %v1384_v33, %v1382_v32  ;;  %v1311_v63 = vpop.permute.xlu1 %1310  ;;  %v1461_v47 = vpack.c.bf16 %v1385_v4, %v1383_v2  ;;  %v6139_v42 = vld [vmem:[%s10643_s3 + $0x78] ss:$20 sps:$4 sm:$0xff]   ;;  %v6140_v32 = vld [vmem:[%s10643_s3 + $0x120] ss:$20 sps:$4 sm:$0xff]  }
 0x25a   : > { %1878 = vmatmul.mubr.bf16.gmra.mrb[20].mxu0 %v6127_v1  ;;  %2040 = vmatprep.mubr.bf16.mxu1 %v6131_v37  ;;  %v1329_v38 = vsel %vm1324_vm9, %v1309_v62, %v1311_v63  ;;  %v1361_v17 = vsel %vm1324_vm9, %v1311_v63, %v1309_v62  ;;  %v6141_v37 = vld [vmem:[%s10643_s3 + $0xa4] ss:$20 sps:$4 sm:$0xff]  }
 0x25b   : > { %1953 = vmatpush1.bf16.msra.mxu0 %v10973_v61  ;;  %1887 = vmatprep.mubr.bf16.mxu0 %v6129_v19  ;;  %v1386_v39 = vmul.f32 %v7680_v3, %v1329_v38  ;;  %v1387_v21 = vmul.f32 %v7684_v9, %v1361_v17  ;;  %v10980_v19 = vld [vmem:[#allocation20_spill] sm:$0xff]  ;;  %v10982_v63 = vld [vmem:[#allocation33_spill] sm:$0xff]  ;;  %v10983_v38 = vmov 0  }
 0x25c   : > { %1954 = vmatprep.subr.bf16.mxu0 %v10974_v54  ;;  %2885 = vrot.lane.b32.xlu0 %v7348_v31, %s10975_s16  ;;  %v1313_v40 = vpop.permute.xlu0 %1312  ;;  %v6166_v17 = vld [vmem:[%s10643_s3 + $0x128] ss:$20 sps:$4 sm:$0xff]  }
 0x25d   : > { %2887 = vrot.lane.b32.xlu1 %v6467_v8, %s10975_s16  ;;  %2063 = vmatprep.subr.bf16.mxu1 %v1461_v47  ;;  %v1315_v56 = vpop.permute.xlu1 %1314 }
 0x25e   : > { %2064 = vmatpush1.bf16.msra.mxu1 %v1460_v41  ;;  %v1330_v11 = vsel %vm1324_vm9, %v1313_v40, %v1315_v56  ;;  %v1362_v44 = vsel %vm1324_vm9, %v1315_v56, %v1313_v40 }
 0x25f   : > { %1955 = vmatpush1.bf16.msra.mxu0 %v10976_v43  ;;  %v1388_v46 = vmul.f32 %v7680_v3, %v1330_v11  ;;  %v1389_v51 = vmul.f32 %v7684_v9, %v1362_v44 }
 0x260   : > { %1956 = vmatprep.subr.bf16.mxu0 %v10977_v50  ;;  %2909 = vrot.lane.b32.xlu0 %v7348_v31, %s6333_s28  ;;  %v1317_v18 = vpop.permute.xlu0 %1316 }
 0x261   : > { %2911 = vrot.lane.b32.xlu1 %v6467_v8, %s6333_s28  ;;  %2041 = vmatmul.mubr.bf16.gmra.mrb[16].mxu1 %v6134_v57  ;;  %v1462_v48 = vpack.c.bf16 %v1388_v46, %v1386_v39  ;;  %v1319_v1 = vpop.permute.xlu1 %1318  ;;  %v1463_v22 = vpack.c.bf16 %v1389_v51, %v1387_v21  ;;  %s6336_s28 = smov 96  }
 0x262   : > { %1888 = vmatmul.mubr.bf16.gmra.mrb[24].mxu0 %v6133_v24  ;;  %2050 = vmatprep.mubr.bf16.mxu1 %v6137_v26  ;;  %v1331_v16 = vsel %vm1324_vm9, %v1317_v18, %v1319_v1  ;;  %v1363_v29 = vsel %vm1324_vm9, %v1319_v1, %v1317_v18  ;;  %v6165_v24 = vld [vmem:[%s10643_s3 + $0x100] ss:$20 sps:$4 sm:$0xff]  }
 0x263   : > { %1957 = vmatpush1.bf16.msra.mxu0 %v10978_v58  ;;  %1897 = vmatprep.mubr.bf16.mxu0 %v6135_v59  ;;  %v1390_v2 = vmul.f32 %v7680_v3, %v1331_v16  ;;  %v1391_v62 = vmul.f32 %v7684_v9, %v1363_v29 }
 0x264   : > { %1958 = vmatprep.subr.bf16.mxu0 %v10979_v45  ;;  %2934 = vrot.lane.b32.xlu0 %v7348_v31, %s6334_s27  ;;  %v1321_v55 = vpop.permute.xlu0 %1320 }
 0x265   : > { %2936 = vrot.lane.b32.xlu1 %v6467_v8, %s6334_s27  ;;  %2065 = vmatprep.subr.bf16.mxu1 %v1463_v22  ;;  %v1323_v53 = vpop.permute.xlu1 %1322 }
 0x266   : > { %2066 = vmatpush1.bf16.msra.mxu1 %v1462_v48  ;;  %v1332_v33 = vsel %vm1324_vm9, %v1321_v55, %v1323_v53  ;;  %v1364_v4 = vsel %vm1324_vm9, %v1323_v53, %v1321_v55 }
 0x267   : > { %1959 = vmatpush1.bf16.msra.mxu0 %v10980_v19  ;;  %v1392_v61 = vmul.f32 %v7680_v3, %v1332_v33  ;;  %v1393_v41 = vmul.f32 %v7684_v9, %v1364_v4  ;;  %v6143_v3 = vld [vmem:[%s10643_s3 + $0xa0] ss:$20 sps:$4 sm:$0xff]  }
 0x268   : > { %1960 = vmatprep.subr.bf16.mxu0 %v10981_v35  ;;  %2959 = vrot.lane.b32.xlu0 %v7348_v31, %s6335_s26  ;;  %v6145_v9 = vld [vmem:[%s10643_s3 + $0xcc] ss:$20 sps:$4 sm:$0xff]  }
 0x269   : > { %2961 = vrot.lane.b32.xlu1 %v6467_v8, %s6335_s26  ;;  %2051 = vmatmul.mubr.bf16.gmra.mrb[20].mxu1 %v6140_v32  ;;  %v1464_v54 = vpack.c.bf16 %v1392_v61, %v1390_v2  ;;  %v1465_v47 = vpack.c.bf16 %v1393_v41, %v1391_v62 }
 0x26a   : > { %1898 = vmatmul.mubr.bf16.gmra.mrb[28].mxu0 %v6139_v42  ;;  %2093 = vmatprep.mubr.bf16.mxu1 %v10983_v38 }
 0x26b   : > { %1961 = vmatpush1.bf16.msra.mxu0 %v10982_v63  ;;  %1907 = vmatprep.mubr.bf16.mxu0 %v6141_v37 }
 0x26c   : > { %1962 = vmatprep.subr.bf16.mxu0 %v7359_v12  ;;  %2984 = vrot.lane.b32.xlu0 %v7348_v31, %s6336_s28  ;;  %v6144_v12 = vld [vmem:[%s10643_s3 + $0x10] ss:$20 sps:$4 sm:$0xff]  }
 0x26d   : > { %2986 = vrot.lane.b32.xlu1 %v6467_v8, %s6336_s28  ;;  %2067 = vmatprep.subr.bf16.mxu1 %v1465_v47  ;;  %v7983_v47 = vld [vmem:[%s10648_s8] ss:$8 sm:$0x3] }
 0x26e   : > { %2068 = vmatpush1.bf16.msra.mxu1 %v1464_v54 }
 0x26f   : > { %1963 = vmatpush1.bf16.msra.mxu0 %v7361_v30  ;;  %v6147_v30 = vld [vmem:[%s10643_s3 + $0xc8] ss:$20 sps:$4 sm:$0xff]  }
 0x270   : > { %1964 = vmatprep.subr.bf16.mxu0 %v7252_v27  ;;  %3009 = vrot.lane.b32.xlu0 %v7348_v31, %s6337_s21  ;;  %v3634_v27 = vld [vmem:[%s10646_s6] sm:$0xf] }
 0x271   : > { %3011 = vrot.lane.b32.xlu1 %v6467_v8, %s6337_s21  ;;  %5858 = vmatmul.mubr.msk.bf16.vlgmr.msra.gmra.mrb[24].mxu1 %vm1810_vm10, %v6144_v12  ;;  %s323_s21 = sand.u32 1, %s6303_s10  }
 0x272   : > { %1908 = vmatmul.mubr.bf16.gmra.mrb[32].mxu0 %v6143_v3  ;;  %2103 = vmatprep.mubr.bf16.mxu1 %v10983_v38  ;;  %s10599_s27 = scalar_lea.sflag [#allocation3], %s323_s21 }
 0x273   : > { %1965 = vmatpush1.bf16.msra.mxu0 %v7268_v13  ;;  %1917 = vmatprep.mubr.bf16.mxu0 %v6145_v9  ;;  %v4297_v13 = vld [vmem:[%s10646_s6] sm:$0xf] }
 0x274   : > { %1966 = vmatprep.subr.bf16.mxu0 %v7422_v5  ;;  %3034 = vrot.lane.b32.xlu0 %v7348_v31, %s6338_s23  ;;  %v6148_v31 = vld [vmem:[%s10643_s3 + $0x38] ss:$20 sps:$4 sm:$0xff]   ;;  %v4961_v5 = vld [vmem:[%s10646_s6] sm:$0xf] }
 0x275   : > { %3036 = vrot.lane.b32.xlu1 %v6467_v8, %s6338_s23  ;;  %v6149_v8 = vld [vmem:[%s10643_s3 + $0xf4] ss:$20 sps:$4 sm:$0xff]   ;;  %v7908_v40 = vpop.permute.xlu0 %1532  ;;  %s5797_s23 = sshll.u32 %s323_s21, 5 }
 0x276   : > { %v7910_v43 = vpop.permute.xlu1 %1537  ;;  %v7997_v9 = vld [vmem:[%s10648_s8 + $0x2] ss:$8 sm:$0x3]  ;;  %s325_s24 = scalar_lea.vmem [#allocation2], %s5797_s23 }
 0x277   : > { %1967 = vmatpush1.bf16.msra.mxu0 %v7438_v15  ;;  %v5625_v15 = vld [vmem:[%s10646_s6] sm:$0xf]  ;;  %s5731_s26 = sshll.u32 %s325_s24, 4  ;;  %s10590_s26 = int_to_ptr.vmem [resolvable:$true] %s5731_s26 }
 0x278   : > { %1968 = vmatprep.subr.bf16.mxu0 %v7458_v6  ;;  %3637 = vperm.xlu0 %6108, %v3634_v27   ;;  %v6151_v6 = vld [vmem:[%s10643_s3 + $0xf0] ss:$20 sps:$4 sm:$0xff]   ;;  %v8002_v27 = vld [vmem:[%s10648_s8 + $0x3] ss:$8 sm:$0x3]  ;;  %s6249_s16 = scalar_lea.vmem %s10590_s26, 512 }
 0x279   : > { %4300 = vperm.xlu1 %6109, %v4297_v13   ;;  %5859 = vmatmul.mubr.msk.bf16.gmra.mrb[28].mxu1 %vm1810_vm10, %v6148_v31  ;;  %v7912_v57 = vpop.permute.xlu0 %1542  ;;  %v8009_v13 = vld [vmem:[%s10648_s8 + $0x4] ss:$8 sm:$0x3]  ;;  %v8014_v31 = vld [vmem:[%s10648_s8 + $0x5] ss:$8 sm:$0x3]  ;;  %p6250_p11 = scmp.ne.s32.totalorder %s10590_s26, %s6249_s16 }
 0x27a   : > { %1918 = vmatmul.mubr.bf16.gmra.mrb[36].mxu0 %v6147_v30  ;;  %2113 = vmatprep.mubr.bf16.mxu1 %v10983_v38  ;;  %10985 = vst [vmem:[#allocation24_spill] sm:$0xff] %v7912_v57  ;;  %v7914_v56 = vpop.permute.xlu1 %1547 }
 0x27b   : > { %1969 = vmatpush1.bf16.msra.mxu0 %v7460_v25  ;;  %1927 = vmatprep.mubr.bf16.mxu0 %v6149_v8  ;;  %v6152_v25 = vld [vmem:[%s10643_s3 + $0x60] ss:$20 sps:$4 sm:$0xff]   ;;  %10986 = vst [vmem:[#allocation22_spill] sm:$0xff] %v7914_v56  ;;  %v8019_v8 = vld [vmem:[%s10648_s8 + $0x6] ss:$8 sm:$0x3]  ;;  %p6251_p12 = pnand %p6250_p11, %p6431_p5 }
 0x27c   : > { %1970 = vmatprep.subr.bf16.mxu0 %v7490_v36  ;;  %4964 = vperm.xlu0 %6108, %v4961_v5   ;;  %v6153_v36 = vld [vmem:[%s10643_s3 + $0x11c] ss:$20 sps:$4 sm:$0xff]   ;;  %v8024_v5 = vld [vmem:[%s10648_s8 + $0x7] ss:$8 sm:$0x3] }
 0x27d   : > { %5628 = vperm.xlu1 %6109, %v5625_v15   ;;  %v7916_v50 = vpop.permute.xlu0 %1552  ;;  %10990 = vst [vmem:[#allocation37_spill] sm:$0xff] %v8024_v5  ;;  %v8105_v56 = vld [vmem:[%s10648_s8 + $0x17] ss:$8 sm:$0x3]  ;;  %p6252_p13 = pneg %p6251_p12 }
 0x27e   : > { %v7918_v59 = vpop.permute.xlu1 %1557  ;;  %10999 = vst [vmem:[#allocation27_spill] sm:$0xff] %v8105_v56  ;;  %v8122_v5 = vld [vmem:[%s10648_s8 + $0x20] ss:$8 sm:$0x3] }
 0x27f   : > { %1971 = vmatpush1.bf16.msra.mxu0 %v7492_v0  ;;  %v6155_v0 = vld [vmem:[%s10643_s3 + $0x118] ss:$20 sps:$4 sm:$0xff]   ;;  %11001 = vst [vmem:[#allocation28_spill] sm:$0xff] %v8122_v5 }
 0x280   : > { %1972 = vmatprep.subr.bf16.mxu0 %v7270_v52  ;;  %v6156_v52 = vld [vmem:[%s10643_s3 + $0x88] ss:$20 sps:$4 sm:$0xff]   ;;  %v8188_v5 = vld [vmem:[%s10648_s8 + $0x26] ss:$8 sm:$0x3] }
 0x281   : > { %5860 = vmatmul.mubr.msk.bf16.gmra.mrb[0].mxu1 %vm1810_vm10, %v6152_v25  ;;  %v7920_v39 = vpop.permute.xlu0 %1562  ;;  %v8036_v25 = vld [vmem:[%s10648_s8 + $0x11] ss:$8 sm:$0x3]  ;;  %11008 = vst [vmem:[#allocation8_spill] sm:$0xff] %v8188_v5 }
 0x282   : > { %1928 = vmatmul.mubr.bf16.gmra.mrb[40].mxu0 %v6151_v6  ;;  %2123 = vmatprep.mubr.bf16.mxu1 %v10983_v38  ;;  %v7922_v11 = vpop.permute.xlu1 %1567  ;;  %v8031_v6 = vld [vmem:[%s10648_s8 + $0x10] ss:$8 sm:$0x3]  ;;  %10992 = vst [vmem:[#allocation18_spill] sm:$0xff] %v8036_v25 }
 0x283   : > { %1973 = vmatpush1.bf16.msra.mxu0 %v7284_v20  ;;  %1937 = vmatprep.mubr.bf16.mxu0 %v6153_v36  ;;  %v6159_v20 = vld [vmem:[%s10643_s3 + $0xc] ss:$20 sps:$4 sm:$0xff]   ;;  %10991 = vst [vmem:[#allocation38_spill] sm:$0xff] %v8031_v6 }
 0x284   : > { %1974 = vmatprep.subr.bf16.mxu0 %v7525_v34  ;;  %v6157_v34 = vld [vmem:[%s10643_s3 + $0x8] ss:$20 sps:$4 sm:$0xff]  }
 0x285   : > { %v7924_v44 = vpop.permute.xlu0 %1572  ;;  %v8142_v25 = vld [vmem:[%s10648_s8 + $0x22] ss:$8 sm:$0x3] }
 0x286   : > { %v7926_v26 = vpop.permute.xlu1 %1577  ;;  %11004 = vst [vmem:[#allocation39_spill] sm:$0xff] %v8142_v25 }
 0x287   : > { %1975 = vmatpush1.bf16.msra.mxu0 %v7548_v10  ;;  %v6160_v10 = vld [vmem:[%s10643_s3 + $0xb0] ss:$20 sps:$4 sm:$0xff]  }
 0x288   : > { %1976 = vmatprep.subr.bf16.mxu0 %v7569_v28  ;;  %v6161_v28 = vld [vmem:[%s10643_s3 + $0x34] ss:$20 sps:$4 sm:$0xff]  }
 0x289   : > { %5861 = vmatmul.mubr.msk.bf16.gmra.mrb[4].mxu1 %vm1810_vm10, %v6156_v52  ;;  %v7928_v21 = vpop.permute.xlu0 %1582  ;;  %v8071_v52 = vld [vmem:[%s10648_s8 + $0x15] ss:$8 sm:$0x3] }
 0x28a   : > { %1938 = vmatmul.mubr.bf16.gmra.mrb[44].mxu0 %v6155_v0  ;;  %2133 = vmatprep.mubr.bf16.mxu1 %v10983_v38  ;;  %v7930_v46 = vpop.permute.xlu1 %1587  ;;  %10995 = vst [vmem:[#allocation35_spill] sm:$0xff] %v8071_v52  ;;  %v8175_v52 = vld [vmem:[%s10648_s8 + $0x25] ss:$8 sm:$0x3] }
 0x28b   : > { %1977 = vmatpush1.bf16.msra.mxu0 %v7577_v49  ;;  %1980 = vmatprep.mubr.bf16.mxu0 %v6159_v20  ;;  %v6163_v49 = vld [vmem:[%s10643_s3 + $0x30] ss:$20 sps:$4 sm:$0xff]   ;;  %11007 = vst [vmem:[#allocation6_spill] sm:$0xff] %v8175_v52 }
 0x28c   : > { %1978 = vmatprep.subr.bf16.mxu0 %v7596_v60  ;;  %v6164_v60 = vld [vmem:[%s10643_s3 + $0xd8] ss:$20 sps:$4 sm:$0xff]  }
 0x28d   : > { %v7932_v51 = vpop.permute.xlu0 %1592 }
 0x28e   : > { %v7934_v18 = vpop.permute.xlu1 %1597 }
 0x28f   : > { %1979 = vmatpush1.bf16.msra.mxu0 %v7626_v23  ;;  %v10984_v23 = vmov 0.0   ;;  %10987 = vst [vmem:[#allocation21_spill] sm:$0xff] %v7934_v18 }
 0x291   : > { %5862 = vmatmul.mubr.msk.bf16.gmra.mrb[8].mxu1 %vm1810_vm10, %v6160_v10  ;;  %v7936_v58 = vpop.permute.xlu0 %1602  ;;  %v8051_v10 = vld [vmem:[%s10648_s8 + $0x12] ss:$8 sm:$0x3] }
 0x292   : > { %1981 = vmatmul.mubr.bf16.vlgmr.msra.gmra.mrb[16].mxu0 %v6157_v34  ;;  %2143 = vmatprep.mubr.bf16.mxu1 %v10983_v38  ;;  %10988 = vst [vmem:[#allocation30_spill] sm:$0xff] %v7936_v58  ;;  %v7938_v48 = vpop.permute.xlu1 %1607  ;;  %10993 = vst [vmem:[#allocation23_spill] sm:$0xff] %v8051_v10 }
 0x293   : > { %1990 = vmatprep.mubr.bf16.mxu0 %v6161_v28  ;;  %10989 = vst [vmem:[#allocation26_spill] sm:$0xff] %v7938_v48  ;;  %v8056_v28 = vld [vmem:[%s10648_s8 + $0x13] ss:$8 sm:$0x3] }
 0x294   : > { %10994 = vst [vmem:[#allocation40_spill] sm:$0xff] %v8056_v28  ;;  %v8155_v28 = vld [vmem:[%s10648_s8 + $0x23] ss:$8 sm:$0x3] }
 0x295   : > { %v7940_v1 = vpop.permute.xlu0 %2454  ;;  %11005 = vst [vmem:[#allocation42_spill] sm:$0xff] %v8155_v28 }
 0x296   : > { %v7948_v42 = vpop.permute.xlu1 %2457 }
 0x299   : > { %5863 = vmatmul.mubr.msk.bf16.gmra.mrb[12].mxu1 %vm1810_vm10, %v6164_v60  ;;  %v7952_v55 = vpop.permute.xlu0 %2478  ;;  %v8137_v60 = vld [vmem:[%s10648_s8 + $0x21] ss:$8 sm:$0x3] }
 0x29a   : > { %1991 = vmatmul.mubr.bf16.gmra.mrb[20].mxu0 %v6163_v49  ;;  %2153 = vmatprep.mubr.bf16.mxu1 %v10983_v38  ;;  %v7956_v32 = vpop.permute.xlu1 %2481  ;;  %11003 = vst [vmem:[#allocation41_spill] sm:$0xff] %v8137_v60  ;;  %v8203_v60 = vld [vmem:[%s10648_s8 + $0x27] ss:$8 sm:$0x3] }
 0x29b   : > { %3713 = vmatprep.mubr.f32.mxu0 %v10984_v23  ;;  %v8088_v23 = vld [vmem:[%s10648_s8 + $0x16] ss:$8 sm:$0x3]  ;;  %11010 = vst [vmem:[#allocation11_spill] sm:$0xff] %v8203_v60 }
 0x29c   : > { %10997 = vst [vmem:[#allocation29_spill] sm:$0xff] %v8088_v23  ;;  %v8170_v23 = vld [vmem:[%s10648_s8 + $0x24] ss:$8 sm:$0x3] }
 0x29d   : > { %v7960_v35 = vpop.permute.xlu0 %2503  ;;  %11006 = vst [vmem:[#allocation7_spill] sm:$0xff] %v8170_v23 }
 0x29e   : > { %v7966_v33 = vpop.permute.xlu1 %2506 }
 0x2a1   : > { %5864 = vmatmul.mubr.msk.bf16.gmra.mrb[16].mxu1 %vm1810_vm10, %v6165_v24  ;;  %v7968_v4 = vpop.permute.xlu0 %2528 }
 0x2a2   : > { %2163 = vmatprep.mubr.bf16.mxu1 %v10983_v38  ;;  %v7988_v38 = vld [vmem:[%s10648_s8 + $0x1] ss:$8 sm:$0x3]  ;;  %v8026_v15 = vpop.permute.xlu1 %2531 }
 0x2a5   : > { %v8046_v34 = vpop.permute.xlu0 %2553 }
 0x2a6   : > { %v8157_v10 = vpop.permute.xlu1 %2556 }
 0x2a9   : > { %5865 = vmatmul.mubr.msk.bf16.gmra.mrb[20].mxu1 %vm1810_vm10, %v6166_v17  ;;  %vm2583_vm10 = vcmask 146432  }
 0x335   : > { %v7942_v45 = vpop.f32.mrb[24].mxu0 }
 0x336   : > { %v7944_v22 = vpop.f32.mrb[25].mxu0  ;;  %v1890_v56 = vadd.f32 %v7942_v45, %v7916_v50 }
 0x337   : > { %v7946_v16 = vpop.f32.mrb[26].mxu0  ;;  %v1892_v45 = vadd.f32 %v7944_v22, %v7916_v50  ;;  %v8238_v22 = vld [vmem:[%s10648_s8 + $0x30] ss:$8 sm:$0x3]  ;;  %v2582_v50 = vpop.permute.xlu1 %2581 }
 0x338   : > { %v7950_v29 = vpop.f32.mrb[27].mxu0  ;;  %v1894_v20 = vadd.f32 %v7946_v16, %v7918_v59  ;;  %11012 = vst [vmem:[#allocation12_spill] sm:$0xff] %v8238_v22  ;;  %v2487_v16 = vsel %vm2483_vm12, %v7952_v55, %v7956_v32 }
 0x339   : > { %v1896_v24 = vadd.f32 %v7950_v29, %v7918_v59 }
 0x33d   : > { %v7954_v19 = vpop.f32.mrb[28].mxu0 }
 0x33e   : > { %v7958_v53 = vpop.f32.mrb[29].mxu0 }
 0x33f   : > { %v7962_v37 = vpop.f32.mrb[30].mxu0 }
 0x340   : > { %v7964_v2 = vpop.f32.mrb[31].mxu0 }
 0x344   : > { %v7974_v41 = vpop.f32.mrb[24].mxu1 }
 0x345   : > { %v7970_v62 = vpop.f32.mrb[32].mxu0  ;;  %v7978_v54 = vpop.f32.mrb[25].mxu1 }
 0x346   : > { %v7972_v61 = vpop.f32.mrb[33].mxu0  ;;  %v7992_v12 = vpop.f32.mrb[26].mxu1 }
 0x347   : > { %v7976_v63 = vpop.f32.mrb[34].mxu0  ;;  %v8004_v30 = vpop.f32.mrb[27].mxu1 }
 0x348   : > { %v7990_v3 = vpop.f32.mrb[35].mxu0 }
 0x34c   : > { %v8075_v36 = vpop.f32.mrb[28].mxu1 }
 0x34d   : > { %v8058_v49 = vpop.f32.mrb[36].mxu0  ;;  %10996 = vst [vmem:[#allocation34_spill] sm:$0xff] %v8075_v36  ;;  %v8092_v58 = vpop.f32.mrb[29].mxu1 }
 0x34e   : > { %v8073_v0 = vpop.f32.mrb[37].mxu0  ;;  %10998 = vst [vmem:[#allocation36_spill] sm:$0xff] %v8092_v58  ;;  %v8109_v58 = vpop.f32.mrb[30].mxu1 }
 0x34f   : > { %v8090_v48 = vpop.f32.mrb[38].mxu0  ;;  %11000 = vst [vmem:[#allocation25_spill] sm:$0xff] %v8109_v58  ;;  %v8124_v57 = vpop.f32.mrb[31].mxu1 }
 0x350   : > { %v8107_v36 = vpop.f32.mrb[39].mxu0  ;;  %11002 = vst [vmem:[#allocation31_spill] sm:$0xff] %v8124_v57  ;;  %v8177_v58 = vpop.permute.xlu0 %2578 }
 0x354   : > { %v2115_v57 = vpop.f32.mrb[0].mxu1  ;;  %v2604_v60 = vpop.permute.xlu0 %2603 }
 0x355   : > { %v8192_v6 = vpop.f32.mrb[40].mxu0  ;;  %v8215_v28 = vadd.f32 %v2115_v57, %v1890_v56  ;;  %v2117_v25 = vpop.f32.mrb[1].mxu1  ;;  %v2512_v57 = vsel %vm2508_vm13, %v7960_v35, %v7966_v33 }
 0x356   : > { %11009 = vst [vmem:[#allocation9_spill] sm:$0xff] %v8192_v6  ;;  %v8207_v18 = vpop.f32.mrb[41].mxu0  ;;  %v2119_v17 = vpop.f32.mrb[2].mxu1 }
 0x357   : > { %11011 = vst [vmem:[#allocation10_spill] sm:$0xff] %v8207_v18  ;;  %v8217_v6 = vpop.f32.mrb[42].mxu0  ;;  %v8225_v18 = vadd.f32 %v2117_v25, %v1892_v45  ;;  %v8240_v59 = vadd.f32 %v2119_v17, %v1894_v20  ;;  %v2121_v29 = vpop.f32.mrb[3].mxu1  ;;  %v2460_v25 = vsel %vm2459_vm11, %v7948_v42, %v7940_v1  ;;  %v2463_v45 = vsel %vm2459_vm11, %v7940_v1, %v7948_v42 }
 0x358   : > { %v8227_v23 = vpop.f32.mrb[43].mxu0  ;;  %v8251_v56 = vadd.f32 %v2121_v29, %v1896_v24  ;;  %v2484_v20 = vsel %vm2483_vm12, %v7956_v32, %v7952_v55  ;;  %v2509_v17 = vsel %vm2508_vm13, %v7966_v33, %v7960_v35  ;;  %v11013_v29 = vrot.slane %v7983_v47, %v10964_v14 }
 0x359   : > { %v2192_v1 = vmax.f32 %v8215_v28, %v8240_v59  ;;  %v11015_v33 = vrot.slane %v7983_v47, %v10965_v7  ;;  %v11017_v42 = vrot.slane %v7988_v38, %v10964_v14  ;;  %v1900_v55 = vadd.f32 %v7954_v19, %v7920_v39 }
 0x35a   : > { %v2201_v32 = vmax.f32 %v8225_v18, %v8251_v56  ;;  %v8275_v35 = vmul.f32 %v11013_v29, %v2463_v45  ;;  %v11019_v45 = vrot.slane %v7988_v38, %v10965_v7  ;;  %v11021_v47 = vrot.slane %v7997_v9, %v10964_v14 }
 0x35b   : > { %v8280_v5 = vmul.f32 %v11015_v33, %v2460_v25  ;;  %v8285_v24 = vmul.f32 %v11017_v42, %v2487_v16  ;;  %v11023_v16 = vrot.slane %v7997_v9, %v10965_v7  ;;  %v1902_v19 = vadd.f32 %v7958_v53, %v7920_v39 }
 0x35c   : > { %11014 = vst [vmem:[#allocation13_spill] sm:$0xff] %v8275_v35  ;;  %v8294_v29 = vmul.f32 %v11019_v45, %v2484_v20  ;;  %v8299_v25 = vmul.f32 %v11021_v47, %v2512_v57  ;;  %v2125_v33 = vpop.f32.mrb[4].mxu1  ;;  %v2534_v38 = vsel %vm2533_vm14, %v8026_v15, %v7968_v4  ;;  %v2537_v57 = vsel %vm2533_vm14, %v7968_v4, %v8026_v15 }
 0x35d   : > { %11016 = vst [vmem:[#allocation14_spill] sm:$0xff] %v8280_v5  ;;  %11018 = vst [vmem:[#allocation15_spill] sm:$0xff] %v8285_v24  ;;  %v8289_v22 = vpop.f32.mrb[44].mxu0  ;;  %v8304_v42 = vmul.f32 %v11023_v16, %v2509_v17  ;;  %v1904_v20 = vadd.f32 %v7962_v37, %v7922_v11  ;;  %v8318_v9 = vadd.f32 %v2125_v33, %v1900_v55  ;;  %v2127_v17 = vpop.f32.mrb[5].mxu1  ;;  %vm2791_vm11 = vcmask 1031168  }
 0x35e   : > { %11020 = vst [vmem:[#allocation16_spill] sm:$0xff] %v8294_v29  ;;  %11022 = vst [vmem:[#allocation17_spill] sm:$0xff] %v8299_v25  ;;  %v8308_v52 = vpop.f32.mrb[45].mxu0  ;;  %v2559_v39 = vsel %vm2558_vm15, %v8157_v10, %v8046_v34  ;;  %v2562_v53 = vsel %vm2558_vm15, %v8046_v34, %v8157_v10  ;;  %v1906_v47 = vadd.f32 %v7964_v2, %v7922_v11  ;;  %v2129_v15 = vpop.f32.mrb[6].mxu1  ;;  %vm3038_vm12 = vcmask 769024  }
 0x35f   : > { %11024 = vst [vmem:[#allocation19_spill] sm:$0xff] %v8304_v42  ;;  %v8320_v45 = vpop.f32.mrb[46].mxu0  ;;  %v8330_v4 = vadd.f32 %v2127_v17, %v1902_v19  ;;  %v2584_v55 = vsel %vm2583_vm10, %v2582_v50, %v8177_v58  ;;  %v2587_v16 = vsel %vm2583_vm10, %v8177_v58, %v2582_v50  ;;  %v2607_v33 = vpop.permute.xlu1 %2606  ;;  %v2193_v42 = vmax.f32 %v2192_v1, %v8318_v9 }
 0x360   : > { %v8332_v37 = vpop.f32.mrb[47].mxu0  ;;  %v8339_v25 = vadd.f32 %v2129_v15, %v1904_v20  ;;  %v2131_v34 = vpop.f32.mrb[7].mxu1  ;;  %v2608_v10 = vsel %vm590_vm2, %v2607_v33, %v2604_v60  ;;  %v2611_v11 = vsel %vm590_vm2, %v2604_v60, %v2607_v33  ;;  %v11025_v17 = vrot.slane %v8002_v27, %v10964_v14 }
 0x361   : > { %v2202_v2 = vmax.f32 %v2201_v32, %v8330_v4  ;;  %v8344_v19 = vadd.f32 %v2131_v34, %v1906_v47  ;;  %v11027_v58 = vrot.slane %v8002_v27, %v10965_v7  ;;  %v11029_v1 = vrot.slane %v8009_v13, %v10964_v14  ;;  %v8388_v34 = vpop.permute.xlu0 %2627 }
 0x362   : > { %v8349_v29 = vmul.f32 %v11025_v17, %v2537_v57  ;;  %v2194_v60 = vmax.f32 %v2193_v42, %v8339_v25  ;;  %v11031_v32 = vrot.slane %v8009_v13, %v10965_v7  ;;  %v11033_v57 = vrot.slane %v8014_v31, %v10964_v14 }
 0x363   : > { %v8354_v50 = vmul.f32 %v11027_v58, %v2534_v38  ;;  %v8359_v20 = vmul.f32 %v11029_v1, %v2562_v53  ;;  %v11035_v27 = vrot.slane %v8014_v31, %v10965_v7  ;;  %v2203_v53 = vmax.f32 %v2202_v2, %v8344_v19 }
 0x364   : > { %11026 = vst [vmem:[#allocation20_spill] sm:$0xff] %v8349_v29  ;;  %v8365_v47 = vmul.f32 %v11031_v32, %v2559_v39  ;;  %v8370_v15 = vmul.f32 %v11033_v57, %v2587_v16  ;;  %v11037_v42 = vrot.slane %v8019_v8, %v10964_v14  ;;  %v11039_v13 = vrot.slane %v8019_v8, %v10965_v7  ;;  %v2135_v1 = vpop.f32.mrb[8].mxu1 }
 0x365   : > { %11028 = vst [vmem:[#allocation32_spill] sm:$0xff] %v8354_v50  ;;  %11030 = vst [vmem:[#allocation33_spill] sm:$0xff] %v8359_v20  ;;  %v8375_v38 = vmul.f32 %v11035_v27, %v2584_v55  ;;  %v1910_v16 = vadd.f32 %v7970_v62, %v7924_v44  ;;  %v2195_v31 = vrot.slane %v2194_v60, 4  ;;  %v1982_v55 = vpop.f32.mrb[16].mxu0  ;;  %v1912_v2 = vadd.f32 %v7972_v61, %v7924_v44  ;;  %v2137_v27 = vpop.f32.mrb[9].mxu1 }
 0x366   : > { %11032 = vst [vmem:[#allocation43_spill] sm:$0xff] %v8365_v47  ;;  %11034 = vst [vmem:[#allocation44_spill] sm:$0xff] %v8370_v15  ;;  %v8381_v33 = vmul.f32 %v11037_v42, %v2611_v11  ;;  %v8386_v39 = vmul.f32 %v11039_v13, %v2608_v10  ;;  %v1914_v17 = vadd.f32 %v7976_v63, %v7926_v26  ;;  %v2204_v11 = vrot.slane %v2203_v53, 4  ;;  %v1984_v8 = vpop.f32.mrb[17].mxu0  ;;  %v11045_v47 = vld [vmem:[#allocation34_spill] sm:$0xff] }
 0x367   : > { %11036 = vst [vmem:[#allocation45_spill] sm:$0xff] %v8375_v38  ;;  %v5944_v58 = vadd.f32 %v1982_v55, %v7908_v40  ;;  %v1916_v10 = vadd.f32 %v7990_v3, %v7926_v26  ;;  %v2196_v32 = vmax.f32 %v2194_v60, %v2195_v31  ;;  %v8399_v57 = vadd.f32 %v2135_v1, %v1910_v16  ;;  %v1986_v42 = vpop.f32.mrb[18].mxu0  ;;  %v2139_v55 = vpop.f32.mrb[10].mxu1 }
 0x368   : > { %11038 = vst [vmem:[#allocation46_spill] sm:$0xff] %v8381_v33  ;;  %11040 = vst [vmem:[#allocation47_spill] sm:$0xff] %v8386_v39  ;;  %v5946_v62 = vadd.f32 %v1984_v8, %v7908_v40  ;;  %v2205_v13 = vmax.f32 %v2203_v53, %v2204_v11  ;;  %v8405_v61 = vadd.f32 %v2137_v27, %v1912_v2  ;;  %v1988_v39 = vpop.f32.mrb[19].mxu0  ;;  %v2141_v60 = vpop.f32.mrb[11].mxu1  ;;  %vm2680_vm2 = vcmask 113664  }
 0x369   : > { %v8403_v44 = vadd.f32 %v5944_v58, %v7974_v41  ;;  %v5948_v63 = vadd.f32 %v1986_v42, %v7910_v43  ;;  %v2197_v38 = vrot.slane %v2196_v32, 2  ;;  %v8411_v3 = vadd.f32 %v2139_v55, %v1914_v17  ;;  %v8421_v2 = vpop.permute.xlu1 %2630  ;;  %v8436_v1 = vpop.permute.xlu0 %2651 }
 0x36a   : > { %v8409_v26 = vadd.f32 %v5946_v62, %v7978_v54  ;;  %v5950_v40 = vadd.f32 %v1988_v39, %v7910_v43  ;;  %v1920_v53 = vadd.f32 %v8058_v49, %v7928_v21  ;;  %v2206_v41 = vrot.slane %v2205_v13, 2  ;;  %v11043_v62 = vld [vmem:[#allocation21_spill] sm:$0xff] }
 0x36b   : > { %v8417_v16 = vadd.f32 %v5948_v63, %v7992_v12  ;;  %v8419_v31 = vadd.f32 %v2141_v60, %v1916_v10  ;;  %v1922_v54 = vadd.f32 %v8073_v0, %v7928_v21  ;;  %v2198_v11 = vmax.f32 %v2196_v32, %v2197_v38  ;;  %v11041_v0 = vld [vmem:[#allocation9_spill] sm:$0xff]  ;;  %v11042_v10 = vld [vmem:[#allocation10_spill] sm:$0xff] }
 0x36c   : > { %v2210_v17 = vmax.f32 %v8399_v57, %v8411_v3  ;;  %v8428_v43 = vadd.f32 %v5950_v40, %v8004_v30  ;;  %v1924_v49 = vadd.f32 %v8090_v48, %v7930_v46  ;;  %v2207_v39 = vmax.f32 %v2205_v13, %v2206_v41  ;;  %v11044_v13 = vld [vmem:[#allocation24_spill] sm:$0xff]  ;;  %v2145_v55 = vpop.f32.mrb[12].mxu1 }
 0x36d   : > { %v2174_v12 = vmax.f32 %v8403_v44, %v8417_v16  ;;  %v2219_v58 = vmax.f32 %v8405_v61, %v8419_v31  ;;  %v1926_v21 = vadd.f32 %v8107_v36, %v7930_v46  ;;  %v1930_v38 = vadd.f32 %v11041_v0, %v7932_v51  ;;  %v1992_v48 = vpop.f32.mrb[20].mxu0  ;;  %v2147_v0 = vpop.f32.mrb[13].mxu1 }
 0x36e   : > { %v2199_v30 = vrot.slane %v2198_v11, 1  ;;  %v2183_v8 = vmax.f32 %v8409_v26, %v8428_v43  ;;  %v1932_v32 = vadd.f32 %v11042_v10, %v7932_v51  ;;  %v8448_v27 = vadd.f32 %v8217_v6, %v11043_v62  ;;  %v1994_v46 = vpop.f32.mrb[21].mxu0  ;;  %v2149_v15 = vpop.f32.mrb[14].mxu1 }
 0x36f   : > { %v2208_v42 = vrot.slane %v2207_v39, 1  ;;  %v5952_v63 = vadd.f32 %v1992_v48, %v11044_v13  ;;  %v8453_v36 = vadd.f32 %v8227_v23, %v11043_v62  ;;  %v8455_v60 = vadd.f32 %v2145_v55, %v1920_v53  ;;  %v1996_v51 = vpop.f32.mrb[22].mxu0  ;;  %v11046_v48 = vld [vmem:[#allocation22_spill] sm:$0xff]  ;;  %v8464_v29 = vpop.permute.xlu1 %2654 }
 0x370   : > { %v2200_v40 = vmax.f32 %v2198_v11, %v2199_v30  ;;  %v5954_v41 = vadd.f32 %v1994_v46, %v11044_v13  ;;  %v8461_v50 = vadd.f32 %v2147_v0, %v1922_v54  ;;  %v5956_v33 = vadd.f32 %v1996_v51, %v11046_v48  ;;  %v1998_v20 = vpop.f32.mrb[23].mxu0 }
 0x371   : > { %v2209_v10 = vmax.f32 %v2207_v39, %v2208_v42  ;;  %v8459_v6 = vadd.f32 %v5952_v63, %v11045_v47  ;;  %v2151_v39 = vpop.f32.mrb[15].mxu1 }
 0x372   : > { %v2254_v23 = vsub.f32 %v8215_v28, %v2200_v40  ;;  %v2256_v53 = vsub.f32 %v8240_v59, %v2200_v40  ;;  %v2258_v11 = vsub.f32 %v8318_v9, %v2200_v40  ;;  %v2260_v30 = vsub.f32 %v8339_v25, %v2200_v40 }
 0x373   : > { %v2255_v47 = vsub.f32 %v8225_v18, %v2209_v10  ;;  %v2257_v54 = vsub.f32 %v8251_v56, %v2209_v10  ;;  %v2259_v62 = vsub.f32 %v8330_v4, %v2209_v10  ;;  %v2261_v42 = vsub.f32 %v8344_v19, %v2209_v10  ;;  %v11047_v18 = vld [vmem:[#allocation36_spill] sm:$0xff]  ;;  %v8479_v56 = vpop.permute.xlu0 %2675  ;;  %v11048_v19 = vld [vmem:[#allocation25_spill] sm:$0xff] }
 0x374   : > { %v2294_v13 = vmul.f32 1.442695, %v2254_v23  ;;  %v2298_v63 = vmul.f32 1.442695, %v2256_v53  ;;  %v2302_v55 = vmul.f32 1.442695, %v2258_v11  ;;  %v2175_v28 = vmax.f32 %v2174_v12, %v8459_v6  ;;  %v8487_v53 = vpop.permute.xlu1 %2678 }
 0x375   : > { %v2306_v46 = vmul.f32 1.442695, %v2260_v30  ;;  %v2296_v59 = vmul.f32 1.442695, %v2255_v47  ;;  %v2300_v0 = vmul.f32 1.442695, %v2257_v54  ;;  %v2211_v9 = vmax.f32 %v2210_v17, %v8455_v60 }
 0x376   : > { %6167 = vpow2.f32 %v2294_v13  ;;  %v2304_v25 = vmul.f32 1.442695, %v2259_v62  ;;  %v2308_v40 = vmul.f32 1.442695, %v2261_v42  ;;  %v8477_v51 = vadd.f32 %v5954_v41, %v11047_v18  ;;  %v2155_v23 = vpop.f32.mrb[16].mxu1 }
 0x377   : > { %6169 = vpow2.f32 %v2298_v63  ;;  %v2220_v4 = vmax.f32 %v2219_v58, %v8461_v50  ;;  %v8483_v10 = vadd.f32 %v5956_v33, %v11048_v19  ;;  %v8485_v12 = vadd.f32 %v2149_v15, %v1924_v49  ;;  %v2157_v30 = vpop.f32.mrb[17].mxu1  ;;  %v11049_v49 = vld [vmem:[#allocation31_spill] sm:$0xff] }
 0x378   : > { %6171 = vpow2.f32 %v2302_v55  ;;  %v2184_v17 = vmax.f32 %v2183_v8, %v8477_v51  ;;  %v5958_v11 = vadd.f32 %v1998_v20, %v11046_v48  ;;  %v8491_v41 = vadd.f32 %v2151_v39, %v1926_v21  ;;  %v2159_v15 = vpop.f32.mrb[18].mxu1 }
 0x379   : > { %6173 = vpow2.f32 %v2306_v46  ;;  %v2176_v47 = vmax.f32 %v2175_v28, %v8483_v10  ;;  %v2212_v58 = vmax.f32 %v2211_v9, %v8485_v12  ;;  %v8495_v33 = vadd.f32 %v2155_v23, %v1930_v38  ;;  %v2161_v20 = vpop.f32.mrb[19].mxu1  ;;  %v8517_v46 = vpop.permute.xlu0 %2700 }
 0x37a   : > { %6175 = vpow2.f32 %v2296_v59  ;;  %v8498_v54 = vadd.f32 %v5958_v11, %v11049_v49  ;;  %v2221_v62 = vmax.f32 %v2220_v4, %v8491_v41  ;;  %v8501_v8 = vadd.f32 %v2157_v30, %v1932_v32  ;;  %v11052_v59 = vld [vmem:[#allocation30_spill] sm:$0xff] }
 0x37b   : > { %6177 = vpow2.f32 %v2300_v0  ;;  %v2177_v21 = vrot.slane %v2176_v47, 4  ;;  %v2213_v48 = vrot.slane %v2212_v58, 4  ;;  %v8504_v39 = vadd.f32 %v2159_v15, %v8448_v27  ;;  %v8519_v27 = vpop.permute.xlu1 %2703  ;;  %v11053_v11 = vld [vmem:[#allocation26_spill] sm:$0xff] }
 0x37c   : > { %11050 = vst [vmem:[#allocation9_spill] sm:$0xff] %v8501_v8  ;;  %v8509_v38 = vsel %vm691_vm6, %v8421_v2, %v8388_v34  ;;  %v2185_v42 = vmax.f32 %v2184_v17, %v8498_v54  ;;  %v2222_v13 = vrot.slane %v2221_v62, 4  ;;  %v8513_v63 = vadd.f32 %v2161_v20, %v8453_v36  ;;  %v2165_v23 = vpop.f32.mrb[20].mxu1 }
 0x37d   : > { %6179 = vpow2.f32 %v2304_v25  ;;  %v2178_v32 = vmax.f32 %v2176_v47, %v2177_v21  ;;  %v2214_v55 = vmax.f32 %v2212_v58, %v2213_v48  ;;  %v2228_v28 = vmax.f32 %v8495_v33, %v8504_v39  ;;  %v2167_v15 = vpop.f32.mrb[21].mxu1 }
 0x37e   : > { %11051 = vst [vmem:[#allocation10_spill] sm:$0xff] %v8513_v63  ;;  %v1940_v0 = vadd.f32 %v8289_v22, %v11052_v59  ;;  %v2186_v9 = vrot.slane %v2185_v42, 4  ;;  %v2223_v18 = vmax.f32 %v2221_v62, %v2222_v13  ;;  %v2237_v4 = vmax.f32 %v8501_v8, %v8513_v63  ;;  %v2169_v21 = vpop.f32.mrb[22].mxu1 }
 0x37f   : > { %v1942_v36 = vadd.f32 %v8308_v52, %v11052_v59  ;;  %6181 = vpow2.f32 %v2308_v40  ;;  %v2179_v25 = vrot.slane %v2178_v32, 2  ;;  %v2215_v19 = vrot.slane %v2214_v55, 2 }
 0x380   : > { %v8527_v17 = vpop.eup %6167  ;;  %v1944_v30 = vadd.f32 %v8320_v45, %v11053_v11  ;;  %v2187_v47 = vmax.f32 %v2185_v42, %v2186_v9  ;;  %v2224_v58 = vrot.slane %v2223_v18, 2  ;;  %v8531_v22 = vadd.f32 %v2165_v23, %v1940_v0  ;;  %v2171_v0 = vpop.f32.mrb[23].mxu1 }
 0x381   : > { %v8533_v49 = vpop.eup %6169  ;;  %v1946_v62 = vadd.f32 %v8332_v37, %v11053_v11  ;;  %v2180_v52 = vmax.f32 %v2178_v32, %v2179_v25  ;;  %v2216_v40 = vmax.f32 %v2214_v55, %v2215_v19  ;;  %v8537_v20 = vadd.f32 %v2167_v15, %v1942_v36  ;;  %v8553_v36 = vpop.permute.xlu0 %2725 }
 0x382   : > { %v8539_v48 = vpop.eup %6171  ;;  %v2360_v45 = vadd.f32 %v8533_v49, %v8527_v17  ;;  %v2188_v42 = vrot.slane %v2187_v47, 2  ;;  %v2225_v13 = vmax.f32 %v2223_v18, %v2224_v58  ;;  %v2229_v59 = vmax.f32 %v2228_v28, %v8531_v22  ;;  %v8555_v25 = vpop.permute.xlu1 %2728 }
 0x383   : > { %11054 = vst [vmem:[#allocation21_spill] sm:$0xff] %v8537_v20  ;;  %v8544_v9 = vpop.eup %6173  ;;  %v2181_v23 = vrot.slane %v2180_v52, 1  ;;  %v2217_v63 = vrot.slane %v2216_v40, 1  ;;  %v8547_v37 = vmax.f32 %v2237_v4, %v8537_v20  ;;  %v8549_v32 = vadd.f32 %v2169_v21, %v1944_v30 }
 0x384   : > { %v8551_v55 = vpop.eup %6175  ;;  %v2361_v18 = vadd.f32 %v8539_v48, %v2360_v45  ;;  %v2189_v19 = vmax.f32 %v2187_v47, %v2188_v42  ;;  %v2226_v28 = vrot.slane %v2225_v13, 1  ;;  %v8558_v11 = vadd.f32 %v2171_v0, %v1946_v62 }
 0x385   : > { %v8560_v58 = vpop.eup %6177  ;;  %v2635_v4 = vsel %vm691_vm6, %v8388_v34, %v8421_v2  ;;  %v2182_v30 = vmax.f32 %v2180_v52, %v2181_v23  ;;  %v2218_v15 = vmax.f32 %v2216_v40, %v2217_v63  ;;  %v8566_v21 = vmax.f32 %v2229_v59, %v8549_v32 }
 0x386   : > { %v2362_v20 = vadd.f32 %v8544_v9, %v2361_v18  ;;  %v2369_v45 = vadd.f32 %v8560_v58, %v8551_v55  ;;  %v2190_v47 = vrot.slane %v2189_v19, 1  ;;  %v8571_v42 = vmax.f32 %v2225_v13, %v2226_v28 }
 0x387   : > { %v8573_v62 = vpop.eup %6179  ;;  %v2246_v0 = vsub.f32 %v8403_v44, %v2182_v30  ;;  %v2248_v8 = vsub.f32 %v8417_v16, %v2182_v30  ;;  %v2250_v34 = vsub.f32 %v8459_v6, %v2182_v30  ;;  %v2252_v2 = vsub.f32 %v8483_v10, %v2182_v30  ;;  %v8585_v16 = vpop.permute.xlu0 %2763 }
 0x388   : > { %v2363_v63 = vrot.slane %v2362_v20, 4  ;;  %v2370_v52 = vadd.f32 %v8573_v62, %v2369_v45  ;;  %v2262_v40 = vsub.f32 %v8399_v57, %v2218_v15  ;;  %v2264_v59 = vsub.f32 %v8411_v3, %v2218_v15  ;;  %v8587_v6 = vpop.permute.xlu1 %2765 }
 0x389   : > { %v8582_v23 = vpop.eup %6181  ;;  %v2278_v13 = vmul.f32 1.442695, %v2246_v0  ;;  %v2282_v18 = vmul.f32 1.442695, %v2248_v8  ;;  %v2286_v28 = vmul.f32 1.442695, %v2250_v34  ;;  %v2266_v44 = vsub.f32 %v8455_v60, %v2218_v15 }
 0x38a   : > { %v2364_v10 = vadd.f32 %v2363_v63, %v2362_v20  ;;  %v2371_v30 = vadd.f32 %v8582_v23, %v2370_v52  ;;  %v2290_v45 = vmul.f32 1.442695, %v2252_v2  ;;  %v2268_v57 = vsub.f32 %v8485_v12, %v2218_v15 }
 0x38b   : > { %6183 = vpow2.f32 %v2278_v13  ;;  %v2310_v3 = vmul.f32 1.442695, %v2262_v40  ;;  %v2314_v5 = vmul.f32 1.442695, %v2264_v59  ;;  %v2318_v24 = vmul.f32 1.442695, %v2266_v44 }
 0x38c   : > { %v2365_v0 = vrot.slane %v2364_v10, 2  ;;  %v2372_v8 = vrot.slane %v2371_v30, 4  ;;  %6185 = vpow2.f32 %v2282_v18  ;;  %v2322_v34 = vmul.f32 1.442695, %v2268_v57 }
 0x38d   : > { %vm2705_vm6 = vcmask 15360   ;;  %6187 = vpow2.f32 %v2286_v28  ;;  %v2191_v60 = vmax.f32 %v2189_v19, %v2190_v47  ;;  %v8600_v19 = vpop.permute.xlu0 %2787  ;;  %v8602_v47 = vpop.permute.xlu1 %2789  ;;  %v11055_v28 = vld [vmem:[#allocation37_spill] sm:$0xff] }
 0x38e   : > { %v2366_v2 = vadd.f32 %v2365_v0, %v2364_v10  ;;  %v2373_v63 = vadd.f32 %v2372_v8, %v2371_v30  ;;  %6189 = vpow2.f32 %v2290_v45  ;;  %v11056_v44 = vrot.slane %v11055_v28, %v10964_v14 }
 0x38f   : > { %6191 = vpow2.f32 %v2310_v3  ;;  %v2247_v15 = vsub.f32 %v8409_v26, %v2191_v60  ;;  %v2249_v52 = vsub.f32 %v8428_v43, %v2191_v60  ;;  %v2251_v40 = vsub.f32 %v8477_v51, %v2191_v60 }
 0x390   : > { %v2367_v59 = vrot.slane %v2366_v2, 1  ;;  %v2374_v13 = vrot.slane %v2373_v63, 2  ;;  %6193 = vpow2.f32 %v2314_v5  ;;  %v2253_v18 = vsub.f32 %v8498_v54, %v2191_v60 }
 0x391   : > { %v8608_v10 = vmul.f32 %v11056_v44, %v2635_v4  ;;  %6195 = vpow2.f32 %v2318_v24  ;;  %v2280_v26 = vmul.f32 1.442695, %v2247_v15  ;;  %v2284_v30 = vmul.f32 1.442695, %v2249_v52 }
 0x392   : > { %v2656_v43 = vsel %vm793_vm7, %v8464_v29, %v8436_v1  ;;  %v2368_v51 = vadd.f32 %v2367_v59, %v2366_v2  ;;  %v2375_v45 = vadd.f32 %v2374_v13, %v2373_v63  ;;  %6197 = vpow2.f32 %v2322_v34  ;;  %v2815_v59 = vpop.permute.xlu1 %2814 }
 0x393   : > { %11057 = vst [vmem:[#allocation24_spill] sm:$0xff] %v8608_v10  ;;  %v2659_v5 = vsel %vm793_vm7, %v8436_v1, %v8464_v29  ;;  %6199 = vpow2.f32 %v2280_v26  ;;  %v2288_v54 = vmul.f32 1.442695, %v2251_v40  ;;  %v11058_v24 = vrot.slane %v11055_v28, %v10965_v7  ;;  %v8646_v40 = vpop.permute.xlu0 %2812 }
 0x394   : > { %6201 = vrcp.f32 %v2368_v51  ;;  %v2376_v3 = vrot.slane %v2375_v45, 1  ;;  %v2231_v0 = vrot.slane %v8566_v21, 4  ;;  %v2684_v29 = vsel %vm2680_vm2, %v8479_v56, %v8487_v53 }
 0x395   : > { %v8622_v57 = vmul.f32 %v11058_v24, %v8509_v38  ;;  %v8625_v8 = vpop.eup %6183  ;;  %6203 = vpow2.f32 %v2284_v30  ;;  %v2292_v1 = vmul.f32 1.442695, %v2253_v18  ;;  %v8632_v34 = vmax.f32 %v8547_v37, %v8558_v11  ;;  %v11060_v38 = vld [vmem:[#allocation38_spill] sm:$0xff] }
 0x396   : > { %v8634_v60 = vpop.eup %6185  ;;  %v11061_v2 = vrot.slane %v11060_v38, %v10964_v14  ;;  %v11063_v15 = vrot.slane %v11060_v38, %v10965_v7  ;;  %vm2816_vm7 = vcmask 932864   ;;  %v2377_v13 = vadd.f32 %v2376_v3, %v2375_v45  ;;  %v11065_v30 = vld [vmem:[#allocation18_spill] sm:$0xff] }
 0x397   : > { %11059 = vst [vmem:[#allocation34_spill] sm:$0xff] %v8622_v57  ;;  %v2232_v37 = vmax.f32 %v8566_v21, %v2231_v0  ;;  %v8649_v18 = vpop.eup %6187  ;;  %v2681_v28 = vsel %vm2680_vm2, %v8487_v53, %v8479_v56  ;;  %v2342_v44 = vadd.f32 %v8634_v60, %v8625_v8  ;;  %6205 = vpow2.f32 %v2288_v54 }
 0x398   : > { %v8639_v63 = vmul.f32 %v11061_v2, %v2659_v5  ;;  %v8644_v52 = vmul.f32 %v11063_v15, %v2656_v43  ;;  %v8656_v26 = vpop.eup %6189  ;;  %v11066_v43 = vrot.slane %v11065_v30, %v10964_v14  ;;  %v2706_v21 = vsel %vm2705_vm6, %v8519_v27, %v8517_v46 }
 0x399   : > { %6207 = vrcp.f32 %v2377_v13  ;;  %v2233_v45 = vrot.slane %v2232_v37, 2  ;;  %v8666_v5 = vpop.eup %6191  ;;  %v2709_v56 = vsel %vm2705_vm6, %v8517_v46, %v8519_v27  ;;  %v2733_v53 = vsel %vm895_vm8, %v8553_v36, %v8555_v25 }
 0x39a   : > { %11062 = vst [vmem:[#allocation22_spill] sm:$0xff] %v8639_v63  ;;  %11064 = vst [vmem:[#allocation36_spill] sm:$0xff] %v8644_v52  ;;  %v8661_v51 = vmul.f32 %v11066_v43, %v2684_v29  ;;  %v2343_v54 = vadd.f32 %v8649_v18, %v2342_v44  ;;  %6209 = vpow2.f32 %v2292_v1  ;;  %v8675_v24 = vpop.eup %6193  ;;  %v2730_v3 = vsel %vm895_vm8, %v8555_v25, %v8553_v36  ;;  %v11070_v44 = vld [vmem:[#allocation23_spill] sm:$0xff]  ;;  %v11127_v63 = vld [vmem:[#allocation17_spill] sm:$0xff] }
 0x39b   : > { %v2767_v0 = vsel %vm1018_vm3, %v8585_v16, %v8587_v6  ;;  %v6339_v29 = vmov 1966171168   ;;  %v2234_v46 = vmax.f32 %v2232_v37, %v2233_v45  ;;  %v8683_v27 = vpop.eup %6195  ;;  %v11068_v2 = vrot.slane %v11065_v30, %v10965_v7  ;;  %v11075_v45 = vld [vmem:[#allocation40_spill] sm:$0xff] }
 0x39c   : > { %11067 = vst [vmem:[#allocation25_spill] sm:$0xff] %v8661_v51  ;;  %v3073_v38 = vunpack.c.l.s4 %v6339_v29  ;;  %v2771_v1 = vsel %vm1018_vm3, %v8587_v6, %v8585_v16  ;;  %v2344_v36 = vadd.f32 %v8656_v26, %v2343_v54  ;;  %v2378_v25 = vadd.f32 %v8675_v24, %v8666_v5  ;;  %v8696_v13 = vpop.eup %6197  ;;  %v2838_v54 = vpop.permute.xlu0 %2837  ;;  %v11126_v51 = vld [vmem:[#allocation16_spill] sm:$0xff] }
 0x39d   : > { %v8688_v15 = vmul.f32 %v11068_v2, %v2681_v28  ;;  %v11071_v37 = vrot.slane %v11070_v44, %v10964_v14  ;;  %v11073_v28 = vrot.slane %v11070_v44, %v10965_v7  ;;  %v11076_v16 = vrot.slane %v11075_v45, %v10964_v14  ;;  %v2840_v29 = vpop.permute.xlu1 %2839  ;;  %v8713_v4 = vpop.eup %6199 }
 0x39e   : > { %v2235_v2 = vrot.slane %v2234_v46, 1  ;;  %11078 = vst [vmem:[#allocation38_spill] sm:$0xff] %v8713_v4  ;;  %v11079_v12 = vrot.slane %v11075_v45, %v10965_v7  ;;  %vm2913_vm3 = vcmask 900096   ;;  %vm2988_vm8 = vcmask 785408  }
 0x39f   : > { %11069 = vst [vmem:[#allocation31_spill] sm:$0xff] %v8688_v15  ;;  %v8701_v43 = vmul.f32 %v11071_v37, %v2709_v56  ;;  %v8706_v30 = vmul.f32 %v11073_v28, %v2706_v21  ;;  %v8711_v6 = vmul.f32 %v11076_v16, %v2733_v53  ;;  %v11081_v37 = vld [vmem:[#allocation35_spill] sm:$0xff]  ;;  %v2792_v53 = vsel %vm2791_vm11, %v8600_v19, %v8602_v47  ;;  %v6202_v16 = vpop.eup %6201 }
 0x3a0   : > { %v8718_v56 = vmul.f32 %v11079_v12, %v2730_v3  ;;  %v11082_v44 = vrot.slane %v11081_v37, %v10964_v14  ;;  %v2379_v28 = vadd.f32 %v8683_v27, %v2378_v25  ;;  %v11084_v20 = vrot.slane %v11081_v37, %v10965_v7 }
 0x3a1   : > { %11072 = vst [vmem:[#allocation30_spill] sm:$0xff] %v8701_v43  ;;  %11074 = vst [vmem:[#allocation26_spill] sm:$0xff] %v8706_v30  ;;  %v2796_v12 = vsel %vm2791_vm11, %v8602_v47, %v8600_v19  ;;  %v3074_v3 = vunpack.c.0.s8 %v3073_v38  ;;  %v8737_v45 = vmax.f32 %v2234_v46, %v2235_v2  ;;  %v8746_v25 = vmul.f32 %v6202_v16, %v8539_v48  ;;  %v11098_v30 = vld [vmem:[#allocation27_spill] sm:$0xff] }
 0x3a2   : > { %11077 = vst [vmem:[#allocation37_spill] sm:$0xff] %v8711_v6  ;;  %11080 = vst [vmem:[#allocation18_spill] sm:$0xff] %v8718_v56  ;;  %v8723_v21 = vmul.f32 %v11082_v44, %v2767_v0  ;;  %v8732_v35 = vmul.f32 %v11084_v20, %v2771_v1  ;;  %v8739_v0 = vpop.eup %6203  ;;  %v2430_v44 = vmul.f32 %v6202_v16, %v8527_v17  ;;  %v11088_v1 = vld [vmem:[#allocation29_spill] sm:$0xff]  ;;  %v2345_v6 = vrot.slane %v2344_v36, 4 }
 0x3a3   : > { %11086 = vst [vmem:[#allocation35_spill] sm:$0xff] %v8739_v0  ;;  %v8749_v20 = vmul.f32 %v6202_v16, %v8544_v9  ;;  %v11089_v37 = vrot.slane %v11088_v1, %v10964_v14  ;;  %v8757_v47 = vadd.f32 %v8696_v13, %v2379_v28  ;;  %v2351_v17 = vadd.f32 %v8739_v0, %v8713_v4  ;;  %v8763_v38 = vpop.eup %6205  ;;  %v11132_v0 = vld [vmem:[#allocation46_spill] sm:$0xff] }
 0x3a4   : > { %11083 = vst [vmem:[#allocation23_spill] sm:$0xff] %v8723_v21  ;;  %11085 = vst [vmem:[#allocation40_spill] sm:$0xff] %v8732_v35  ;;  %v8743_v21 = vmul.f32 %v6202_v16, %v8533_v49  ;;  %v2817_v48 = vsel %vm2816_vm7, %v8646_v40, %v2815_v59  ;;  %v2821_v28 = vsel %vm2816_vm7, %v2815_v59, %v8646_v40  ;;  %v2862_v16 = vpop.permute.xlu0 %2861  ;;  %v11092_v49 = vld [vmem:[#allocation5_spill] sm:$0xff] }
 0x3a5   : > { %11087 = vst [vmem:[#allocation48_spill] sm:$0xff] %v8749_v20  ;;  %v8754_v19 = vmul.f32 %v11089_v37, %v2792_v53  ;;  %11091 = vst [vmem:[#allocation49_spill] sm:$0xff] %v8763_v38  ;;  %v6208_v53 = vpop.eup %6207  ;;  %v2864_v37 = vpop.permute.xlu1 %2863  ;;  %v2352_v43 = vadd.f32 %v8763_v38, %v2351_v17  ;;  %v2841_v59 = vsel %vm1120_vm4, %v2838_v54, %v2840_v29  ;;  %v2240_v17 = vrot.slane %v8632_v34, 4  ;;  %v11125_v20 = vld [vmem:[#allocation14_spill] sm:$0xff] }
 0x3a6   : > { %v8779_v35 = vpop.eup %6209  ;;  %v2431_v9 = vmul.f32 %v6208_v53, %v8551_v55  ;;  %v8783_v46 = vmul.f32 %v6208_v53, %v8560_v58  ;;  %v8786_v2 = vmul.f32 %v6208_v53, %v8573_v62  ;;  %v8789_v40 = vmul.f32 %v6208_v53, %v8582_v23 }
 0x3a7   : > { %11090 = vst [vmem:[#allocation29_spill] sm:$0xff] %v8754_v19  ;;  %v8776_v19 = vsub.s32 %v3074_v3, %v11092_v49  ;;  %11094 = vst [vmem:[#allocation50_spill] sm:$0xff] %v8779_v35  ;;  %v2845_v3 = vsel %vm1120_vm4, %v2840_v29, %v2838_v54  ;;  %v8794_v49 = vadd.f32 %v8779_v35, %v2352_v43  ;;  %vm2938_vm4 = vcmask 801792  }
 0x3a8   : > { %11095 = vst [vmem:[#allocation51_spill] sm:$0xff] %v8789_v40  ;;  %v3733_v56 = vcombine.low %v2430_v44, %v2431_v9  ;;  %v3734_v55 = vcombine.high %v2430_v44, %v2431_v9  ;;  %v11096_v23 = vrot.slane %v11088_v1, %v10965_v7  ;;  %v2346_v29 = vadd.f32 %v2345_v6, %v2344_v36 }
 0x3a9   : > { %11093 = vst [vmem:[#allocation5_spill] sm:$0xff] %v8776_v19  ;;  %v11099_v44 = vrot.slane %v11098_v30, %v10964_v14  ;;  %v11101_v62 = vrot.slane %v11098_v30, %v10965_v7  ;;  %v2888_v30 = vpop.permute.xlu1 %2887 }
 0x3aa   : > { %v8804_v53 = vmul.f32 %v11096_v23, %v2796_v12  ;;  %v3741_v12 = vrot.slane %v3733_v56, %v8776_v19  ;;  %v3748_v1 = vrot.slane %v3734_v55, %v8776_v19  ;;  %v11103_v23 = vld [vmem:[#allocation28_spill] sm:$0xff]  ;;  %v2869_v56 = vsel %vm1222_vm5, %v2864_v37, %v2862_v16 }
 0x3ab   : > { %v8813_v9 = vmul.f32 %v11099_v44, %v2817_v48  ;;  %v8818_v58 = vmul.f32 %v11101_v62, %v2821_v28  ;;  %v11104_v54 = vrot.slane %v11103_v23, %v10964_v14  ;;  %v11106_v36 = vrot.slane %v11103_v23, %v10965_v7  ;;  %v2886_v44 = vpop.permute.xlu0 %2885 }
 0x3ac   : > { %11097 = vst [vmem:[#allocation52_spill] sm:$0xff] %v8804_v53  ;;  %v2865_v48 = vsel %vm1222_vm5, %v2862_v16, %v2864_v37  ;;  %v2241_v28 = vmax.f32 %v8632_v34, %v2240_v17  ;;  %v3749_v62 = vcombine.high %v3741_v12, %v3741_v12  ;;  %v3757_v55 = vrot.slane %v3741_v12, %v8776_v19 }
 0x3ad   : > { %11100 = vst [vmem:[#allocation27_spill] sm:$0xff] %v8813_v9  ;;  %11102 = vst [vmem:[#allocation53_spill] sm:$0xff] %v8818_v58  ;;  %v8825_v53 = vmul.f32 %v11104_v54, %v2841_v59  ;;  %v8830_v6 = vmul.f32 %v11106_v36, %v2845_v3  ;;  %v11108_v59 = vsub.f32 %v8405_v61, %v8571_v42  ;;  %v2381_v3 = vrot.slane %v8757_v47, 4  ;;  %v11110_v9 = vld [vmem:[#allocation41_spill] sm:$0xff] }
 0x3ae   : > { %v3750_v43 = vcombine.high %v3748_v1, %v3748_v1  ;;  %v11109_v23 = vsub.f32 %v8419_v31, %v8571_v42  ;;  %v11111_v34 = vrot.slane %v11110_v9, %v10964_v14  ;;  %v3764_v16 = vrot.slane %v3748_v1, %v8776_v19 }
 0x3af   : > { %11105 = vst [vmem:[#allocation28_spill] sm:$0xff] %v8825_v53  ;;  %11107 = vst [vmem:[#allocation54_spill] sm:$0xff] %v8830_v6  ;;  %v2312_v54 = vmul.f32 1.442695, %v11108_v59  ;;  %v2347_v53 = vrot.slane %v2346_v29, 2  ;;  %v3771_v37 = vrot.slane %v3749_v62, %v8776_v19  ;;  %v11113_v61 = vsub.f32 %v8461_v50, %v8571_v42  ;;  %v8865_v50 = vpop.permute.xlu0 %2909 }
 0x3b0   : > { %v2316_v36 = vmul.f32 1.442695, %v11109_v23  ;;  %v8846_v17 = vmul.f32 %v11111_v34, %v2865_v48  ;;  %v11114_v59 = vrot.slane %v11110_v9, %v10965_v7  ;;  %v2889_v31 = vsel %vm1324_vm9, %v2886_v44, %v2888_v30 }
 0x3b1   : > { %v2320_v12 = vmul.f32 1.442695, %v11113_v61  ;;  %v11116_v23 = vsub.f32 %v8491_v41, %v8571_v42  ;;  %v2242_v34 = vrot.slane %v2241_v28, 2  ;;  %v8863_v1 = vsel %vm1324_vm9, %v2888_v30, %v2886_v44  ;;  %v8867_v61 = vpop.permute.xlu1 %2911  ;;  %v11119_v30 = vld [vmem:[#allocation39_spill] sm:$0xff] }
 0x3b2   : > { %11112 = vst [vmem:[#allocation41_spill] sm:$0xff] %v8846_v17  ;;  %v8856_v6 = vmul.f32 %v11114_v59, %v2869_v56  ;;  %v3779_v62 = vcombine.high %v3757_v55, %v3757_v55  ;;  %v3781_v17 = vcombine.high %v3771_v37, %v3771_v37  ;;  %6211 = vpow2.f32 %v2312_v54 }
 0x3b3   : > { %v2324_v48 = vmul.f32 1.442695, %v11116_v23  ;;  %v8870_v9 = vrot.slane %v3750_v43, %v8776_v19  ;;  %v2348_v56 = vadd.f32 %v2347_v53, %v2346_v29  ;;  %v2382_v59 = vadd.f32 %v2381_v3, %v8757_v47 }
 0x3b4   : > { %11115 = vst [vmem:[#allocation55_spill] sm:$0xff] %v8856_v6  ;;  %6213 = vpow2.f32 %v2316_v36  ;;  %v8873_v41 = vcombine.high %v3764_v16, %v3764_v16  ;;  %v3901_v42 = vrot.slane %v3757_v55, %v10964_v14  ;;  %v3909_v44 = vrot.slane %v3771_v37, %v10964_v14 }
 0x3b5   : > { %11117 = vst [vmem:[#allocation56_spill] sm:$0xff] %v8870_v9  ;;  %6215 = vpow2.f32 %v2320_v12  ;;  %v11120_v54 = vrot.slane %v11119_v30, %v10964_v14  ;;  %v11122_v43 = vsub.f32 %v8495_v33, %v8737_v45  ;;  %v8885_v29 = vmax.f32 %v2241_v28, %v2242_v34  ;;  %v11123_v34 = vld [vmem:[#allocation13_spill] sm:$0xff]  ;;  %v8901_v58 = vpop.permute.xlu1 %2936 }
 0x3b6   : > { %11118 = vst [vmem:[#allocation57_spill] sm:$0xff] %v8873_v41  ;;  %6217 = vpow2.f32 %v2324_v48  ;;  %v3905_v47 = vrot.slane %v3757_v55, %v10965_v7  ;;  %v3913_v3 = vrot.slane %v3771_v37, %v10965_v7  ;;  %v3917_v36 = vrot.slane %v3779_v62, %v10964_v14 }
 0x3b7   : > { %v8880_v23 = vmul.f32 %v11120_v54, %v2889_v31  ;;  %v2326_v53 = vmul.f32 1.442695, %v11122_v43  ;;  %v3925_v12 = vrot.slane %v3781_v17, %v10964_v14  ;;  %v3933_v6 = vrot.slane %v3764_v16, %v10964_v14  ;;  %v11124_v43 = vld [vmem:[#allocation15_spill] sm:$0xff] }
 0x3b8   : > { %v3941_v31 = vrot.slane %v8870_v9, %v10964_v14  ;;  %v2349_v48 = vrot.slane %v2348_v56, 1  ;;  %v2383_v54 = vrot.slane %v2382_v59, 2  ;;  %v3921_v33 = vrot.slane %v3779_v62, %v10965_v7 }
 0x3b9   : > { %11121 = vst [vmem:[#allocation39_spill] sm:$0xff] %v8880_v23  ;;  %v3949_v28 = vrot.slane %v8873_v41, %v10964_v14  ;;  %v4148_v55 = vmul.f32 %v3901_v42, %v11123_v34  ;;  %v4150_v37 = vmul.f32 %v3909_v44, %v11124_v43  ;;  %v8899_v23 = vpop.permute.xlu0 %2934  ;;  %v3929_v15 = vrot.slane %v3781_v17, %v10965_v7  ;;  %v11128_v42 = vld [vmem:[#allocation20_spill] sm:$0xff]  ;;  %v11129_v44 = vld [vmem:[#allocation33_spill] sm:$0xff] }
 0x3ba   : > { %v3937_v57 = vrot.slane %v3764_v16, %v10965_v7  ;;  %6219 = vpow2.f32 %v2326_v53  ;;  %v2244_v40 = vrot.slane %v8885_v29, 1  ;;  %v4149_v62 = vmul.f32 %v3905_v47, %v11125_v20  ;;  %v11130_v41 = vld [vmem:[#allocation44_spill] sm:$0xff]  ;;  %v11131_v16 = vld [vmem:[#allocation19_spill] sm:$0xff] }
 0x3bb   : > { %v4151_v52 = vmul.f32 %v3913_v3, %v11126_v51  ;;  %v4152_v10 = vmul.f32 %v3917_v36, %v11127_v63  ;;  %v4154_v34 = vmul.f32 %v3925_v12, %v11128_v42  ;;  %v4156_v43 = vmul.f32 %v3933_v6, %v11129_v44  ;;  %v11133_v36 = vld [vmem:[#allocation32_spill] sm:$0xff]  ;;  %v11134_v42 = vld [vmem:[#allocation43_spill] sm:$0xff] }
 0x3bc   : > { %v4158_v9 = vmul.f32 %v3941_v31, %v11130_v41  ;;  %v2350_v38 = vadd.f32 %v2349_v48, %v2348_v56  ;;  %v2384_v35 = vadd.f32 %v2383_v54, %v2382_v59  ;;  %v8912_v17 = vpop.eup %6211  ;;  %v4153_v53 = vmul.f32 %v3921_v33, %v11131_v16 }
 0x3bd   : > { %v4160_v4 = vmul.f32 %v3949_v28, %v11132_v0  ;;  %v4198_v47 = vsel %vm416_vm0, %v4148_v55, 0.0  ;;  %v4199_v3 = vsel %vm416_vm0, %v4150_v37, 0.0  ;;  %v4155_v12 = vmul.f32 %v3929_v15, %v11133_v36  ;;  %v8931_v55 = vpop.permute.xlu0 %2959  ;;  %v8933_v15 = vpop.permute.xlu1 %2961 }
 0x3be   : > { %v8918_v51 = vpop.eup %6213  ;;  %v4157_v6 = vmul.f32 %v3937_v57, %v11134_v42  ;;  %v4200_v44 = vadd.f32 %v4199_v3, %v4198_v47  ;;  %v2354_v56 = vrot.slane %v8794_v49, 4  ;;  %v4201_v31 = vsel %vm416_vm0, %v4152_v10, 0.0 }
 0x3bf   : > { %v8923_v59 = vpop.eup %6215  ;;  %v4203_v48 = vsel %vm416_vm0, %v4154_v34, 0.0  ;;  %v4247_v54 = vsel %vm416_vm0, %v4149_v62, 0.0  ;;  %v4248_v33 = vsel %vm416_vm0, %v4151_v52, 0.0  ;;  %v4205_v37 = vsel %vm416_vm0, %v4156_v43, 0.0 }
 0x3c0   : > { %v8929_v28 = vpop.eup %6217  ;;  %v4202_v57 = vadd.f32 %v4201_v31, %v4200_v44  ;;  %v4207_v47 = vsel %vm416_vm0, %v4158_v9, 0.0  ;;  %v4249_v3 = vadd.f32 %v4248_v33, %v4247_v54  ;;  %v4209_v10 = vsel %vm416_vm0, %v4160_v4, 0.0 }
 0x3c1   : > { %v4250_v34 = vsel %vm416_vm0, %v4153_v53, 0.0  ;;  %6221 = vrcp.f32 %v2350_v38  ;;  %v2385_v62 = vrot.slane %v2384_v35, 1  ;;  %v2355_v41 = vadd.f32 %v2354_v56, %v8794_v49  ;;  %v2985_v33 = vpop.permute.xlu0 %2984 }
 0x3c2   : > { %v4204_v0 = vadd.f32 %v4203_v48, %v4202_v57  ;;  %v4251_v52 = vadd.f32 %v4250_v34, %v4249_v3  ;;  %v2387_v42 = vadd.f32 %v8918_v51, %v8912_v17  ;;  %v4252_v44 = vsel %vm416_vm0, %v4155_v12, 0.0  ;;  %v2987_v57 = vpop.permute.xlu1 %2986 }
 0x3c3   : > { %v4254_v43 = vsel %vm416_vm0, %v4157_v6, 0.0  ;;  %v2386_v9 = vadd.f32 %v2385_v62, %v2384_v35  ;;  %v11135_v4 = vsub.f32 %v8504_v39, %v8737_v45  ;;  %vm2963_vm5 = vcmask 793600  }
 0x3c4   : > { %v8947_v53 = vpop.eup %6219  ;;  %v4206_v38 = vadd.f32 %v4205_v37, %v4204_v0  ;;  %v4253_v48 = vadd.f32 %v4252_v44, %v4251_v52  ;;  %v2356_v54 = vrot.slane %v2355_v41, 2  ;;  %v2388_v49 = vadd.f32 %v8923_v59, %v2387_v42 }
 0x3c5   : > { %v2330_v31 = vmul.f32 1.442695, %v11135_v4  ;;  %11136 = vst [vmem:[#allocation14_spill] sm:$0xff] %v8947_v53  ;;  %6223 = vrcp.f32 %v2386_v9  ;;  %v11137_v56 = vsub.f32 %v8531_v22, %v8737_v45  ;;  %v11138_v35 = vsub.f32 %v8549_v32, %v8737_v45  ;;  %v11140_v22 = vld [vmem:[#allocation9_spill] sm:$0xff]  ;;  %v11141_v32 = vld [vmem:[#allocation10_spill] sm:$0xff] }
 0x3c6   : > { %v8957_v39 = vmax.f32 %v8885_v29, %v2244_v40  ;;  %vm3013_vm9 = vcmask 777216   ;;  %v4208_v0 = vadd.f32 %v4207_v47, %v4206_v38  ;;  %v8959_v37 = vadd.f32 %v4254_v43, %v4253_v48  ;;  %v11142_v40 = vld [vmem:[#allocation21_spill] sm:$0xff] }
 0x3c7   : > { %v2334_v12 = vmul.f32 1.442695, %v11137_v56  ;;  %v2338_v6 = vmul.f32 1.442695, %v11138_v35  ;;  %v2357_v42 = vadd.f32 %v2356_v54, %v2355_v41  ;;  %v2389_v3 = vadd.f32 %v8929_v28, %v2388_v49  ;;  %v3010_v56 = vpop.permute.xlu0 %3009  ;;  %v11188_v49 = vld [vmem:[#allocation49_spill] sm:$0xff] }
 0x3c8   : > { %11139 = vst [vmem:[#allocation17_spill] sm:$0xff] %v8959_v37  ;;  %6225 = vpow2.f32 %v2330_v31  ;;  %v2271_v34 = vsub.f32 %v11140_v22, %v8957_v39  ;;  %v2273_v45 = vsub.f32 %v11141_v32, %v8957_v39  ;;  %v2275_v29 = vsub.f32 %v11142_v40, %v8957_v39  ;;  %v5877_v54 = vld [vmem:[%s10648_s8 + $0x14] ss:$8 sm:$0x3] }
 0x3c9   : > { %v11143_v62 = vrot.slane %v11119_v30, %v10965_v7  ;;  %v8974_v41 = vadd.f32 %v4209_v10, %v4208_v0  ;;  %v2358_v52 = vrot.slane %v2357_v42, 1  ;;  %v2390_v44 = vrot.slane %v2389_v3, 4 }
 0x3ca   : > { %6227 = vpow2.f32 %v2334_v12  ;;  %v2328_v9 = vmul.f32 1.442695, %v2271_v34  ;;  %v2332_v4 = vmul.f32 1.442695, %v2273_v45  ;;  %v2914_v31 = vsel %vm2913_vm3, %v8865_v50, %v8867_v61  ;;  %v3012_v12 = vpop.permute.xlu1 %3011 }
 0x3cb   : > { %v8972_v47 = vmul.f32 %v11143_v62, %v8863_v1  ;;  %11145 = vst [vmem:[#allocation32_spill] sm:$0xff] %v8974_v41  ;;  %v2918_v1 = vsel %vm2913_vm3, %v8867_v61, %v8865_v50  ;;  %v2359_v30 = vadd.f32 %v2358_v52, %v2357_v42  ;;  %6229 = vpow2.f32 %v2338_v6  ;;  %v6222_v10 = vpop.eup %6221  ;;  %v11146_v6 = vld [vmem:[#allocation42_spill] sm:$0xff] }
 0x3cc   : > { %v2391_v38 = vadd.f32 %v2390_v44, %v2389_v3  ;;  %6231 = vpow2.f32 %v2328_v9  ;;  %v2336_v48 = vmul.f32 1.442695, %v2275_v29  ;;  %v8990_v35 = vmul.f32 %v6222_v10, %v8625_v8  ;;  %v11155_v9 = vld [vmem:[#allocation7_spill] sm:$0xff] }
 0x3cd   : > { %11144 = vst [vmem:[#allocation19_spill] sm:$0xff] %v8972_v47  ;;  %v8993_v50 = vmul.f32 %v6222_v10, %v8634_v60  ;;  %v8996_v61 = vmul.f32 %v6222_v10, %v8656_v26  ;;  %6233 = vrcp.f32 %v2359_v30  ;;  %v11147_v0 = vrot.slane %v11146_v6, %v10964_v14 }
 0x3ce   : > { %v11149_v3 = vrot.slane %v11146_v6, %v10965_v7  ;;  %6235 = vpow2.f32 %v2332_v4  ;;  %v9009_v8 = vmul.f32 %v6222_v10, %v8649_v18  ;;  %v2939_v60 = vsel %vm2938_vm4, %v8899_v23, %v8901_v58  ;;  %v11162_v6 = vld [vmem:[#allocation6_spill] sm:$0xff] }
 0x3cf   : > { %v9001_v42 = vmul.f32 %v11147_v0, %v2914_v31  ;;  %v2943_v26 = vsel %vm2938_vm4, %v8901_v58, %v8899_v23  ;;  %v2755_v34 = vrot.slane %v5877_v54, %v10964_v14  ;;  %v2759_v32 = vrot.slane %v5877_v54, %v10965_v7  ;;  %v6224_v45 = vpop.eup %6223 }
 0x3d0   : > { %v9006_v22 = vmul.f32 %v11149_v3, %v2918_v1  ;;  %11151 = vst [vmem:[#allocation21_spill] sm:$0xff] %v9009_v8  ;;  %v2964_v40 = vsel %vm2963_vm5, %v8931_v55, %v8933_v15  ;;  %v2968_v18 = vsel %vm2963_vm5, %v8933_v15, %v8931_v55  ;;  %v2392_v29 = vrot.slane %v2391_v38, 2  ;;  %v3037_v1 = vpop.permute.xlu1 %3036 }
 0x3d1   : > { %11148 = vst [vmem:[#allocation9_spill] sm:$0xff] %v9001_v42  ;;  %6237 = vpow2.f32 %v2336_v48  ;;  %v9026_v62 = vmul.f32 %v6224_v45, %v8666_v5  ;;  %v9029_v58 = vmul.f32 %v6224_v45, %v8675_v24  ;;  %v9032_v23 = vmul.f32 %v6224_v45, %v8683_v27  ;;  %v3035_v27 = vpop.permute.xlu0 %3034 }
 0x3d2   : > { %11150 = vst [vmem:[#allocation10_spill] sm:$0xff] %v9006_v22  ;;  %v9035_v52 = vmul.f32 %v6224_v45, %v8696_v13  ;;  %v9037_v44 = vpop.eup %6225  ;;  %v11156_v4 = vrot.slane %v11155_v9, %v10964_v14  ;;  %v2989_v15 = vsel %vm2988_vm8, %v2985_v33, %v2987_v57  ;;  %v2993_v5 = vsel %vm2988_vm8, %v2987_v57, %v2985_v33 }
 0x3d3   : > { %11152 = vst [vmem:[#allocation42_spill] sm:$0xff] %v9032_v23  ;;  %11154 = vst [vmem:[#allocation59_spill] sm:$0xff] %v9037_v44  ;;  %v3014_v24 = vsel %vm3013_vm9, %v3010_v56, %v3012_v12  ;;  %v3018_v31 = vsel %vm3013_vm9, %v3012_v12, %v3010_v56  ;;  %v11158_v13 = vcombine.low %v8743_v21, %v8783_v46 }
 0x3d4   : > { %11153 = vst [vmem:[#allocation58_spill] sm:$0xff] %v9035_v52  ;;  %v9042_v55 = vmul.f32 %v11156_v4, %v2939_v60  ;;  %v2396_v10 = vadd.f32 %v9037_v44, %v8947_v53  ;;  %v2760_v48 = vcombine.low %v2755_v34, %v2759_v32  ;;  %v9054_v54 = vpop.eup %6227  ;;  %v11160_v33 = vrot.slane %v11155_v9, %v10965_v7  ;;  %v11168_v32 = vld [vmem:[#allocation8_spill] sm:$0xff]  ;;  %v11223_v53 = vld [vmem:[#allocation43_spill] sm:$0xff] }
 0x3d5   : > { %v3791_v30 = vrot.slane %v11158_v13, %v8776_v19  ;;  %11159 = vst [vmem:[#allocation60_spill] sm:$0xff] %v9054_v54  ;;  %v11163_v56 = vrot.slane %v11162_v6, %v10964_v14  ;;  %v11165_v0 = vrot.slane %v11162_v6, %v10965_v7  ;;  %v3039_v60 = vsel %vm3038_vm12, %v3035_v27, %v3037_v1  ;;  %v9072_v34 = vpop.eup %6229 }
 0x3d6   : > { %11157 = vst [vmem:[#allocation7_spill] sm:$0xff] %v9042_v55  ;;  %v9059_v57 = vmul.f32 %v11160_v33, %v2943_v26  ;;  %11167 = vst [vmem:[#allocation63_spill] sm:$0xff] %v9072_v34  ;;  %v11169_v45 = vrot.slane %v11168_v32, %v10964_v14  ;;  %v2393_v4 = vadd.f32 %v2392_v29, %v2391_v38  ;;  %v11180_v29 = vld [vmem:[#allocation12_spill] sm:$0xff] }
 0x3d7   : > { %v9064_v12 = vmul.f32 %v11163_v56, %v2964_v40  ;;  %v9069_v3 = vmul.f32 %v11165_v0, %v2968_v18  ;;  %v11171_v40 = vcombine.high %v8743_v21, %v8783_v46  ;;  %v2397_v13 = vadd.f32 %v9054_v54, %v2396_v10  ;;  %v9084_v18 = vpop.eup %6231  ;;  %v11175_v56 = vld [vmem:[#allocation11_spill] sm:$0xff] }
 0x3d8   : > { %11161 = vst [vmem:[#allocation61_spill] sm:$0xff] %v9059_v57  ;;  %v9077_v26 = vmul.f32 %v11169_v45, %v2989_v15  ;;  %11172 = vst [vmem:[#allocation64_spill] sm:$0xff] %v9084_v18  ;;  %v11173_v33 = vrot.slane %v11168_v32, %v10965_v7  ;;  %v11176_v0 = vrot.slane %v11175_v56, %v10964_v14  ;;  %v6234_v38 = vpop.eup %6233  ;;  %v2394_v41 = vrot.slane %v2393_v4, 1  ;;  %v11205_v57 = vld [vmem:[#allocation24_spill] sm:$0xff] }
 0x3d9   : > { %11164 = vst [vmem:[#allocation6_spill] sm:$0xff] %v9064_v12  ;;  %11166 = vst [vmem:[#allocation62_spill] sm:$0xff] %v9069_v3  ;;  %v3798_v9 = vrot.slane %v11171_v40, %v8776_v19  ;;  %v11178_v45 = vrot.slane %v11175_v56, %v10965_v7  ;;  %v3043_v46 = vsel %vm3038_vm12, %v3037_v1, %v3035_v27  ;;  %v11185_v56 = vld [vmem:[#allocation38_spill] sm:$0xff] }
 0x3da   : > { %11170 = vst [vmem:[#allocation8_spill] sm:$0xff] %v9077_v26  ;;  %v9089_v6 = vmul.f32 %v11173_v33, %v2993_v5  ;;  %v9094_v15 = vmul.f32 %v11176_v0, %v3014_v24  ;;  %v11181_v10 = vrot.slane %v11180_v29, %v10964_v14  ;;  %v3799_v5 = vcombine.high %v3791_v30, %v3791_v30  ;;  %v6248_v33 = vld [vmem:[%s6455_s29] sm:$0xff]  ;;  %v9113_v0 = vpop.eup %6235  ;;  %v11187_v27 = vld [vmem:[#allocation50_spill] sm:$0xff]  ;;  %s5911_s29 = sshll.u32 %s6414_s13, 9  ;;  %s6340_s13 = smov [#allocation2]  }
 0x3db   : > { %v9099_v21 = vmul.f32 %v11178_v45, %v3018_v31  ;;  %v9108_v32 = vadd.f32 %v9072_v34, %v2397_v13  ;;  %v9111_v24 = vmul.f32 %v6248_v33, %v2760_v48  ;;  %11184 = vst [vmem:[#allocation68_spill] sm:$0xff] %v9113_v0  ;;  %v2423_v31 = vmul.f32 %v6234_v38, %v11185_v56  ;;  %v11186_v45 = vld [vmem:[#allocation35_spill] sm:$0xff]  ;;  %v9128_v33 = vpop.eup %6237  ;;  %s10595_s22 = scalar_lea.hbm %s10649_s9, %s5911_s29  ;;  %s6253_s17 = sshll.u32 %s6340_s13, 4  ;;  %s6254_s17 = int_to_ptr.vmem [resolvable:$false] %s6253_s17 }
 0x3dc   : > { %11174 = vst [vmem:[#allocation65_spill] sm:$0xff] %v9089_v6  ;;  %11177 = vst [vmem:[#allocation11_spill] sm:$0xff] %v9094_v15  ;;  %v9105_v40 = vmul.f32 %v11181_v10, %v3039_v60  ;;  %v9117_v43 = vmul.f32 %v6234_v38, %v11186_v45  ;;  %v9120_v1 = vmul.f32 %v6234_v38, %v11187_v27  ;;  %s6255_s14 = scalar_lea.vmem %s6254_s17, 1024  ;;  %p6256_p0 = scmp.lt.s32.totalorder %s10590_s26, %s6254_s17 }
 0x3dd   : > { %11179 = vst [vmem:[#allocation66_spill] sm:$0xff] %v9099_v21  ;;  %11183 = vst [vmem:[#allocation67_spill] sm:$0xff] %v9111_v24  ;;  %v9123_v60 = vmul.f32 %v6234_v38, %v11188_v49  ;;  %v3800_v10 = vcombine.high %v3798_v9, %v3798_v9  ;;  %v3807_v13 = vrot.slane %v3791_v30, %v8776_v19  ;;  %v11191_v38 = vld [vmem:[#allocation56_spill] sm:$0xff]  ;;  %v11202_v21 = vld [vmem:[#allocation45_spill] sm:$0xff]  ;;  %p6257_p1 = scmp.lt.s32.totalorder %s6255_s14, %s6249_s16 }
 0x3de   : > { %11182 = vst [vmem:[#allocation12_spill] sm:$0xff] %v9105_v40  ;;  %v2405_v48 = vadd.f32 %v9113_v0, %v9084_v18  ;;  %11190 = vst [vmem:[#allocation35_spill] sm:$0xff] %v9128_v33  ;;  %v3070_v56 = vcombine.low %v8990_v35, %v2423_v31  ;;  %v3071_v45 = vcombine.high %v8990_v35, %v2423_v31 }
 0x3df   : > { %11189 = vst [vmem:[#allocation38_spill] sm:$0xff] %v9123_v60  ;;  %v9138_v40 = vcombine.high %v11191_v38, %v11191_v38  ;;  %v11193_v35 = vrot.slane %v11180_v29, %v10965_v7  ;;  %v9156_v12 = vcombine.high %v9111_v24, %v9111_v24  ;;  %v9162_v15 = vrot.slane %v3799_v5, %v8776_v19  ;;  %v11201_v5 = vld [vmem:[#allocation57_spill] sm:$0xff]  ;;  %p6258_p2 = por %p6257_p1, %p6256_p0 }
 0x3e0   : > { %v9141_v30 = vadd.f32 %v9128_v33, %v2405_v48  ;;  %v3078_v49 = vrot.slane %v3070_v56, %v8776_v19  ;;  %v3085_v27 = vrot.slane %v3071_v45, %v8776_v19  ;;  %v9159_v48 = vrot.slane %v3798_v9, %v8776_v19  ;;  %v11209_v33 = vld [vmem:[#allocation36_spill] sm:$0xff] }
 0x3e1   : > { %11192 = vst [vmem:[#allocation50_spill] sm:$0xff] %v9138_v40  ;;  %v9150_v31 = vmul.f32 %v11193_v35, %v3043_v46  ;;  %11195 = vst [vmem:[#allocation56_spill] sm:$0xff] %v9156_v12  ;;  %v11198_v29 = vcombine.low %v8746_v25, %v8786_v2  ;;  %v2395_v35 = vadd.f32 %v2394_v41, %v2393_v4  ;;  %p6259_p3 = pnand %p6258_p2, %p6252_p13 }
 0x3e2   : > { %11196 = vst [vmem:[#allocation69_spill] sm:$0xff] %v9159_v48  ;;  %11197 = vst [vmem:[#allocation70_spill] sm:$0xff] %v9162_v15  ;;  %v9169_v56 = vrot.slane %v3800_v10, %v8776_v19  ;;  %v9171_v45 = vcombine.high %v3807_v13, %v3807_v13  ;;  %v3086_v26 = vcombine.high %v3078_v49, %v3078_v49 }
 0x3e3   : > { %11194 = vst [vmem:[#allocation49_spill] sm:$0xff] %v9150_v31  ;;  %v3841_v46 = vrot.slane %v11198_v29, %v8776_v19  ;;  %v3094_v55 = vrot.slane %v3078_v49, %v8776_v19  ;;  %v3945_v9 = vrot.slane %v11191_v38, %v10965_v7  ;;  %v3953_v42 = vrot.slane %v11201_v5, %v10965_v7  ;;  %v11207_v5 = vld [vmem:[#allocation22_spill] sm:$0xff] }
 0x3e4   : > { %11199 = vst [vmem:[#allocation71_spill] sm:$0xff] %v9169_v56  ;;  %11200 = vst [vmem:[#allocation72_spill] sm:$0xff] %v9171_v45  ;;  %v3957_v37 = vrot.slane %v9138_v40, %v10964_v14  ;;  %v3965_v4 = vrot.slane %v3807_v13, %v10964_v14  ;;  %v3087_v10 = vcombine.high %v3085_v27, %v3085_v27  ;;  %6239 = vrcp.f32 %v2395_v35 }
 0x3e5   : > { %v3108_v29 = vrot.slane %v3086_v26, %v8776_v19  ;;  %v3116_v24 = vcombine.high %v3094_v55, %v3094_v55  ;;  %v3969_v49 = vrot.slane %v3807_v13, %v10965_v7  ;;  %v3973_v38 = vrot.slane %v9162_v15, %v10964_v14  ;;  %v11203_v13 = vld [vmem:[#allocation47_spill] sm:$0xff] }
 0x3e6   : > { %v9188_v31 = vrot.slane %v3085_v27, %v8776_v19  ;;  %v9197_v6 = vmul.f32 %v3945_v9, %v11202_v21  ;;  %v9200_v3 = vmul.f32 %v3953_v42, %v11203_v13  ;;  %v3238_v27 = vrot.slane %v3094_v55, %v10964_v14  ;;  %v11224_v21 = vld [vmem:[#allocation44_spill] sm:$0xff] }
 0x3e7   : > { %v3118_v26 = vcombine.high %v3108_v29, %v3108_v29  ;;  %v3246_v35 = vrot.slane %v3108_v29, %v10964_v14  ;;  %v9205_v22 = vmul.f32 %v3957_v37, %v11205_v57  ;;  %v9208_v47 = vmul.f32 %v3965_v4, %v11207_v5  ;;  %v11213_v5 = vld [vmem:[#allocation13_spill] sm:$0xff]  ;;  %v11214_v57 = vld [vmem:[#allocation15_spill] sm:$0xff] }
 0x3e8   : > { %11204 = vst [vmem:[#allocation57_spill] sm:$0xff] %v9200_v3  ;;  %v9211_v41 = vrot.slane %v3087_v10, %v8776_v19  ;;  %v3254_v40 = vrot.slane %v3116_v24, %v10964_v14  ;;  %v3242_v9 = vrot.slane %v3094_v55, %v10965_v7  ;;  %v3250_v42 = vrot.slane %v3108_v29, %v10965_v7 }
 0x3e9   : > { %11206 = vst [vmem:[#allocation73_spill] sm:$0xff] %v9205_v22  ;;  %v3262_v3 = vrot.slane %v3118_v26, %v10964_v14  ;;  %v3270_v12 = vrot.slane %v9188_v31, %v10964_v14  ;;  %v9220_v37 = vmul.f32 %v3969_v49, %v11209_v33  ;;  %v11211_v22 = vld [vmem:[#allocation25_spill] sm:$0xff]  ;;  %v3258_v10 = vrot.slane %v3116_v24, %v10965_v7 }
 0x3ea   : > { %11208 = vst [vmem:[#allocation74_spill] sm:$0xff] %v9211_v41  ;;  %v9223_v4 = vmul.f32 %v3973_v38, %v11211_v22  ;;  %v3849_v0 = vcombine.high %v3841_v46, %v3841_v46  ;;  %v3266_v18 = vrot.slane %v3118_v26, %v10965_v7  ;;  %v3485_v55 = vmul.f32 %v3238_v27, %v11213_v5 }
 0x3eb   : > { %11210 = vst [vmem:[#allocation75_spill] sm:$0xff] %v9220_v37  ;;  %v3487_v29 = vmul.f32 %v3246_v35, %v11214_v57  ;;  %v11215_v13 = vcombine.high %v8746_v25, %v8786_v2  ;;  %v3274_v49 = vrot.slane %v9188_v31, %v10965_v7  ;;  %v3278_v38 = vrot.slane %v9211_v41, %v10964_v14  ;;  %v11217_v35 = vld [vmem:[#allocation16_spill] sm:$0xff]  ;;  %v11219_v25 = vld [vmem:[#allocation33_spill] sm:$0xff] }
 0x3ec   : > { %11212 = vst [vmem:[#allocation76_spill] sm:$0xff] %v9223_v4  ;;  %v3489_v24 = vmul.f32 %v3254_v40, %v11127_v63  ;;  %v9240_v26 = vcombine.high %v9162_v15, %v9162_v15  ;;  %v3486_v27 = vmul.f32 %v3242_v9, %v11125_v20  ;;  %v3488_v4 = vmul.f32 %v3250_v42, %v11217_v35  ;;  %v11218_v37 = vld [vmem:[#allocation20_spill] sm:$0xff] }
 0x3ed   : > { %v3848_v34 = vrot.slane %v11215_v13, %v8776_v19  ;;  %v3491_v22 = vmul.f32 %v3262_v3, %v11218_v37  ;;  %v3493_v2 = vmul.f32 %v3270_v12, %v11219_v25  ;;  %v3490_v13 = vmul.f32 %v3258_v10, %v11131_v16 }
 0x3ee   : > { %11216 = vst [vmem:[#allocation13_spill] sm:$0xff] %v9240_v26  ;;  %v11220_v33 = vsub.f32 %v8558_v11, %v8957_v39  ;;  %v9251_v40 = vrot.slane %v3841_v46, %v8776_v19  ;;  %v9254_v15 = vrot.slane %v3849_v0, %v8776_v19  ;;  %v6240_v44 = vpop.eup %6239  ;;  %v3492_v9 = vmul.f32 %v3266_v18, %v11133_v36 }
 0x3ef   : > { %v3535_v42 = vsel %vm416_vm0, %v3485_v55, 0.0  ;;  %v3536_v3 = vsel %vm416_vm0, %v3487_v29, 0.0  ;;  %v3850_v12 = vcombine.high %v3848_v34, %v3848_v34  ;;  %v3494_v10 = vmul.f32 %v3274_v49, %v11223_v53 }
 0x3f0   : > { %v2340_v54 = vmul.f32 1.442695, %v11220_v33  ;;  %11221 = vst [vmem:[#allocation15_spill] sm:$0xff] %v9251_v40  ;;  %11222 = vst [vmem:[#allocation16_spill] sm:$0xff] %v9254_v15  ;;  %v3495_v60 = vmul.f32 %v3278_v38, %v11224_v21  ;;  %v3537_v11 = vadd.f32 %v3536_v3, %v3535_v42  ;;  %v3538_v39 = vsel %vm416_vm0, %v3489_v24, 0.0 }
 0x3f1   : > { %v3540_v33 = vsel %vm416_vm0, %v3491_v22, 0.0  ;;  %v3542_v0 = vsel %vm416_vm0, %v3493_v2, 0.0  ;;  %v3584_v46 = vsel %vm416_vm0, %v3486_v27, 0.0  ;;  %v3585_v18 = vsel %vm416_vm0, %v3488_v4, 0.0 }
 0x3f2   : > { %v3539_v8 = vadd.f32 %v3538_v39, %v3537_v11  ;;  %v3586_v55 = vadd.f32 %v3585_v18, %v3584_v46  ;;  %v3587_v29 = vsel %vm416_vm0, %v3490_v13, 0.0  ;;  %v2439_v41 = vmul.f32 %v6240_v44, %v8912_v17  ;;  %v11228_v11 = vld [vmem:[#allocation48_spill] sm:$0xff]  ;;  %v11229_v39 = vld [vmem:[#allocation51_spill] sm:$0xff] }
 0x3f3   : > { %v3589_v49 = vsel %vm416_vm0, %v3492_v9, 0.0  ;;  %v9270_v38 = vmul.f32 %v6240_v44, %v8918_v51  ;;  %v9273_v24 = vmul.f32 %v6240_v44, %v8923_v59  ;;  %v9276_v22 = vmul.f32 %v6240_v44, %v8929_v28 }
 0x3f4   : > { %v3541_v27 = vadd.f32 %v3540_v33, %v3539_v8  ;;  %v3588_v2 = vadd.f32 %v3587_v29, %v3586_v55  ;;  %v4397_v4 = vcombine.low %v9026_v62, %v2439_v41  ;;  %v4398_v42 = vcombine.high %v9026_v62, %v2439_v41 }
 0x3f5   : > { %11225 = vst [vmem:[#allocation20_spill] sm:$0xff] %v9273_v24  ;;  %11226 = vst [vmem:[#allocation33_spill] sm:$0xff] %v9276_v22  ;;  %v2399_v9 = vrot.slane %v9108_v32, 4  ;;  %v3544_v62 = vsel %vm416_vm0, %v3495_v60, 0.0  ;;  %v3591_v41 = vsel %vm416_vm0, %v3494_v10, 0.0  ;;  %v9293_v3 = vrot.slane %v3848_v34, %v8776_v19 }
 0x3f6   : > { %v3543_v28 = vadd.f32 %v3542_v0, %v3541_v27  ;;  %v3590_v44 = vadd.f32 %v3589_v49, %v3588_v2  ;;  %v4405_v8 = vrot.slane %v4397_v4, %v8776_v19  ;;  %v11230_v33 = vcombine.low %v11228_v11, %v11229_v39 }
 0x3f7   : > { %11227 = vst [vmem:[#allocation43_spill] sm:$0xff] %v9293_v3  ;;  %v9304_v29 = vrot.slane %v3850_v12, %v8776_v19  ;;  %v9308_v60 = vsel %vm416_vm0, %v9208_v47, 0.0  ;;  %v9312_v34 = vsel %vm416_vm0, %v9197_v6, 0.0  ;;  %v9317_v49 = vcombine.high %v9159_v48, %v9159_v48 }
 0x3f8   : > { %v3890_v46 = vrot.slane %v11230_v33, %v8776_v19  ;;  %v9299_v18 = vadd.f32 %v3544_v62, %v3543_v28  ;;  %v9301_v0 = vadd.f32 %v3591_v41, %v3590_v44  ;;  %v4413_v55 = vcombine.high %v4405_v8, %v4405_v8  ;;  %11232 = vst [vmem:[#allocation48_spill] sm:$0xff] %v9308_v60 }
 0x3f9   : > { %11231 = vst [vmem:[#allocation44_spill] sm:$0xff] %v9304_v29  ;;  %11233 = vst [vmem:[#allocation51_spill] sm:$0xff] %v9312_v34  ;;  %v4421_v10 = vrot.slane %v4405_v8, %v8776_v19  ;;  %v4412_v27 = vrot.slane %v4398_v42, %v8776_v19  ;;  %v2400_v2 = vadd.f32 %v2399_v9, %v9108_v32  ;;  %6241 = vpow2.f32 %v2340_v54 }
 0x3fa   : > { %11234 = vst [vmem:[#allocation77_spill] sm:$0xff] %v9317_v49  ;;  %v9323_v12 = vcombine.high %v9169_v56, %v9169_v56  ;;  %v4435_v47 = vrot.slane %v4413_v55, %v8776_v19  ;;  %v9328_v6 = vcombine.high %v9251_v40, %v9251_v40  ;;  %v9332_v4 = vcombine.high %v9293_v3, %v9293_v3 }
 0x3fb   : > { %v9336_v42 = vcombine.high %v9254_v15, %v9254_v15  ;;  %v9340_v54 = vcombine.high %v9304_v29, %v9304_v29  ;;  %v9343_v32 = vrot.slane %v3890_v46, %v8776_v19  ;;  %v4443_v8 = vcombine.high %v4421_v10, %v4421_v10 }
 0x3fc   : > { %11235 = vst [vmem:[#allocation78_spill] sm:$0xff] %v9323_v12  ;;  %11236 = vst [vmem:[#allocation79_spill] sm:$0xff] %v9328_v6  ;;  %v4414_v11 = vcombine.high %v4412_v27, %v4412_v27  ;;  %v2401_v39 = vrot.slane %v2400_v2, 2  ;;  %v4445_v55 = vcombine.high %v4435_v47, %v4435_v47  ;;  %v4565_v59 = vrot.slane %v4421_v10, %v10964_v14 }
 0x3fd   : > { %11237 = vst [vmem:[#allocation80_spill] sm:$0xff] %v9332_v4  ;;  %11238 = vst [vmem:[#allocation81_spill] sm:$0xff] %v9336_v42  ;;  %v4573_v44 = vrot.slane %v4435_v47, %v10964_v14  ;;  %v4428_v62 = vrot.slane %v4412_v27, %v8776_v19  ;;  %v4569_v46 = vrot.slane %v4421_v10, %v10965_v7 }
 0x3fe   : > { %11239 = vst [vmem:[#allocation82_spill] sm:$0xff] %v9340_v54  ;;  %11240 = vst [vmem:[#allocation83_spill] sm:$0xff] %v9343_v32  ;;  %v4577_v51 = vrot.slane %v4435_v47, %v10965_v7  ;;  %v4581_v13 = vrot.slane %v4443_v8, %v10964_v14  ;;  %v9376_v27 = vrot.slane %v4414_v11, %v8776_v19 }
 0x3ff   : > { %v2402_v17 = vadd.f32 %v2401_v39, %v2400_v2  ;;  %v4585_v33 = vrot.slane %v4443_v8, %v10965_v7  ;;  %v4589_v10 = vrot.slane %v4445_v55, %v10964_v14  ;;  %v4812_v47 = vmul.f32 %v4565_v59, %v11213_v5 }
 0x400   : > { %v4814_v22 = vmul.f32 %v4573_v44, %v11214_v57  ;;  %v11241_v2 = vcombine.low %v8993_v50, %v9117_v43  ;;  %v11242_v39 = vcombine.high %v8993_v50, %v9117_v43  ;;  %v9398_v8 = vcombine.high %v4428_v62, %v4428_v62 }
 0x401   : > { %v4593_v9 = vrot.slane %v4445_v55, %v10965_v7  ;;  %v4597_v59 = vrot.slane %v4428_v62, %v10964_v14  ;;  %v4813_v44 = vmul.f32 %v4569_v46, %v11125_v20  ;;  %v4815_v41 = vmul.f32 %v4577_v51, %v11217_v35 }
 0x402   : > { %v3128_v11 = vrot.slane %v11241_v2, %v8776_v19  ;;  %v9396_v28 = vrot.slane %v11242_v39, %v8776_v19  ;;  %v4816_v32 = vmul.f32 %v4581_v13, %v11127_v63  ;;  %v4601_v2 = vrot.slane %v4428_v62, %v10965_v7 }
 0x403   : > { %v9386_v52 = vpop.eup %6241  ;;  %v4605_v54 = vrot.slane %v9376_v27, %v10964_v14  ;;  %v2403_v43 = vrot.slane %v2402_v17, 1  ;;  %v4817_v39 = vmul.f32 %v4585_v33, %v11131_v16  ;;  %v4818_v55 = vmul.f32 %v4589_v10, %v11218_v37 }
 0x404   : > { %v2407_v50 = vadd.f32 %v9386_v52, %v9141_v30  ;;  %v4862_v4 = vsel %vm416_vm0, %v4812_v47, 0.0  ;;  %v4863_v46 = vsel %vm416_vm0, %v4814_v22, 0.0  ;;  %v3136_v51 = vcombine.high %v3128_v11, %v3128_v11 }
 0x405   : > { %v4613_v13 = vrot.slane %v9398_v8, %v10964_v14  ;;  %v4819_v62 = vmul.f32 %v4593_v9, %v11133_v36  ;;  %v4864_v29 = vadd.f32 %v4863_v46, %v4862_v4  ;;  %v4820_v6 = vmul.f32 %v4597_v59, %v11219_v25 }
 0x406   : > { %v4865_v3 = vsel %vm416_vm0, %v4816_v32, 0.0  ;;  %v4911_v30 = vsel %vm416_vm0, %v4813_v44, 0.0  ;;  %v4912_v33 = vsel %vm416_vm0, %v4815_v41, 0.0  ;;  %v4821_v10 = vmul.f32 %v4601_v2, %v11223_v53  ;;  %v11243_v32 = vld [vmem:[#allocation46_spill] sm:$0xff] }
 0x407   : > { %v4822_v47 = vmul.f32 %v4605_v54, %v11224_v21  ;;  %v4866_v22 = vadd.f32 %v4865_v3, %v4864_v29  ;;  %v4913_v15 = vadd.f32 %v4912_v33, %v4911_v30  ;;  %v4867_v60 = vsel %vm416_vm0, %v4818_v55, 0.0 }
 0x408   : > { %v4914_v40 = vsel %vm416_vm0, %v4817_v39, 0.0  ;;  %v2404_v9 = vadd.f32 %v2403_v43, %v2402_v17  ;;  %v2408_v4 = vrot.slane %v2407_v50, 4  ;;  %v9426_v59 = vrot.slane %v3128_v11, %v8776_v19 }
 0x409   : > { %v4824_v46 = vmul.f32 %v4613_v13, %v11243_v32  ;;  %v4868_v44 = vadd.f32 %v4867_v60, %v4866_v22  ;;  %v4915_v42 = vadd.f32 %v4914_v40, %v4913_v15  ;;  %v4869_v41 = vsel %vm416_vm0, %v4820_v6, 0.0  ;;  %v11245_v6 = vld [vmem:[#allocation74_spill] sm:$0xff]  ;;  %v11247_v13 = vld [vmem:[#allocation21_spill] sm:$0xff] }
 0x40a   : > { %v4916_v2 = vsel %vm416_vm0, %v4819_v62, 0.0  ;;  %6243 = vrcp.f32 %v2404_v9  ;;  %v2409_v3 = vadd.f32 %v2408_v4, %v2407_v50  ;;  %v3117_v29 = vcombine.high %v9188_v31, %v9188_v31  ;;  %v11248_v62 = vld [vmem:[#allocation38_spill] sm:$0xff] }
 0x40b   : > { %v11244_v17 = vcombine.low %v9029_v58, %v9270_v38  ;;  %v4870_v11 = vadd.f32 %v4869_v41, %v4868_v44  ;;  %v4917_v43 = vadd.f32 %v4916_v2, %v4915_v42  ;;  %v4871_v39 = vsel %vm416_vm0, %v4822_v47, 0.0 }
 0x40c   : > { %v4918_v15 = vsel %vm416_vm0, %v4821_v10, 0.0  ;;  %v2410_v40 = vrot.slane %v2409_v3, 2  ;;  %v3119_v50 = vcombine.high %v11245_v6, %v11245_v6  ;;  %v11249_v30 = vcombine.low %v11247_v13, %v11248_v62 }
 0x40d   : > { %v4455_v54 = vrot.slane %v11244_v17, %v8776_v19  ;;  %v4872_v55 = vadd.f32 %v4871_v39, %v4870_v11  ;;  %v9443_v31 = vadd.f32 %v4918_v15, %v4917_v43  ;;  %v3137_v42 = vcombine.high %v9396_v28, %v9396_v28 }
 0x40e   : > { %v9449_v33 = vrot.slane %v11249_v30, %v8776_v19  ;;  %v4873_v10 = vsel %vm416_vm0, %v4824_v46, 0.0  ;;  %v2411_v47 = vadd.f32 %v2410_v40, %v2409_v3  ;;  %v11250_v22 = vcombine.high %v11247_v13, %v11248_v62  ;;  %v11260_v13 = vld [vmem:[#allocation63_spill] sm:$0xff] }
 0x40f   : > { %11246 = vst [vmem:[#allocation46_spill] sm:$0xff] %v9443_v31  ;;  %v9461_v4 = vrot.slane %v3136_v51, %v8776_v19  ;;  %v9465_v44 = vcombine.high %v9426_v59, %v9426_v59  ;;  %v3282_v41 = vrot.slane %v11245_v6, %v10965_v7  ;;  %v9469_v2 = vadd.f32 %v4873_v10, %v4872_v55 }
 0x410   : > { %v9458_v9 = vrot.slane %v11250_v22, %v8776_v19  ;;  %v3286_v46 = vrot.slane %v3117_v29, %v10964_v14  ;;  %v11252_v3 = vcombine.high %v9029_v58, %v9270_v38  ;;  %v4463_v11 = vcombine.high %v4455_v54, %v4455_v54 }
 0x411   : > { %11251 = vst [vmem:[#allocation74_spill] sm:$0xff] %v9469_v2  ;;  %v2412_v43 = vrot.slane %v2411_v47, 1  ;;  %v9478_v51 = vrot.slane %v9396_v28, %v8776_v19  ;;  %v3290_v39 = vrot.slane %v3117_v29, %v10965_v7  ;;  %v3294_v15 = vrot.slane %v3119_v50, %v10964_v14  ;;  %v11253_v29 = vld [vmem:[#allocation45_spill] sm:$0xff]  ;;  %v11258_v28 = vld [vmem:[#allocation60_spill] sm:$0xff]  ;;  %v11262_v2 = vld [vmem:[#allocation47_spill] sm:$0xff] }
 0x412   : > { %v4462_v17 = vrot.slane %v11252_v3, %v8776_v19  ;;  %v3298_v40 = vrot.slane %v3119_v50, %v10965_v7  ;;  %v3302_v6 = vrot.slane %v9426_v59, %v10964_v14  ;;  %v3306_v55 = vrot.slane %v9426_v59, %v10965_v7  ;;  %v11257_v3 = vld [vmem:[#allocation59_spill] sm:$0xff] }
 0x413   : > { %v4471_v58 = vrot.slane %v4455_v54, %v8776_v19  ;;  %v2413_v38 = vadd.f32 %v2412_v43, %v2411_v47  ;;  %v3496_v62 = vmul.f32 %v3282_v41, %v11253_v29  ;;  %v9495_v50 = vcombine.high %v9376_v27, %v9376_v27  ;;  %v11256_v54 = vld [vmem:[#allocation14_spill] sm:$0xff] }
 0x414   : > { %v6244_v30 = vpop.eup %6243  ;;  %v3497_v10 = vmul.f32 %v3286_v46, %v11243_v32  ;;  %v4464_v22 = vcombine.high %v4462_v17, %v4462_v17  ;;  %v9499_v59 = vrot.slane %v4463_v11, %v8776_v19  ;;  %v3498_v31 = vmul.f32 %v3290_v39, %v11262_v2  ;;  %v11263_v46 = vld [vmem:[#allocation24_spill] sm:$0xff] }
 0x415   : > { %11254 = vst [vmem:[#allocation21_spill] sm:$0xff] %v9495_v50  ;;  %6245 = vrcp.f32 %v2413_v38  ;;  %v9502_v47 = vmul.f32 %v6244_v30, %v11256_v54  ;;  %v9505_v43 = vmul.f32 %v6244_v30, %v11257_v3  ;;  %v9508_v41 = vmul.f32 %v6244_v30, %v11258_v28  ;;  %v11266_v54 = vld [vmem:[#allocation22_spill] sm:$0xff] }
 0x416   : > { %11255 = vst [vmem:[#allocation38_spill] sm:$0xff] %v9499_v59  ;;  %v9511_v60 = vmul.f32 %v6244_v30, %v11260_v13  ;;  %v9515_v12 = vmul.f32 %v3294_v15, %v11263_v46  ;;  %v9518_v11 = vrot.slane %v4462_v17, %v8776_v19  ;;  %v9520_v38 = vcombine.high %v4471_v58, %v4471_v58 }
 0x417   : > { %11259 = vst [vmem:[#allocation14_spill] sm:$0xff] %v9508_v41  ;;  %v9523_v49 = vmul.f32 %v3302_v6, %v11266_v54  ;;  %v4609_v28 = vrot.slane %v9376_v27, %v10965_v7  ;;  %v4617_v13 = vrot.slane %v9398_v8, %v10965_v7  ;;  %v4621_v39 = vrot.slane %v9495_v50, %v10964_v14 }
 0x418   : > { %11261 = vst [vmem:[#allocation59_spill] sm:$0xff] %v9511_v60  ;;  %11264 = vst [vmem:[#allocation60_spill] sm:$0xff] %v9518_v11  ;;  %v9532_v15 = vsel %vm416_vm0, %v3497_v10, 0.0  ;;  %v11267_v17 = vcombine.low %v9032_v23, %v9273_v24  ;;  %v4629_v6 = vrot.slane %v4471_v58, %v10964_v14  ;;  %v4633_v3 = vrot.slane %v4471_v58, %v10965_v7 }
 0x419   : > { %11265 = vst [vmem:[#allocation63_spill] sm:$0xff] %v9520_v38  ;;  %v9543_v27 = vrot.slane %v4464_v22, %v8776_v19  ;;  %v4637_v10 = vrot.slane %v9499_v59, %v10964_v14  ;;  %v3314_v58 = vrot.slane %v9461_v4, %v10965_v7  ;;  %v11270_v22 = vld [vmem:[#allocation34_spill] sm:$0xff]  ;;  %v4823_v23 = vmul.f32 %v4609_v28, %v11253_v29  ;;  %v11273_v38 = vld [vmem:[#allocation36_spill] sm:$0xff] }
 0x41a   : > { %v9538_v30 = vrot.slane %v11267_v17, %v8776_v19  ;;  %v9560_v8 = vmul.f32 %v4617_v13, %v11262_v2  ;;  %v9563_v50 = vmul.f32 %v4621_v39, %v11263_v46  ;;  %v3593_v56 = vsel %vm416_vm0, %v3496_v62, 0.0 }
 0x41b   : > { %11269 = vst [vmem:[#allocation85_spill] sm:$0xff] %v9543_v27  ;;  %v3500_v27 = vmul.f32 %v3298_v40, %v11270_v22  ;;  %v4828_v17 = vmul.f32 %v4629_v6, %v11266_v54  ;;  %v9568_v59 = vmul.f32 %v4633_v3, %v11273_v38  ;;  %v3594_v11 = vadd.f32 %v3593_v56, %v9301_v0  ;;  %v11275_v40 = vld [vmem:[#allocation25_spill] sm:$0xff]  ;;  %v11277_v3 = vld [vmem:[#allocation31_spill] sm:$0xff]  ;;  %v11278_v0 = vld [vmem:[#allocation64_spill] sm:$0xff] }
 0x41c   : > { %11268 = vst [vmem:[#allocation84_spill] sm:$0xff] %v9538_v30  ;;  %11271 = vst [vmem:[#allocation86_spill] sm:$0xff] %v9560_v8  ;;  %v3502_v30 = vmul.f32 %v3306_v55, %v11273_v38  ;;  %v9573_v24 = vmul.f32 %v4637_v10, %v11275_v40  ;;  %v9576_v28 = vrot.slane %v3137_v42, %v8776_v19  ;;  %v3595_v62 = vsel %vm416_vm0, %v3498_v31, 0.0  ;;  %v11280_v42 = vld [vmem:[#allocation35_spill] sm:$0xff]  ;;  %v11288_v22 = vld [vmem:[#allocation18_spill] sm:$0xff] }
 0x41d   : > { %11272 = vst [vmem:[#allocation87_spill] sm:$0xff] %v9563_v50  ;;  %11274 = vst [vmem:[#allocation88_spill] sm:$0xff] %v9568_v59  ;;  %v3186_v13 = vcombine.high %v9449_v33, %v9449_v33  ;;  %v3187_v6 = vcombine.high %v9458_v9, %v9458_v9  ;;  %v3504_v50 = vmul.f32 %v3314_v58, %v11277_v3  ;;  %v3597_v56 = vsel %vm416_vm0, %v3500_v27, 0.0 }
 0x41e   : > { %11276 = vst [vmem:[#allocation25_spill] sm:$0xff] %v9573_v24  ;;  %v3596_v55 = vadd.f32 %v3595_v62, %v3594_v11  ;;  %v11279_v24 = vld [vmem:[#allocation68_spill] sm:$0xff]  ;;  %v9597_v31 = vrot.slane %v9449_v33, %v8776_v19  ;;  %v9601_v11 = vrot.slane %v9458_v9, %v8776_v19  ;;  %v3599_v58 = vsel %vm416_vm0, %v3502_v30, 0.0 }
 0x41f   : > { %v6246_v39 = vpop.eup %6245  ;;  %v9630_v9 = vsel %vm416_vm0, %v4823_v23, 0.0 }
 0x420   : > { %v2447_v10 = vmul.f32 %v6246_v39, %v11278_v0  ;;  %v9587_v59 = vmul.f32 %v6246_v39, %v11279_v24  ;;  %v9590_v8 = vmul.f32 %v6246_v39, %v11280_v42  ;;  %v9593_v38 = vmul.f32 %v6246_v39, %v9386_v52  ;;  %11284 = vst [vmem:[#allocation89_spill] sm:$0xff] %v9630_v9 }
 0x421   : > { %v3598_v27 = vadd.f32 %v3597_v56, %v3596_v55  ;;  %v9615_v39 = vrot.slane %v3186_v13, %v8776_v19  ;;  %v9623_v56 = vrot.slane %v3187_v6, %v8776_v19  ;;  %v9627_v42 = vsel %vm416_vm0, %v4828_v17, 0.0 }
 0x422   : > { %11281 = vst [vmem:[#allocation64_spill] sm:$0xff] %v9590_v8  ;;  %11282 = vst [vmem:[#allocation68_spill] sm:$0xff] %v9593_v38  ;;  %v5061_v24 = vcombine.low %v9502_v47, %v2447_v10  ;;  %v5062_v62 = vcombine.high %v9502_v47, %v2447_v10  ;;  %v9620_v47 = vcombine.high %v9461_v4, %v9461_v4  ;;  %v3601_v10 = vsel %vm416_vm0, %v3504_v50, 0.0 }
 0x423   : > { %v3600_v30 = vadd.f32 %v3599_v58, %v3598_v27  ;;  %11283 = vst [vmem:[#allocation35_spill] sm:$0xff] %v9627_v42  ;;  %v11285_v13 = vcombine.low %v8996_v61, %v9120_v1  ;;  %v9641_v6 = vcombine.high %v9478_v51, %v9478_v51  ;;  %v9645_v50 = vcombine.high %v9576_v28, %v9576_v28 }
 0x424   : > { %v5069_v55 = vrot.slane %v5061_v24, %v8776_v19  ;;  %v5076_v23 = vrot.slane %v5062_v62, %v8776_v19  ;;  %v9650_v17 = vcombine.high %v9597_v31, %v9597_v31  ;;  %v9654_v61 = vcombine.high %v9601_v11, %v9601_v11 }
 0x425   : > { %v3227_v27 = vrot.slane %v11285_v13, %v8776_v19  ;;  %v9636_v58 = vadd.f32 %v3601_v10, %v3600_v30  ;;  %v9658_v1 = vcombine.high %v9615_v39, %v9615_v39  ;;  %v3322_v62 = vrot.slane %v9465_v44, %v10965_v7 }
 0x426   : > { %v5077_v24 = vcombine.high %v5069_v55, %v5069_v55  ;;  %v5085_v33 = vrot.slane %v5069_v55, %v8776_v19  ;;  %v9663_v55 = vcombine.high %v9623_v56, %v9623_v56  ;;  %v3330_v52 = vrot.slane %v9620_v47, %v10965_v7 }
 0x427   : > { %v9670_v13 = vrot.slane %v3227_v27, %v8776_v19  ;;  %v3338_v0 = vrot.slane %v9478_v51, %v10965_v7  ;;  %v5078_v10 = vcombine.high %v5076_v23, %v5076_v23  ;;  %v5092_v27 = vrot.slane %v5076_v23, %v8776_v19 }
 0x428   : > { %v5099_v30 = vrot.slane %v5077_v24, %v8776_v19  ;;  %11286 = vst [vmem:[#allocation90_spill] sm:$0xff] %v9663_v55  ;;  %v5107_v38 = vcombine.high %v5085_v33, %v5085_v33  ;;  %v5229_v2 = vrot.slane %v5085_v33, %v10964_v14  ;;  %v5233_v24 = vrot.slane %v5085_v33, %v10965_v7 }
 0x429   : > { %v9707_v23 = vrot.slane %v5078_v10, %v8776_v19  ;;  %v9719_v3 = vcombine.high %v5092_v27, %v5092_v27  ;;  %v3426_v9 = vrot.slane %v9663_v55, %v10965_v7  ;;  %v5261_v54 = vrot.slane %v5092_v27, %v10964_v14 }
 0x42a   : > { %v5109_v46 = vcombine.high %v5099_v30, %v5099_v30  ;;  %v5237_v60 = vrot.slane %v5099_v30, %v10964_v14  ;;  %v5241_v48 = vrot.slane %v5099_v30, %v10965_v7  ;;  %v5245_v26 = vrot.slane %v5107_v38, %v10964_v14 }
 0x42b   : > { %v5249_v33 = vrot.slane %v5107_v38, %v10965_v7  ;;  %v5476_v45 = vmul.f32 %v5229_v2, %v11213_v5  ;;  %v5477_v38 = vmul.f32 %v5233_v24, %v11125_v20  ;;  %v11287_v2 = vld [vmem:[#allocation26_spill] sm:$0xff]  ;;  %v3508_v29 = vmul.f32 %v3330_v52, %v11288_v22 }
 0x42c   : > { %v5253_v30 = vrot.slane %v5109_v46, %v10964_v14  ;;  %v5478_v42 = vmul.f32 %v5237_v60, %v11214_v57  ;;  %v5257_v10 = vrot.slane %v5109_v46, %v10965_v7  ;;  %v5479_v34 = vmul.f32 %v5241_v48, %v11217_v35  ;;  %v11289_v35 = vld [vmem:[#allocation56_spill] sm:$0xff] }
 0x42d   : > { %v5480_v5 = vmul.f32 %v5245_v26, %v11127_v63  ;;  %v5265_v57 = vrot.slane %v5092_v27, %v10965_v7  ;;  %v5269_v60 = vrot.slane %v9707_v23, %v10964_v14  ;;  %v3506_v46 = vmul.f32 %v3322_v62, %v11287_v2 }
 0x42e   : > { %v5481_v8 = vmul.f32 %v5249_v33, %v11131_v16  ;;  %v5482_v55 = vmul.f32 %v5253_v30, %v11218_v37  ;;  %v5526_v41 = vsel %vm416_vm0, %v5476_v45, 0.0  ;;  %v5527_v20 = vsel %vm416_vm0, %v5478_v42, 0.0 }
 0x42f   : > { %v5277_v63 = vrot.slane %v9719_v3, %v10964_v14  ;;  %v5483_v48 = vmul.f32 %v5257_v10, %v11133_v36  ;;  %v5528_v26 = vadd.f32 %v5527_v20, %v5526_v41  ;;  %v3510_v24 = vmul.f32 %v3338_v0, %v11289_v35  ;;  %v11290_v10 = vld [vmem:[#allocation40_spill] sm:$0xff] }
 0x430   : > { %v5484_v62 = vmul.f32 %v5261_v54, %v11219_v25  ;;  %v5529_v52 = vsel %vm416_vm0, %v5480_v5, 0.0  ;;  %v5575_v16 = vsel %vm416_vm0, %v5477_v38, 0.0  ;;  %v5576_v37 = vsel %vm416_vm0, %v5479_v34, 0.0 }
 0x431   : > { %v5485_v45 = vmul.f32 %v5265_v57, %v11223_v53  ;;  %v5530_v27 = vadd.f32 %v5529_v52, %v5528_v26  ;;  %v5577_v42 = vadd.f32 %v5576_v37, %v5575_v16  ;;  %v3603_v33 = vsel %vm416_vm0, %v3506_v46, 0.0  ;;  %v11292_v46 = vld [vmem:[#allocation52_spill] sm:$0xff]  ;;  %v11295_v16 = vld [vmem:[#allocation53_spill] sm:$0xff] }
 0x432   : > { %v5486_v30 = vmul.f32 %v5269_v60, %v11224_v21  ;;  %v5531_v36 = vsel %vm416_vm0, %v5482_v55, 0.0  ;;  %v5578_v41 = vsel %vm416_vm0, %v5481_v8, 0.0  ;;  %v3604_v25 = vadd.f32 %v3603_v33, %v9636_v58 }
 0x433   : > { %v5532_v54 = vadd.f32 %v5531_v36, %v5530_v27  ;;  %v5579_v0 = vadd.f32 %v5578_v41, %v5577_v42  ;;  %v11291_v34 = vrot.slane %v9576_v28, %v10965_v7  ;;  %v3605_v53 = vsel %vm416_vm0, %v3508_v29, 0.0 }
 0x434   : > { %v5488_v5 = vmul.f32 %v5277_v63, %v11243_v32  ;;  %v5533_v57 = vsel %vm416_vm0, %v5484_v62, 0.0  ;;  %v5580_v21 = vsel %vm416_vm0, %v5483_v48, 0.0  ;;  %v3606_v55 = vadd.f32 %v3605_v53, %v3604_v25  ;;  %v11302_v53 = vld [vmem:[#allocation19_spill] sm:$0xff] }
 0x435   : > { %v3512_v38 = vmul.f32 %v11291_v34, %v11290_v10  ;;  %v5534_v60 = vadd.f32 %v5533_v57, %v5532_v54  ;;  %v5581_v8 = vadd.f32 %v5580_v21, %v5579_v0  ;;  %v11293_v58 = vrot.slane %v9641_v6, %v10965_v7  ;;  %v11300_v54 = vld [vmem:[#allocation55_spill] sm:$0xff]  ;;  %v11304_v21 = vld [vmem:[#allocation10_spill] sm:$0xff] }
 0x436   : > { %v3607_v26 = vsel %vm416_vm0, %v3510_v24, 0.0  ;;  %v5535_v52 = vsel %vm416_vm0, %v5486_v30, 0.0  ;;  %v5582_v29 = vsel %vm416_vm0, %v5485_v45, 0.0  ;;  %v11296_v37 = vrot.slane %v9645_v50, %v10965_v7  ;;  %v11297_v45 = vld [vmem:[#allocation54_spill] sm:$0xff] }
 0x437   : > { %v3514_v20 = vmul.f32 %v11293_v58, %v11292_v46  ;;  %v3608_v63 = vadd.f32 %v3607_v26, %v3606_v55  ;;  %v5536_v62 = vadd.f32 %v5535_v52, %v5534_v60  ;;  %v9770_v48 = vadd.f32 %v5582_v29, %v5581_v8  ;;  %v11306_v8 = vld [vmem:[#allocation61_spill] sm:$0xff]  ;;  %v11308_v52 = vld [vmem:[#allocation62_spill] sm:$0xff] }
 0x438   : > { %v3516_v27 = vmul.f32 %v11296_v37, %v11295_v16  ;;  %v3609_v42 = vsel %vm416_vm0, %v3512_v38, 0.0  ;;  %v5537_v24 = vsel %vm416_vm0, %v5488_v5, 0.0  ;;  %v3434_v33 = vrot.slane %v9670_v13, %v10965_v7  ;;  %v11310_v37 = vld [vmem:[#allocation65_spill] sm:$0xff] }
 0x439   : > { %11294 = vst [vmem:[#allocation91_spill] sm:$0xff] %v9770_v48  ;;  %v11298_v30 = vrot.slane %v9597_v31, %v10965_v7  ;;  %v3610_v41 = vadd.f32 %v3609_v42, %v3608_v63  ;;  %v9784_v25 = vadd.f32 %v5537_v24, %v5536_v62  ;;  %v11301_v0 = vrot.slane %v9615_v39, %v10965_v7  ;;  %v11312_v24 = vld [vmem:[#allocation66_spill] sm:$0xff] }
 0x43a   : > { %v11303_v38 = vrot.slane %v9650_v17, %v10965_v7  ;;  %v3611_v57 = vsel %vm416_vm0, %v3514_v20, 0.0  ;;  %v11305_v55 = vrot.slane %v9658_v1, %v10965_v7  ;;  %v11307_v58 = vrot.slane %v9601_v11, %v10965_v7 }
 0x43b   : > { %v3518_v36 = vmul.f32 %v11298_v30, %v11297_v45  ;;  %11299 = vst [vmem:[#allocation54_spill] sm:$0xff] %v9784_v25  ;;  %v3520_v34 = vmul.f32 %v11301_v0, %v11300_v54  ;;  %v11309_v29 = vrot.slane %v9623_v56, %v10965_v7  ;;  %v3612_v62 = vadd.f32 %v3611_v57, %v3610_v41 }
 0x43c   : > { %v3522_v5 = vmul.f32 %v11303_v38, %v11302_v53  ;;  %v3524_v60 = vmul.f32 %v11305_v55, %v11304_v21  ;;  %v3526_v26 = vmul.f32 %v11307_v58, %v11306_v8  ;;  %v11311_v20 = vrot.slane %v9654_v61, %v10965_v7  ;;  %v11313_v55 = vld [vmem:[#allocation49_spill] sm:$0xff] }
 0x43d   : > { %v3528_v63 = vmul.f32 %v11309_v29, %v11308_v52  ;;  %v9812_v30 = vmul.f32 %v3426_v9, %v11312_v24  ;;  %v3613_v0 = vsel %vm416_vm0, %v3516_v27, 0.0  ;;  %v3547_v38 = vadd.f32 %v9532_v15, %v9299_v18 }
 0x43e   : > { %v3530_v42 = vmul.f32 %v11311_v20, %v11310_v37  ;;  %v3534_v58 = vmul.f32 %v3434_v33, %v11313_v55  ;;  %v3614_v32 = vadd.f32 %v3613_v0, %v3612_v62  ;;  %v11314_v41 = vrot.slane %v9461_v4, %v10964_v14  ;;  %v11317_v0 = vld [vmem:[#allocation30_spill] sm:$0xff] }
 0x43f   : > { %v3548_v29 = vsel %vm416_vm0, %v9515_v12, 0.0  ;;  %v11315_v9 = vcombine.low %v9505_v43, %v9587_v59  ;;  %v11316_v18 = vcombine.high %v9505_v43, %v9587_v59  ;;  %v3615_v27 = vsel %vm416_vm0, %v3518_v36, 0.0 }
 0x440   : > { %v3503_v57 = vmul.f32 %v11314_v41, %v11275_v40  ;;  %v3549_v33 = vadd.f32 %v3548_v29, %v3547_v38  ;;  %v3616_v62 = vadd.f32 %v3615_v27, %v3614_v32  ;;  %v3334_v4 = vrot.slane %v9478_v51, %v10964_v14  ;;  %v11319_v51 = vld [vmem:[#allocation37_spill] sm:$0xff] }
 0x441   : > { %v5119_v20 = vrot.slane %v11315_v9, %v8776_v19  ;;  %v5126_v15 = vrot.slane %v11316_v18, %v8776_v19  ;;  %v11318_v12 = vrot.slane %v9465_v44, %v10964_v14  ;;  %v3550_v9 = vsel %vm416_vm0, %v9523_v49, 0.0 }
 0x442   : > { %v3617_v25 = vsel %vm416_vm0, %v3520_v34, 0.0  ;;  %v3619_v59 = vsel %vm416_vm0, %v3522_v5, 0.0  ;;  %v3621_v43 = vsel %vm416_vm0, %v3524_v60, 0.0  ;;  %v3551_v36 = vadd.f32 %v3550_v9, %v3549_v33  ;;  %v11321_v60 = vld [vmem:[#allocation14_spill] sm:$0xff]  ;;  %v11322_v33 = vld [vmem:[#allocation64_spill] sm:$0xff] }
 0x443   : > { %v3505_v41 = vmul.f32 %v11318_v12, %v11317_v0  ;;  %v3618_v38 = vadd.f32 %v3617_v25, %v3616_v62  ;;  %v3342_v32 = vrot.slane %v9576_v28, %v10964_v14  ;;  %v11320_v29 = vrot.slane %v9620_v47, %v10964_v14  ;;  %v11325_v12 = vld [vmem:[#allocation67_spill] sm:$0xff] }
 0x444   : > { %v3552_v18 = vsel %vm416_vm0, %v3503_v57, 0.0  ;;  %v5127_v27 = vcombine.high %v5119_v20, %v5119_v20  ;;  %v5128_v49 = vcombine.high %v5126_v15, %v5126_v15  ;;  %v9852_v34 = vrot.slane %v5119_v20, %v8776_v19 }
 0x445   : > { %v3507_v44 = vmul.f32 %v11320_v29, %v11319_v51  ;;  %v3553_v5 = vadd.f32 %v3552_v18, %v3551_v36  ;;  %v11323_v25 = vcombine.low %v11321_v60, %v11322_v33  ;;  %v3620_v28 = vadd.f32 %v3619_v59, %v3618_v38 }
 0x446   : > { %v3509_v9 = vmul.f32 %v3334_v4, %v11325_v12  ;;  %v3554_v47 = vsel %vm416_vm0, %v3505_v41, 0.0  ;;  %v9864_v57 = vcombine.high %v9707_v23, %v9707_v23  ;;  %v3623_v29 = vsel %vm416_vm0, %v3526_v26, 0.0 }
 0x447   : > { %v9858_v62 = vrot.slane %v11323_v25, %v8776_v19  ;;  %v3625_v20 = vsel %vm416_vm0, %v3528_v63, 0.0  ;;  %v3555_v36 = vadd.f32 %v3554_v47, %v3553_v5  ;;  %v9869_v18 = vrot.slane %v5126_v15, %v8776_v19  ;;  %v11327_v25 = vld [vmem:[#allocation23_spill] sm:$0xff] }
 0x448   : > { %v3622_v48 = vadd.f32 %v3621_v43, %v3620_v28  ;;  %v3556_v59 = vsel %vm416_vm0, %v3507_v44, 0.0  ;;  %v9874_v4 = vrot.slane %v5127_v27, %v8776_v19  ;;  %v9877_v41 = vrot.slane %v5128_v49, %v8776_v19  ;;  %v11330_v43 = vld [vmem:[#allocation29_spill] sm:$0xff]  ;;  %v11334_v49 = vld [vmem:[#allocation34_spill] sm:$0xff] }
 0x449   : > { %11324 = vst [vmem:[#allocation10_spill] sm:$0xff] %v9858_v62  ;;  %11326 = vst [vmem:[#allocation61_spill] sm:$0xff] %v9869_v18  ;;  %v3511_v62 = vmul.f32 %v3342_v32, %v11327_v25  ;;  %v9881_v26 = vcombine.high %v9852_v34, %v9852_v34  ;;  %v3557_v63 = vadd.f32 %v3556_v59, %v3555_v36  ;;  %v3558_v27 = vsel %vm416_vm0, %v3509_v9, 0.0  ;;  %v11335_v28 = vld [vmem:[#allocation50_spill] sm:$0xff] }
 0x44a   : > { %11328 = vst [vmem:[#allocation62_spill] sm:$0xff] %v9877_v41  ;;  %v3624_v38 = vadd.f32 %v3623_v29, %v3622_v48  ;;  %v3366_v15 = vrot.slane %v9597_v31, %v10964_v14  ;;  %v11331_v32 = vrot.slane %v9641_v6, %v10964_v14  ;;  %v3374_v31 = vrot.slane %v9615_v39, %v10964_v14  ;;  %v11332_v29 = vld [vmem:[#allocation27_spill] sm:$0xff]  ;;  %v11337_v39 = vld [vmem:[#allocation28_spill] sm:$0xff] }
 0x44b   : > { %11329 = vst [vmem:[#allocation65_spill] sm:$0xff] %v9881_v26  ;;  %v3559_v48 = vadd.f32 %v3558_v27, %v3557_v63  ;;  %v11333_v6 = vrot.slane %v9645_v50, %v10964_v14  ;;  %v3560_v9 = vsel %vm416_vm0, %v3511_v62, 0.0  ;;  %v11338_v50 = vld [vmem:[#allocation17_spill] sm:$0xff]  ;;  %v3629_v62 = vsel %vm416_vm0, %v9812_v30, 0.0 }
 0x44c   : > { %v3513_v44 = vmul.f32 %v11331_v32, %v11330_v43  ;;  %v3626_v47 = vadd.f32 %v3625_v20, %v3624_v38  ;;  %v3627_v32 = vsel %vm416_vm0, %v3530_v42, 0.0  ;;  %v11336_v20 = vrot.slane %v11335_v28, %v10965_v7  ;;  %v11341_v28 = vld [vmem:[#allocation41_spill] sm:$0xff] }
 0x44d   : > { %v3515_v36 = vmul.f32 %v11333_v6, %v11332_v29  ;;  %v3561_v5 = vadd.f32 %v3560_v9, %v3559_v48  ;;  %v3517_v27 = vmul.f32 %v3366_v15, %v11337_v39  ;;  %v11339_v6 = vld [vmem:[#allocation51_spill] sm:$0xff]  ;;  %v3631_v59 = vsel %vm416_vm0, %v3534_v58, 0.0  ;;  %v11340_v48 = vld [vmem:[#allocation57_spill] sm:$0xff] }
 0x44e   : > { %v4163_v63 = vmul.f32 %v11336_v20, %v11334_v49  ;;  %v3628_v38 = vadd.f32 %v3627_v32, %v3626_v47  ;;  %v3562_v41 = vsel %vm416_vm0, %v3513_v44, 0.0  ;;  %v4257_v60 = vadd.f32 %v11339_v6, %v11338_v50  ;;  %v11342_v50 = vld [vmem:[#allocation31_spill] sm:$0xff]  ;;  %v11343_v6 = vld [vmem:[#allocation70_spill] sm:$0xff] }
 0x44f   : > { %v3563_v42 = vadd.f32 %v3562_v41, %v3561_v5  ;;  %v4258_v9 = vsel %vm416_vm0, %v11340_v48, 0.0  ;;  %v3519_v20 = vmul.f32 %v3374_v31, %v11341_v28  ;;  %v3564_v47 = vsel %vm416_vm0, %v3515_v36, 0.0  ;;  %v11345_v5 = vld [vmem:[#allocation39_spill] sm:$0xff] }
 0x450   : > { %v3630_v33 = vadd.f32 %v3629_v62, %v3628_v38  ;;  %v4259_v15 = vadd.f32 %v4258_v9, %v4257_v60  ;;  %v3398_v44 = vrot.slane %v9601_v11, %v10964_v14  ;;  %v11344_v30 = vrot.slane %v11343_v6, %v10965_v7 }
 0x451   : > { %v3565_v32 = vadd.f32 %v3564_v47, %v3563_v42  ;;  %v4260_v58 = vsel %vm416_vm0, %v4163_v63, 0.0  ;;  %v11346_v38 = vrot.slane %v9650_v17, %v10964_v14  ;;  %v3566_v36 = vsel %vm416_vm0, %v3517_v27, 0.0  ;;  %v11347_v42 = vld [vmem:[#allocation72_spill] sm:$0xff]  ;;  %v11349_v47 = vld [vmem:[#allocation75_spill] sm:$0xff]  ;;  %v11350_v17 = vld [vmem:[#allocation9_spill] sm:$0xff] }
 0x452   : > { %v4167_v19 = vmul.f32 %v11344_v30, %v11342_v50  ;;  %v3632_v41 = vadd.f32 %v3631_v59, %v3630_v33  ;;  %v4261_v60 = vadd.f32 %v4260_v58, %v4259_v15  ;;  %v3406_v11 = vrot.slane %v9623_v56, %v10964_v14  ;;  %v11352_v30 = vld [vmem:[#allocation13_spill] sm:$0xff]  ;;  %v11358_v59 = vld [vmem:[#allocation8_spill] sm:$0xff] }
 0x453   : > { %v3521_v31 = vmul.f32 %v11346_v38, %v11345_v5  ;;  %v3567_v62 = vadd.f32 %v3566_v36, %v3565_v32  ;;  %v11348_v48 = vrot.slane %v11347_v42, %v10965_v7  ;;  %v4262_v33 = vsel %vm416_vm0, %v11349_v47, 0.0 }
 0x454   : > { %5890 = vmatprep.subr.msk.mxu0 %vm416_vm0, %v3632_v41  ;;  %v11351_v63 = vrot.slane %v9658_v1, %v10964_v14  ;;  %v3568_v56 = vsel %vm416_vm0, %v3519_v20, 0.0  ;;  %v4263_v15 = vadd.f32 %v4262_v33, %v4261_v60  ;;  %v11353_v58 = vrot.slane %v11352_v30, %v10965_v7  ;;  %v11355_v60 = vld [vmem:[#allocation6_spill] sm:$0xff] }
 0x455   : > { %v4169_v9 = vmul.f32 %v11348_v48, %v11287_v2  ;;  %v3569_v6 = vadd.f32 %v3568_v56, %v3567_v62  ;;  %v4264_v36 = vsel %vm416_vm0, %v4167_v19, 0.0  ;;  %v11354_v48 = vld [vmem:[#allocation7_spill] sm:$0xff]  ;;  %v3570_v47 = vsel %vm416_vm0, %v3521_v31, 0.0  ;;  %v11356_v62 = vld [vmem:[#allocation69_spill] sm:$0xff]  ;;  %v11365_v2 = vld [vmem:[#allocation12_spill] sm:$0xff] }
 0x456   : > { %v3523_v27 = vmul.f32 %v11351_v63, %v11350_v17  ;;  %v4171_v38 = vmul.f32 %v11353_v58, %v11288_v22  ;;  %v3525_v1 = vmul.f32 %v3398_v44, %v11354_v48  ;;  %v4265_v20 = vadd.f32 %v4264_v36, %v4263_v15  ;;  %v11360_v22 = vld [vmem:[#allocation11_spill] sm:$0xff]  ;;  %v11361_v44 = vld [vmem:[#allocation90_spill] sm:$0xff] }
 0x457   : > { %v3527_v33 = vmul.f32 %v3406_v11, %v11355_v60  ;;  %v3571_v63 = vadd.f32 %v3570_v47, %v3569_v6  ;;  %v11357_v56 = vrot.slane %v11356_v62, %v10965_v7  ;;  %v4266_v58 = vsel %vm416_vm0, %v4169_v9, 0.0 }
 0x458   : > { %v11359_v19 = vrot.slane %v9654_v61, %v10964_v14  ;;  %v11362_v31 = vrot.slane %v11361_v44, %v10964_v14  ;;  %v3572_v11 = vsel %vm416_vm0, %v3523_v27, 0.0  ;;  %v4267_v6 = vadd.f32 %v4266_v58, %v4265_v20 }
 0x459   : > { %v4173_v32 = vmul.f32 %v11357_v56, %v11289_v35  ;;  %v3573_v47 = vadd.f32 %v3572_v11, %v3571_v63  ;;  %v11363_v56 = vld [vmem:[#allocation71_spill] sm:$0xff]  ;;  %v4268_v61 = vsel %vm416_vm0, %v4171_v38, 0.0  ;;  %v11366_v44 = vrot.slane %v9670_v13, %v10964_v14  ;;  %v11367_v11 = vld [vmem:[#allocation77_spill] sm:$0xff] }
 0x45a   : > { %v3529_v41 = vmul.f32 %v11359_v19, %v11358_v59  ;;  %v3531_v15 = vmul.f32 %v11362_v31, %v11360_v22  ;;  %v11364_v9 = vrot.slane %v11363_v56, %v10965_v7  ;;  %v3574_v20 = vsel %vm416_vm0, %v3525_v1, 0.0  ;;  %v11369_v13 = vld [vmem:[#allocation73_spill] sm:$0xff] }
 0x45b   : > { %v3533_v27 = vmul.f32 %v11366_v44, %v11365_v2  ;;  %v4269_v58 = vadd.f32 %v4268_v61, %v4267_v6  ;;  %v3575_v31 = vadd.f32 %v3574_v20, %v3573_v47  ;;  %v3576_v63 = vsel %vm416_vm0, %v3527_v33, 0.0  ;;  %v11370_v6 = vld [vmem:[#allocation78_spill] sm:$0xff]  ;;  %v11372_v20 = vld [vmem:[#allocation32_spill] sm:$0xff] }
 0x45c   : > { %v4175_v35 = vmul.f32 %v11364_v9, %v11290_v10  ;;  %v11368_v9 = vrot.slane %v11367_v11, %v10965_v7  ;;  %v4270_v38 = vsel %vm416_vm0, %v4173_v32, 0.0  ;;  %v3578_v19 = vsel %vm416_vm0, %v3529_v41, 0.0  ;;  %v11373_v41 = vld [vmem:[#allocation81_spill] sm:$0xff] }
 0x45d   : > { %v3580_v26 = vsel %vm416_vm0, %v3531_v15, 0.0  ;;  %v4271_v10 = vadd.f32 %v4270_v38, %v4269_v58  ;;  %v4211_v44 = vsel %vm416_vm0, %v11369_v13, 0.0  ;;  %v3577_v1 = vadd.f32 %v3576_v63, %v3575_v31  ;;  %v11375_v38 = vld [vmem:[#allocation15_spill] sm:$0xff] }
 0x45e   : > { %v4177_v36 = vmul.f32 %v11368_v9, %v11292_v46  ;;  %v11371_v33 = vrot.slane %v11370_v6, %v10965_v7  ;;  %v4272_v61 = vsel %vm416_vm0, %v4175_v35, 0.0  ;;  %v4212_v9 = vadd.f32 %v4211_v44, %v11372_v20  ;;  %v11377_v44 = vld [vmem:[#allocation48_spill] sm:$0xff] }
 0x45f   : > { %v3582_v32 = vsel %vm416_vm0, %v3533_v27, 0.0  ;;  %v4057_v46 = vrot.slane %v11373_v41, %v10965_v7  ;;  %v4273_v15 = vadd.f32 %v4272_v61, %v4271_v10  ;;  %v11374_v58 = vrot.slane %v11347_v42, %v10964_v14  ;;  %v11379_v61 = vld [vmem:[#allocation76_spill] sm:$0xff] }
 0x460   : > { %v4179_v47 = vmul.f32 %v11371_v33, %v11295_v16  ;;  %v3579_v63 = vadd.f32 %v3578_v19, %v3577_v1  ;;  %v11376_v13 = vrot.slane %v11375_v38, %v10965_v7  ;;  %v4274_v35 = vsel %vm416_vm0, %v4177_v36, 0.0 }
 0x461   : > { %v4168_v31 = vmul.f32 %v11374_v58, %v11317_v0  ;;  %v4214_v20 = vadd.f32 %v11377_v44, %v4212_v9  ;;  %v4275_v27 = vadd.f32 %v4274_v35, %v4273_v15  ;;  %v4005_v16 = vrot.slane %v11363_v56, %v10964_v14  ;;  %v11380_v58 = vld [vmem:[#allocation16_spill] sm:$0xff]  ;;  %v11382_v35 = vld [vmem:[#allocation43_spill] sm:$0xff] }
 0x462   : > { %v4181_v33 = vmul.f32 %v11376_v13, %v11297_v45  ;;  %v11378_v10 = vrot.slane %v11352_v30, %v10964_v14  ;;  %v4215_v19 = vsel %vm416_vm0, %v11379_v61, 0.0  ;;  %v3581_v1 = vadd.f32 %v3580_v26, %v3579_v63  ;;  %v3633_v63 = vld [vmem:[%s10645_s5] sm:$0xf] }
 0x463   : > { %v11381_v13 = vrot.slane %v11380_v58, %v10965_v7  ;;  %v4276_v9 = vsel %vm416_vm0, %v4179_v47, 0.0  ;;  %v4216_v15 = vadd.f32 %v4215_v19, %v4214_v20  ;;  %v4065_v56 = vrot.slane %v11382_v35, %v10965_v7 }
 0x464   : > { %v4170_v42 = vmul.f32 %v11378_v10, %v11319_v51  ;;  %v4277_v44 = vadd.f32 %v4276_v9, %v4275_v27  ;;  %v11383_v30 = vrot.slane %v11356_v62, %v10964_v14  ;;  %v4217_v61 = vsel %vm416_vm0, %v4168_v31, 0.0  ;;  %v11387_v31 = vld [vmem:[#allocation42_spill] sm:$0xff] }
 0x465   : > { %v4183_v36 = vmul.f32 %v11381_v13, %v11300_v54  ;;  %v3583_v26 = vadd.f32 %v3582_v32, %v3581_v1  ;;  %v11384_v13 = vld [vmem:[#allocation79_spill] sm:$0xff]  ;;  %v4278_v19 = vsel %vm416_vm0, %v4181_v33, 0.0  ;;  %v4218_v27 = vadd.f32 %v4217_v61, %v4216_v15  ;;  %v11388_v1 = vld [vmem:[#allocation44_spill] sm:$0xff] }
 0x466   : > { %v4172_v10 = vmul.f32 %v11383_v30, %v11325_v12  ;;  %v11385_v47 = vrot.slane %v11384_v13, %v10965_v7  ;;  %v4279_v9 = vadd.f32 %v4278_v19, %v4277_v44  ;;  %v4174_v54 = vmul.f32 %v4005_v16, %v11327_v25  ;;  %v11386_v30 = vld [vmem:[#allocation20_spill] sm:$0xff] }
 0x467   : > { %v4219_v62 = vsel %vm416_vm0, %v4170_v42, 0.0  ;;  %5891 = vmatpush1.msk.msra.mxu0 %vm416_vm0, %v3583_v26  ;;  %v4073_v12 = vrot.slane %v11388_v1, %v10965_v7  ;;  %v4187_v51 = vmul.f32 %v4057_v46, %v11304_v21  ;;  %v4029_v16 = vrot.slane %v11375_v38, %v10964_v14  ;;  %v11390_v61 = vld [vmem:[#allocation80_spill] sm:$0xff] }
 0x468   : > { %v4185_v20 = vmul.f32 %v11385_v47, %v11302_v53  ;;  %v4280_v47 = vsel %vm416_vm0, %v4183_v36, 0.0  ;;  %v4220_v53 = vadd.f32 %v4219_v62, %v4218_v27  ;;  %5892 = vmatmul.mubr.msk.f32.vlgmr.msra.gmra.mrb[48].mxu0 %vm391_vm1, %v3633_v63  ;;  %v11389_v42 = vrot.slane %v11367_v11, %v10964_v14  ;;  %v11393_v62 = vld [vmem:[#allocation82_spill] sm:$0xff] }
 0x469   : > { %v4281_v33 = vadd.f32 %v4280_v47, %v4279_v9  ;;  %v4221_v44 = vsel %vm416_vm0, %v4172_v10, 0.0  ;;  %v4081_v26 = vrot.slane %v11390_v61, %v10965_v7  ;;  %v4189_v46 = vmul.f32 %v4065_v56, %v11306_v8 }
 0x46a   : > { %v4176_v15 = vmul.f32 %v11389_v42, %v11330_v43  ;;  %v4282_v36 = vsel %vm416_vm0, %v4185_v20, 0.0  ;;  %v4222_v19 = vadd.f32 %v4221_v44, %v4220_v53  ;;  %v11391_v63 = vmov 0.0  }
 0x46b   : > { %4376 = vmatprep.mubr.f32.mxu0 %v11391_v63  ;;  %v4283_v27 = vadd.f32 %v4282_v36, %v4281_v33  ;;  %v4037_v38 = vrot.slane %v11380_v58, %v10964_v14  ;;  %v11392_v11 = vrot.slane %v11370_v6, %v10964_v14  ;;  %v4223_v10 = vsel %vm416_vm0, %v4174_v54, 0.0  ;;  %v11394_v6 = vld [vmem:[#allocation83_spill] sm:$0xff]  ;;  %v11427_v33 = vld [vmem:[#allocation33_spill] sm:$0xff] }
 0x46c   : > { %v4089_v47 = vrot.slane %v11393_v62, %v10965_v7  ;;  %v4191_v56 = vmul.f32 %v4073_v12, %v11308_v52  ;;  %v4284_v53 = vsel %vm416_vm0, %v4187_v51, 0.0  ;;  %v4224_v20 = vadd.f32 %v4223_v10, %v4222_v19  ;;  %v11395_v12 = vld [vmem:[#allocation45_spill] sm:$0xff] }
 0x46d   : > { %v4178_v9 = vmul.f32 %v11392_v11, %v11332_v29  ;;  %v4285_v42 = vadd.f32 %v4284_v53, %v4283_v27  ;;  %v4180_v58 = vmul.f32 %v4029_v16, %v11337_v39  ;;  %v4225_v44 = vsel %vm416_vm0, %v4176_v15, 0.0 }
 0x46e   : > { %v4097_v36 = vrot.slane %v11394_v6, %v10965_v7  ;;  %v4193_v54 = vmul.f32 %v4081_v26, %v11310_v37  ;;  %v4286_v11 = vsel %vm416_vm0, %v4189_v46, 0.0  ;;  %v4226_v32 = vadd.f32 %v4225_v44, %v4224_v20 }
 0x46f   : > { %v11396_v51 = vrot.slane %v9707_v23, %v10965_v7  ;;  %v4287_v10 = vadd.f32 %v4286_v11, %v4285_v42  ;;  %v4182_v27 = vmul.f32 %v4037_v38, %v11341_v28  ;;  %v4227_v16 = vsel %vm416_vm0, %v4178_v9, 0.0 }
 0x470   : > { %v4077_v15 = vrot.slane %v11390_v61, %v10964_v14  ;;  %v4195_v53 = vmul.f32 %v4089_v47, %v11312_v24  ;;  %v4288_v26 = vsel %vm416_vm0, %v4191_v56, 0.0  ;;  %v4228_v46 = vadd.f32 %v4227_v16, %v4226_v32 }
 0x471   : > { %v10091_v19 = vmul.f32 %v11396_v51, %v11395_v12  ;;  %v4289_v20 = vadd.f32 %v4288_v26, %v4287_v10  ;;  %v4061_v44 = vrot.slane %v11382_v35, %v10964_v14  ;;  %v11397_v23 = vrot.slane %v11384_v13, %v10964_v14  ;;  %v11401_v51 = vld [vmem:[#allocation24_spill] sm:$0xff] }
 0x472   : > { %v4229_v38 = vsel %vm416_vm0, %v4180_v58, 0.0  ;;  %v4197_v9 = vmul.f32 %v4097_v36, %v11313_v55  ;;  %v4290_v61 = vsel %vm416_vm0, %v4193_v54, 0.0  ;;  %v4069_v47 = vrot.slane %v11388_v1, %v10964_v14  ;;  %v11399_v58 = vld [vmem:[#allocation47_spill] sm:$0xff] }
 0x473   : > { %v4184_v42 = vmul.f32 %v11397_v23, %v11345_v5  ;;  %v4230_v56 = vadd.f32 %v4229_v38, %v4228_v46  ;;  %v4085_v32 = vrot.slane %v11393_v62, %v10964_v14  ;;  %v4291_v11 = vadd.f32 %v4290_v61, %v4289_v20 }
 0x474   : > { %v11398_v35 = vrot.slane %v11373_v41, %v10964_v14  ;;  %v4231_v12 = vsel %vm416_vm0, %v4182_v27, 0.0  ;;  %v11400_v36 = vrot.slane %v9719_v3, %v10965_v7  ;;  %v11402_v1 = vrot.slane %v9864_v57, %v10964_v14  ;;  %v11404_v3 = vld [vmem:[#allocation22_spill] sm:$0xff] }
 0x475   : > { %v4292_v62 = vsel %vm416_vm0, %v4195_v53, 0.0  ;;  %v4232_v16 = vadd.f32 %v4231_v12, %v4230_v56  ;;  %v4093_v41 = vrot.slane %v11394_v6, %v10964_v14  ;;  %v4188_v27 = vmul.f32 %v4061_v44, %v11354_v48 }
 0x476   : > { %v4186_v13 = vmul.f32 %v11398_v35, %v11350_v17  ;;  %v10121_v54 = vmul.f32 %v11400_v36, %v11399_v58  ;;  %v10127_v10 = vmul.f32 %v11402_v1, %v11401_v51  ;;  %v4293_v26 = vadd.f32 %v4292_v62, %v4291_v11  ;;  %v11406_v11 = vld [vmem:[#allocation36_spill] sm:$0xff]  ;;  %v11409_v36 = vld [vmem:[#allocation38_spill] sm:$0xff] }
 0x477   : > { %v4233_v46 = vsel %vm416_vm0, %v4184_v42, 0.0  ;;  %v11405_v20 = vrot.slane %v9852_v34, %v10964_v14  ;;  %v4294_v38 = vsel %vm416_vm0, %v4197_v9, 0.0  ;;  %v4190_v61 = vmul.f32 %v4069_v47, %v11355_v60  ;;  %v11410_v47 = vld [vmem:[#allocation21_spill] sm:$0xff]  ;;  %v11414_v62 = vld [vmem:[#allocation46_spill] sm:$0xff] }
 0x478   : > { %11403 = vst [vmem:[#allocation66_spill] sm:$0xff] %v10127_v10  ;;  %v4234_v53 = vadd.f32 %v4233_v46, %v4232_v16  ;;  %v4295_v56 = vadd.f32 %v4294_v38, %v4293_v26  ;;  %v4192_v35 = vmul.f32 %v4077_v15, %v11358_v59  ;;  %v4194_v6 = vmul.f32 %v4085_v32, %v11360_v22  ;;  %v11415_v16 = vld [vmem:[#allocation89_spill] sm:$0xff] }
 0x479   : > { %v10138_v23 = vmul.f32 %v11405_v20, %v11404_v3  ;;  %v4235_v44 = vsel %vm416_vm0, %v4186_v13, 0.0  ;;  %v11407_v42 = vrot.slane %v9852_v34, %v10965_v7  ;;  %v10153_v9 = vcombine.high %v11409_v36, %v11409_v36  ;;  %v11416_v20 = vld [vmem:[#allocation63_spill] sm:$0xff] }
 0x47a   : > { %v4236_v58 = vadd.f32 %v4235_v44, %v4234_v53  ;;  %v11411_v51 = vrot.slane %v11410_v47, %v10965_v7  ;;  %v11412_v32 = vrot.slane %v9874_v4, %v10964_v14  ;;  %5893 = vmatprep.subr.msk.mxu0 %vm416_vm0, %v4295_v56  ;;  %v4196_v34 = vmul.f32 %v4093_v41, %v11365_v2  ;;  %v11417_v53 = vld [vmem:[#allocation86_spill] sm:$0xff] }
 0x47b   : > { %v10149_v12 = vmul.f32 %v11407_v42, %v11406_v11  ;;  %v4237_v1 = vsel %vm416_vm0, %v4188_v27, 0.0  ;;  %v4921_v26 = vadd.f32 %v11415_v16, %v11414_v62  ;;  %v4239_v3 = vsel %vm416_vm0, %v4190_v61, 0.0  ;;  %v11418_v11 = vld [vmem:[#allocation5_spill] sm:$0xff] }
 0x47c   : > { %v4827_v15 = vmul.f32 %v11411_v51, %v11334_v49  ;;  %v10163_v13 = vmul.f32 %v11412_v32, %v11275_v40  ;;  %v4238_v46 = vadd.f32 %v4237_v1, %v4236_v58  ;;  %v4649_v38 = vrot.slane %v11416_v20, %v10965_v7  ;;  %v11422_v1 = vld [vmem:[#allocation85_spill] sm:$0xff] }
 0x47d   : > { %11408 = vst [vmem:[#allocation49_spill] sm:$0xff] %v10149_v12  ;;  %v4922_v44 = vsel %vm416_vm0, %v11417_v53, 0.0  ;;  %v4241_v40 = vsel %vm416_vm0, %v4192_v35, 0.0  ;;  %v4243_v56 = vsel %vm416_vm0, %v4194_v6, 0.0  ;;  %v11419_v41 = vcombine.high %v11387_v31, %v11386_v30  ;;  %v11421_v35 = vld [vmem:[#allocation60_spill] sm:$0xff] }
 0x47e   : > { %11413 = vst [vmem:[#allocation23_spill] sm:$0xff] %v10163_v13  ;;  %v4923_v42 = vadd.f32 %v4922_v44, %v4921_v26  ;;  %v4240_v47 = vadd.f32 %v4239_v3, %v4238_v46  ;;  %v4657_v61 = vrot.slane %v10153_v9, %v10965_v7  ;;  %v11420_v58 = vrot.slane %v11409_v36, %v10965_v7  ;;  %v11423_v31 = vld [vmem:[#allocation84_spill] sm:$0xff]  ;;  %v11424_v36 = vld [vmem:[#allocation26_spill] sm:$0xff] }
 0x47f   : > { %v4512_v27 = vrot.slane %v11419_v41, %v11418_v11  ;;  %v4924_v32 = vsel %vm416_vm0, %v4827_v15, 0.0  ;;  %v10190_v6 = vcombine.high %v11421_v35, %v11421_v35  ;;  %v10194_v30 = vcombine.high %v11422_v1, %v11422_v1  ;;  %v11425_v53 = vld [vmem:[#allocation88_spill] sm:$0xff] }
 0x480   : > { %v4831_v51 = vmul.f32 %v11420_v58, %v11342_v50  ;;  %v4513_v62 = vcombine.high %v11423_v31, %v11423_v31  ;;  %v4925_v16 = vadd.f32 %v4924_v32, %v4923_v42  ;;  %v4242_v26 = vadd.f32 %v4241_v40, %v4240_v47  ;;  %v11426_v58 = vld [vmem:[#allocation58_spill] sm:$0xff] }
 0x481   : > { %v4665_v46 = vrot.slane %v11421_v35, %v10965_v7  ;;  %v4833_v3 = vmul.f32 %v4649_v38, %v11424_v36  ;;  %v4926_v15 = vsel %vm416_vm0, %v11425_v53, 0.0  ;;  %v4514_v44 = vcombine.high %v4512_v27, %v4512_v27  ;;  %v11429_v32 = vld [vmem:[#allocation18_spill] sm:$0xff] }
 0x482   : > { %v10205_v41 = vrot.slane %v11423_v31, %v11418_v11  ;;  %v11428_v13 = vcombine.low %v11426_v58, %v11427_v33  ;;  %v4927_v42 = vadd.f32 %v4926_v15, %v4925_v16  ;;  %v4244_v40 = vadd.f32 %v4243_v56, %v4242_v26  ;;  %v11430_v56 = vld [vmem:[#allocation56_spill] sm:$0xff] }
 0x483   : > { %v4673_v47 = vrot.slane %v11422_v1, %v10965_v7  ;;  %v4835_v38 = vmul.f32 %v4657_v61, %v11429_v32  ;;  %v4928_v12 = vsel %vm416_vm0, %v4831_v51, 0.0  ;;  %v4245_v53 = vsel %vm416_vm0, %v4196_v34, 0.0  ;;  %v4296_v61 = vld [vmem:[%s10645_s5] sm:$0xf] }
 0x484   : > { %v4554_v10 = vrot.slane %v11428_v13, %v11418_v11  ;;  %v10217_v36 = vrot.slane %v4512_v27, %v11418_v11  ;;  %v10220_v31 = vrot.slane %v4513_v62, %v11418_v11  ;;  %v4929_v18 = vadd.f32 %v4928_v12, %v4927_v42  ;;  %v11439_v32 = vld [vmem:[#allocation25_spill] sm:$0xff] }
 0x485   : > { %v4246_v33 = vadd.f32 %v4245_v53, %v4244_v40  ;;  %v4681_v13 = vrot.slane %v10190_v6, %v10965_v7  ;;  %v4837_v16 = vmul.f32 %v4665_v46, %v11430_v56  ;;  %v4930_v26 = vsel %vm416_vm0, %v4833_v3, 0.0  ;;  %v11431_v3 = vld [vmem:[#allocation40_spill] sm:$0xff]  ;;  %v11433_v53 = vld [vmem:[#allocation87_spill] sm:$0xff] }
 0x486   : > { %v10231_v34 = vcombine.high %v10205_v41, %v10205_v41  ;;  %v10234_v27 = vrot.slane %v4554_v10, %v11418_v11  ;;  %v4653_v12 = vrot.slane %v10153_v9, %v10964_v14  ;;  %v4931_v51 = vadd.f32 %v4930_v26, %v4929_v18  ;;  %v11432_v40 = vld [vmem:[#allocation52_spill] sm:$0xff] }
 0x487   : > { %5894 = vmatpush1.msk.msra.mxu0 %vm416_vm0, %v4246_v33  ;;  %v10240_v62 = vrot.slane %v4514_v44, %v11418_v11  ;;  %v4689_v46 = vrot.slane %v10194_v30, %v10965_v7  ;;  %v4839_v15 = vmul.f32 %v4673_v47, %v11431_v3  ;;  %v4932_v58 = vsel %vm416_vm0, %v4835_v38, 0.0 }
 0x488   : > { %v10248_v10 = vcombine.high %v10217_v36, %v10217_v36  ;;  %v10252_v9 = vcombine.high %v10220_v31, %v10220_v31  ;;  %v4697_v18 = vrot.slane %v10205_v41, %v10965_v7  ;;  %v4933_v44 = vadd.f32 %v4932_v58, %v4931_v51  ;;  %5895 = vmatmul.mubr.msk.f32.vlgmr.msra.gmra.mrb[50].mxu0 %vm391_vm1, %v4296_v61  ;;  %v11434_v61 = vld [vmem:[#allocation74_spill] sm:$0xff] }
 0x489   : > { %v4677_v42 = vrot.slane %v10190_v6, %v10964_v14  ;;  %v4841_v47 = vmul.f32 %v4681_v13, %v11432_v40  ;;  %v4934_v38 = vsel %vm416_vm0, %v4837_v16, 0.0  ;;  %v4875_v33 = vsel %vm416_vm0, %v11433_v53, 0.0  ;;  %5040 = vmatprep.mubr.f32.mxu0 %v11391_v63  ;;  %v11435_v13 = vld [vmem:[#allocation53_spill] sm:$0xff] }
 0x48a   : > { %v4685_v26 = vrot.slane %v10194_v30, %v10964_v14  ;;  %v4705_v51 = vrot.slane %v10220_v31, %v10965_v7  ;;  %v4935_v58 = vadd.f32 %v4934_v38, %v4933_v44  ;;  %v4876_v3 = vadd.f32 %v4875_v33, %v11434_v61  ;;  %v11437_v33 = vld [vmem:[#allocation35_spill] sm:$0xff] }
 0x48b   : > { %v10271_v6 = vcombine.high %v10240_v62, %v10240_v62  ;;  %v4843_v16 = vmul.f32 %v4689_v46, %v11435_v13  ;;  %v4936_v40 = vsel %vm416_vm0, %v4839_v15, 0.0  ;;  %v11436_v53 = vrot.slane %v11416_v20, %v10964_v14  ;;  %v11438_v13 = vld [vmem:[#allocation37_spill] sm:$0xff] }
 0x48c   : > { %v4713_v30 = vrot.slane %v10231_v34, %v10965_v7  ;;  %v4845_v44 = vmul.f32 %v4697_v18, %v11297_v45  ;;  %v4937_v38 = vadd.f32 %v4936_v40, %v4935_v58  ;;  %v4878_v61 = vadd.f32 %v11437_v33, %v4876_v3  ;;  %v11441_v3 = vld [vmem:[#allocation67_spill] sm:$0xff]  ;;  %v11444_v33 = vld [vmem:[#allocation14_spill] sm:$0xff] }
 0x48d   : > { %v4832_v63 = vmul.f32 %v11436_v53, %v11317_v0  ;;  %v4938_v56 = vsel %vm416_vm0, %v4841_v47, 0.0  ;;  %v4669_v46 = vrot.slane %v11422_v1, %v10964_v14  ;;  %v4834_v15 = vmul.f32 %v4653_v12, %v11438_v13  ;;  %v11440_v53 = vld [vmem:[#allocation55_spill] sm:$0xff]  ;;  %v11443_v12 = vld [vmem:[#allocation64_spill] sm:$0xff] }
 0x48e   : > { %v4879_v11 = vsel %vm416_vm0, %v11439_v32, 0.0  ;;  %v4721_v20 = vrot.slane %v10252_v9, %v10965_v7  ;;  %v4847_v0 = vmul.f32 %v4705_v51, %v11440_v53  ;;  %v4939_v50 = vadd.f32 %v4938_v56, %v4937_v38  ;;  %v11445_v38 = vld [vmem:[#allocation19_spill] sm:$0xff] }
 0x48f   : > { %v4880_v18 = vadd.f32 %v4879_v11, %v4878_v61  ;;  %v4940_v40 = vsel %vm416_vm0, %v4843_v16, 0.0  ;;  %v11442_v47 = vrot.slane %v11421_v35, %v10964_v14  ;;  %v4881_v1 = vsel %vm416_vm0, %v4832_v63, 0.0 }
 0x490   : > { %v4709_v32 = vrot.slane %v10231_v34, %v10964_v14  ;;  %v4729_v51 = vrot.slane %v10217_v36, %v10965_v7  ;;  %v4941_v56 = vadd.f32 %v4940_v40, %v4939_v50  ;;  %v4849_v16 = vmul.f32 %v4713_v30, %v11445_v38 }
 0x491   : > { %v4836_v58 = vmul.f32 %v11442_v47, %v11441_v3  ;;  %v4882_v11 = vadd.f32 %v4881_v1, %v4880_v18  ;;  %v4942_v61 = vsel %vm416_vm0, %v4845_v44, 0.0  ;;  %v4838_v35 = vmul.f32 %v4669_v46, %v11327_v25 }
 0x492   : > { %v4883_v47 = vsel %vm416_vm0, %v4834_v15, 0.0  ;;  %v4737_v63 = vrot.slane %v10240_v62, %v10965_v7  ;;  %v4851_v13 = vmul.f32 %v4721_v20, %v11304_v21  ;;  %v4943_v3 = vadd.f32 %v4942_v61, %v4941_v56 }
 0x493   : > { %v4884_v34 = vadd.f32 %v4883_v47, %v4882_v11  ;;  %v4944_v53 = vsel %vm416_vm0, %v4847_v0, 0.0  ;;  %v4693_v50 = vrot.slane %v10205_v41, %v10964_v14  ;;  %v4840_v30 = vmul.f32 %v4677_v42, %v11330_v43 }
 0x494   : > { %v4885_v44 = vsel %vm416_vm0, %v4836_v58, 0.0  ;;  %v4745_v46 = vrot.slane %v10248_v10, %v10965_v7  ;;  %v4853_v15 = vmul.f32 %v4729_v51, %v11306_v8  ;;  %v4945_v18 = vadd.f32 %v4944_v53, %v4943_v3 }
 0x495   : > { %v4886_v40 = vadd.f32 %v4885_v44, %v4884_v34  ;;  %v4946_v20 = vsel %vm416_vm0, %v4849_v16, 0.0  ;;  %v4701_v1 = vrot.slane %v10220_v31, %v10964_v14  ;;  %v4842_v0 = vmul.f32 %v4685_v26, %v11332_v29 }
 0x496   : > { %v4887_v41 = vsel %vm416_vm0, %v4838_v35, 0.0  ;;  %v4753_v42 = vrot.slane %v10271_v6, %v10965_v7  ;;  %v4761_v58 = vrot.slane %v10234_v27, %v10965_v7  ;;  %v4947_v56 = vadd.f32 %v4946_v20, %v4945_v18 }
 0x497   : > { %v4888_v11 = vadd.f32 %v4887_v41, %v4886_v40  ;;  %v4855_v53 = vmul.f32 %v4737_v63, %v11308_v52  ;;  %v4948_v3 = vsel %vm416_vm0, %v4851_v13, 0.0  ;;  %v4844_v51 = vmul.f32 %v4693_v50, %v11337_v39 }
 0x498   : > { %v4889_v31 = vsel %vm416_vm0, %v4840_v30, 0.0  ;;  %v10334_v26 = vsel %vm416_vm0, %v10138_v23, 0.0  ;;  %v4717_v16 = vrot.slane %v10252_v9, %v10964_v14  ;;  %v4949_v61 = vadd.f32 %v4948_v3, %v4947_v56 }
 0x499   : > { %v4890_v35 = vadd.f32 %v4889_v31, %v4888_v11  ;;  %v4857_v47 = vmul.f32 %v4745_v46, %v11310_v37  ;;  %v4950_v34 = vsel %vm416_vm0, %v4853_v15, 0.0  ;;  %v4846_v63 = vmul.f32 %v4701_v1, %v11341_v28 }
 0x49a   : > { %v4891_v13 = vsel %vm416_vm0, %v4842_v0, 0.0  ;;  %v4859_v50 = vmul.f32 %v4753_v42, %v11312_v24  ;;  %v4861_v30 = vmul.f32 %v4761_v58, %v11313_v55  ;;  %v4951_v44 = vadd.f32 %v4950_v34, %v4949_v61  ;;  %v11447_v34 = vld [vmem:[#allocation91_spill] sm:$0xff] }
 0x49b   : > { %v4892_v23 = vadd.f32 %v4891_v13, %v4890_v35  ;;  %v4952_v18 = vsel %vm416_vm0, %v4855_v53, 0.0  ;;  %v4725_v9 = vrot.slane %v10217_v36, %v10964_v14  ;;  %v4848_v40 = vmul.f32 %v4709_v32, %v11345_v5 }
 0x49c   : > { %v4893_v46 = vsel %vm416_vm0, %v4844_v51, 0.0  ;;  %v5584_v15 = vsel %vm416_vm0, %v10091_v19, 0.0  ;;  %v4741_v20 = vrot.slane %v10248_v10, %v10964_v14  ;;  %v4953_v1 = vadd.f32 %v4952_v18, %v4951_v44 }
 0x49d   : > { %v4894_v0 = vadd.f32 %v4893_v46, %v4892_v23  ;;  %v4954_v41 = vsel %vm416_vm0, %v4857_v47, 0.0  ;;  %v4733_v42 = vrot.slane %v10240_v62, %v10964_v14  ;;  %v4850_v58 = vmul.f32 %v4717_v16, %v11350_v17 }
 0x49e   : > { %v4895_v36 = vsel %vm416_vm0, %v4846_v63, 0.0  ;;  %v4749_v32 = vrot.slane %v10271_v6, %v10964_v14  ;;  %v4757_v19 = vrot.slane %v10234_v27, %v10964_v14  ;;  %v4955_v56 = vadd.f32 %v4954_v41, %v4953_v1 }
 0x49f   : > { %v4896_v11 = vadd.f32 %v4895_v36, %v4894_v0  ;;  %v4956_v10 = vsel %vm416_vm0, %v4859_v50, 0.0  ;;  %v4958_v53 = vsel %vm416_vm0, %v4861_v30, 0.0  ;;  %v4852_v3 = vmul.f32 %v4725_v9, %v11354_v48  ;;  %v11448_v30 = vld [vmem:[#allocation65_spill] sm:$0xff] }
 0x4a0   : > { %v4897_v62 = vsel %vm416_vm0, %v4848_v40, 0.0  ;;  %v4957_v51 = vadd.f32 %v4956_v10, %v4955_v56  ;;  %v10368_v16 = vcombine.high %v9874_v4, %v9874_v4  ;;  %v11446_v27 = vrot.slane %v9864_v57, %v10965_v7  ;;  %v11452_v56 = vld [vmem:[#allocation26_spill] sm:$0xff]  ;;  %v11453_v10 = vld [vmem:[#allocation49_spill] sm:$0xff] }
 0x4a1   : > { %v4898_v31 = vadd.f32 %v4897_v62, %v4896_v11  ;;  %v4854_v61 = vmul.f32 %v4733_v42, %v11355_v60  ;;  %v4856_v35 = vmul.f32 %v4741_v20, %v11358_v59  ;;  %v4899_v47 = vsel %vm416_vm0, %v4850_v58, 0.0  ;;  %v11451_v42 = vld [vmem:[#allocation61_spill] sm:$0xff] }
 0x4a2   : > { %v5491_v6 = vmul.f32 %v11446_v27, %v11334_v49  ;;  %v5585_v63 = vadd.f32 %v5584_v15, %v11447_v34  ;;  %v4959_v13 = vadd.f32 %v4958_v53, %v4957_v51  ;;  %v5313_v44 = vrot.slane %v11448_v30, %v10965_v7  ;;  %v11449_v15 = vld [vmem:[#allocation31_spill] sm:$0xff]  ;;  %v11454_v53 = vld [vmem:[#allocation62_spill] sm:$0xff]  ;;  %v11455_v62 = vld [vmem:[#allocation5_spill] sm:$0xff] }
 0x4a3   : > { %v4900_v50 = vadd.f32 %v4899_v47, %v4898_v31  ;;  %v5586_v23 = vsel %vm416_vm0, %v10121_v54, 0.0  ;;  %v4858_v18 = vmul.f32 %v4749_v32, %v11360_v22  ;;  %v4860_v57 = vmul.f32 %v4757_v19, %v11365_v2  ;;  %v11457_v27 = vld [vmem:[#allocation10_spill] sm:$0xff] }
 0x4a4   : > { %v4901_v49 = vsel %vm416_vm0, %v4852_v3, 0.0  ;;  %v5587_v9 = vadd.f32 %v5586_v23, %v5585_v63  ;;  %5897 = vmatprep.subr.msk.mxu0 %vm416_vm0, %v4959_v13  ;;  %v5321_v46 = vrot.slane %v10368_v16, %v10965_v7  ;;  %v11450_v20 = vrot.slane %v9874_v4, %v10965_v7  ;;  %v11458_v34 = vld [vmem:[#allocation18_spill] sm:$0xff] }
 0x4a5   : > { %v4902_v40 = vadd.f32 %v4901_v49, %v4900_v50  ;;  %v5588_v54 = vsel %vm416_vm0, %v5491_v6, 0.0  ;;  %v4903_v0 = vsel %vm416_vm0, %v4854_v61, 0.0  ;;  %v4905_v41 = vsel %vm416_vm0, %v4856_v35, 0.0 }
 0x4a6   : > { %v5495_v1 = vmul.f32 %v11450_v20, %v11449_v15  ;;  %v10397_v58 = vcombine.high %v11451_v42, %v11451_v42  ;;  %v5589_v36 = vadd.f32 %v5588_v54, %v5587_v9  ;;  %v5329_v19 = vrot.slane %v11451_v42, %v10965_v7  ;;  %v11462_v20 = vld [vmem:[#allocation56_spill] sm:$0xff] }
 0x4a7   : > { %v4904_v32 = vadd.f32 %v4903_v0, %v4902_v40  ;;  %v5497_v11 = vmul.f32 %v5313_v44, %v11452_v56  ;;  %v5590_v4 = vsel %vm416_vm0, %v11453_v10, 0.0  ;;  %v10406_v3 = vcombine.high %v11454_v53, %v11454_v53  ;;  %v11463_v10 = vld [vmem:[#allocation40_spill] sm:$0xff] }
 0x4a8   : > { %v11456_v51 = vcombine.high %v11444_v33, %v11443_v12  ;;  %v5177_v6 = vcombine.high %v11457_v27, %v11457_v27  ;;  %v5591_v61 = vadd.f32 %v5590_v4, %v5589_v36  ;;  %v5337_v47 = vrot.slane %v11454_v53, %v10965_v7  ;;  %v11459_v12 = vld [vmem:[#allocation59_spill] sm:$0xff]  ;;  %v11460_v33 = vld [vmem:[#allocation68_spill] sm:$0xff] }
 0x4a9   : > { %v4906_v35 = vadd.f32 %v4905_v41, %v4904_v32  ;;  %v5499_v63 = vmul.f32 %v5321_v46, %v11458_v34  ;;  %v5592_v13 = vsel %vm416_vm0, %v5495_v1, 0.0  ;;  %v4907_v50 = vsel %vm416_vm0, %v4858_v18, 0.0  ;;  %v4960_v32 = vld [vmem:[%s10645_s5] sm:$0xf] }
 0x4aa   : > { %v5176_v31 = vrot.slane %v11456_v51, %v11455_v62  ;;  %v10421_v44 = vrot.slane %v11457_v27, %v11455_v62  ;;  %v11461_v23 = vcombine.low %v11459_v12, %v11460_v33  ;;  %v5593_v9 = vadd.f32 %v5592_v13, %v5591_v61  ;;  %v11465_v13 = vld [vmem:[#allocation66_spill] sm:$0xff]  ;;  %v11466_v33 = vld [vmem:[#allocation53_spill] sm:$0xff] }
 0x4ab   : > { %v4908_v40 = vadd.f32 %v4907_v50, %v4906_v35  ;;  %v5345_v15 = vrot.slane %v10397_v58, %v10965_v7  ;;  %v5501_v46 = vmul.f32 %v5329_v19, %v11462_v20  ;;  %v5594_v1 = vsel %vm416_vm0, %v5497_v11, 0.0  ;;  %v11464_v35 = vld [vmem:[#allocation52_spill] sm:$0xff] }
 0x4ac   : > { %v5218_v49 = vrot.slane %v11461_v23, %v11455_v62  ;;  %v4909_v18 = vsel %vm416_vm0, %v4860_v57, 0.0  ;;  %v5178_v54 = vcombine.high %v5176_v31, %v5176_v31  ;;  %v10433_v0 = vrot.slane %v5177_v6, %v11455_v62 }
 0x4ad   : > { %v5595_v41 = vadd.f32 %v5594_v1, %v5593_v9  ;;  %v4910_v36 = vadd.f32 %v4909_v18, %v4908_v40  ;;  %v5353_v56 = vrot.slane %v10406_v3, %v10965_v7  ;;  %v5503_v4 = vmul.f32 %v5337_v47, %v11463_v10  ;;  %v11467_v9 = vld [vmem:[#allocation54_spill] sm:$0xff] }
 0x4ae   : > { %v5596_v19 = vsel %vm416_vm0, %v5499_v63, 0.0  ;;  %v10443_v11 = vrot.slane %v5176_v31, %v11455_v62  ;;  %v10447_v57 = vcombine.high %v10421_v44, %v10421_v44  ;;  %v5317_v51 = vrot.slane %v10368_v16, %v10964_v14  ;;  %v11469_v1 = vld [vmem:[#allocation30_spill] sm:$0xff] }
 0x4af   : > { %v5597_v27 = vadd.f32 %v5596_v19, %v5595_v41  ;;  %5898 = vmatpush1.msk.msra.mxu0 %vm416_vm0, %v4910_v36  ;;  %v10453_v6 = vrot.slane %v5218_v49, %v11455_v62  ;;  %v5361_v61 = vrot.slane %v10421_v44, %v10965_v7  ;;  %v5505_v47 = vmul.f32 %v5345_v15, %v11464_v35 }
 0x4b0   : > { %v5598_v31 = vsel %vm416_vm0, %v5501_v46, 0.0  ;;  %5899 = vmatmul.mubr.msk.f32.vlgmr.msra.gmra.mrb[52].mxu0 %vm391_vm1, %v4960_v32  ;;  %v10461_v34 = vrot.slane %v5178_v54, %v11455_v62  ;;  %v10465_v16 = vcombine.high %v10433_v0, %v10433_v0  ;;  %v5539_v50 = vsel %vm416_vm0, %v11465_v13, 0.0  ;;  %v11474_v13 = vld [vmem:[#allocation67_spill] sm:$0xff] }
 0x4b1   : > { %v5599_v63 = vadd.f32 %v5598_v31, %v5597_v27  ;;  %v5369_v12 = vrot.slane %v10433_v0, %v10965_v7  ;;  %v5507_v23 = vmul.f32 %v5353_v56, %v11466_v33  ;;  %v5600_v49 = vsel %vm416_vm0, %v5503_v4, 0.0  ;;  %v11472_v27 = vld [vmem:[#allocation23_spill] sm:$0xff] }
 0x4b2   : > { %v5540_v40 = vadd.f32 %v5539_v50, %v11467_v9  ;;  %v11468_v15 = vmov 0.0   ;;  %v10477_v62 = vcombine.high %v10443_v11, %v10443_v11  ;;  %v5341_v20 = vrot.slane %v10397_v58, %v10964_v14  ;;  %v11471_v58 = vld [vmem:[#allocation37_spill] sm:$0xff]  ;;  %v11473_v31 = vld [vmem:[#allocation55_spill] sm:$0xff] }
 0x4b3   : > { %5704 = vmatprep.mubr.f32.mxu0 %v11468_v15  ;;  %v5601_v46 = vadd.f32 %v5600_v49, %v5599_v63  ;;  %v11470_v18 = vrot.slane %v11448_v30, %v10964_v14  ;;  %v5377_v41 = vrot.slane %v10447_v57, %v10965_v7  ;;  %v5509_v36 = vmul.f32 %v5361_v61, %v11297_v45 }
 0x4b4   : > { %v5602_v32 = vsel %vm416_vm0, %v5505_v47, 0.0  ;;  %v5542_v56 = vadd.f32 %v10334_v26, %v5540_v40  ;;  %v5333_v4 = vrot.slane %v11454_v53, %v10964_v14  ;;  %v5498_v19 = vmul.f32 %v5317_v51, %v11471_v58 }
 0x4b5   : > { %v5496_v54 = vmul.f32 %v11470_v18, %v11469_v1  ;;  %v5603_v10 = vadd.f32 %v5602_v32, %v5601_v46  ;;  %v5543_v35 = vsel %vm416_vm0, %v11472_v27, 0.0  ;;  %v5385_v30 = vrot.slane %v10465_v16, %v10965_v7 }
 0x4b6   : > { %v5511_v63 = vmul.f32 %v5369_v12, %v11473_v31  ;;  %v5604_v45 = vsel %vm416_vm0, %v5507_v23, 0.0  ;;  %v5544_v61 = vadd.f32 %v5543_v35, %v5542_v56  ;;  %v5349_v26 = vrot.slane %v10406_v3, %v10964_v14 }
 0x4b7   : > { %v5605_v47 = vadd.f32 %v5604_v45, %v5603_v10  ;;  %v11475_v53 = vrot.slane %v11451_v42, %v10964_v14  ;;  %v5545_v50 = vsel %vm416_vm0, %v5496_v54, 0.0  ;;  %v5393_v33 = vrot.slane %v10443_v11, %v10965_v7 }
 0x4b8   : > { %v5513_v49 = vmul.f32 %v5377_v41, %v11445_v38  ;;  %v5606_v12 = vsel %vm416_vm0, %v5509_v36, 0.0  ;;  %v5546_v23 = vadd.f32 %v5545_v50, %v5544_v61  ;;  %v10512_v9 = vcombine.high %v10461_v34, %v10461_v34 }
 0x4b9   : > { %v5500_v51 = vmul.f32 %v11475_v53, %v11474_v13  ;;  %v5607_v3 = vadd.f32 %v5606_v12, %v5605_v47  ;;  %v5502_v40 = vmul.f32 %v5333_v4, %v11327_v25  ;;  %v5547_v42 = vsel %vm416_vm0, %v5498_v19, 0.0 }
 0x4ba   : > { %v5401_v15 = vrot.slane %v10461_v34, %v10965_v7  ;;  %v5515_v46 = vmul.f32 %v5385_v30, %v11304_v21  ;;  %v5608_v1 = vsel %vm416_vm0, %v5511_v63, 0.0  ;;  %v5548_v38 = vadd.f32 %v5547_v42, %v5546_v23 }
 0x4bb   : > { %v5609_v18 = vadd.f32 %v5608_v1, %v5607_v3  ;;  %v5357_v54 = vrot.slane %v10421_v44, %v10964_v14  ;;  %v5504_v41 = vmul.f32 %v5341_v20, %v11330_v43  ;;  %v5549_v36 = vsel %vm416_vm0, %v5500_v51, 0.0 }
 0x4bc   : > { %v5409_v25 = vrot.slane %v10477_v62, %v10965_v7  ;;  %v5517_v32 = vmul.f32 %v5393_v33, %v11306_v8  ;;  %v5610_v56 = vsel %vm416_vm0, %v5513_v49, 0.0  ;;  %v5550_v10 = vadd.f32 %v5549_v36, %v5548_v38 }
 0x4bd   : > { %v5611_v21 = vadd.f32 %v5610_v56, %v5609_v18  ;;  %v5365_v4 = vrot.slane %v10433_v0, %v10964_v14  ;;  %v5506_v58 = vmul.f32 %v5349_v26, %v11332_v29  ;;  %v5551_v44 = vsel %vm416_vm0, %v5502_v40, 0.0 }
 0x4be   : > { %v5417_v43 = vrot.slane %v10512_v9, %v10965_v7  ;;  %v5519_v20 = vmul.f32 %v5401_v15, %v11308_v52  ;;  %v5612_v19 = vsel %vm416_vm0, %v5515_v46, 0.0  ;;  %v5552_v27 = vadd.f32 %v5551_v44, %v5550_v10  ;;  %v5624_v10 = vld [vmem:[%s10645_s5] sm:$0xf] }
 0x4bf   : > { %v5373_v8 = vrot.slane %v10447_v57, %v10964_v14  ;;  %v5613_v35 = vadd.f32 %v5612_v19, %v5611_v21  ;;  %v5508_v30 = vmul.f32 %v5357_v54, %v11337_v39  ;;  %v5553_v0 = vsel %vm416_vm0, %v5504_v41, 0.0 }
 0x4c0   : > { %v5425_v29 = vrot.slane %v10453_v6, %v10965_v7  ;;  %v5521_v31 = vmul.f32 %v5409_v25, %v11310_v37  ;;  %v5614_v63 = vsel %vm416_vm0, %v5517_v32, 0.0  ;;  %v5554_v45 = vadd.f32 %v5553_v0, %v5552_v27 }
 0x4c1   : > { %v5381_v52 = vrot.slane %v10465_v16, %v10964_v14  ;;  %v5615_v61 = vadd.f32 %v5614_v63, %v5613_v35  ;;  %v5510_v26 = vmul.f32 %v5365_v4, %v11341_v28  ;;  %v5555_v57 = vsel %vm416_vm0, %v5506_v58, 0.0 }
 0x4c2   : > { %v5523_v39 = vmul.f32 %v5417_v43, %v11312_v24  ;;  %v5616_v47 = vsel %vm416_vm0, %v5519_v20, 0.0  ;;  %v5556_v13 = vadd.f32 %v5555_v57, %v5554_v45  ;;  %v5389_v7 = vrot.slane %v10443_v11, %v10964_v14  ;;  %v4301_v43 = vpop.permute.xlu1 %4300 }
 0x4c3   : > { %v5617_v53 = vadd.f32 %v5616_v47, %v5615_v61  ;;  %v5512_v37 = vmul.f32 %v5373_v8, %v11345_v5  ;;  %v5557_v51 = vsel %vm416_vm0, %v5508_v30, 0.0  ;;  %v5525_v16 = vmul.f32 %v5425_v29, %v11313_v55 }
 0x4c4   : > { %v5618_v50 = vsel %vm416_vm0, %v5521_v31, 0.0  ;;  %v5558_v28 = vadd.f32 %v5557_v51, %v5556_v13  ;;  %v5397_v24 = vrot.slane %v10461_v34, %v10964_v14  ;;  %v5514_v49 = vmul.f32 %v5381_v52, %v11350_v17 }
 0x4c5   : > { %v5619_v33 = vadd.f32 %v5618_v50, %v5617_v53  ;;  %v5559_v12 = vsel %vm416_vm0, %v5510_v26, 0.0  ;;  %v5620_v23 = vsel %vm416_vm0, %v5523_v39, 0.0  ;;  %v5405_v5 = vrot.slane %v10477_v62, %v10964_v14 }
 0x4c6   : > { %v5560_v11 = vadd.f32 %v5559_v12, %v5558_v28  ;;  %v5516_v55 = vmul.f32 %v5389_v7, %v11354_v48  ;;  %v5561_v40 = vsel %vm416_vm0, %v5512_v37, 0.0  ;;  %v5622_v42 = vsel %vm416_vm0, %v5525_v16, 0.0  ;;  %v5629_v52 = vpop.permute.xlu1 %5628 }
 0x4c7   : > { %v5621_v3 = vadd.f32 %v5620_v23, %v5619_v33  ;;  %v5413_v34 = vrot.slane %v10512_v9, %v10964_v14  ;;  %v5518_v46 = vmul.f32 %v5397_v24, %v11355_v60  ;;  %v5563_v1 = vsel %vm416_vm0, %v5514_v49, 0.0 }
 0x4c8   : > { %v5562_v15 = vadd.f32 %v5561_v40, %v5560_v11  ;;  %v5421_v62 = vrot.slane %v10453_v6, %v10964_v14  ;;  %v5520_v48 = vmul.f32 %v5405_v5, %v11358_v59  ;;  %v5565_v18 = vsel %vm416_vm0, %v5516_v55, 0.0 }
 0x4c9   : > { %v5623_v17 = vadd.f32 %v5622_v42, %v5621_v3  ;;  %v5522_v41 = vmul.f32 %v5413_v34, %v11360_v22  ;;  %v5567_v9 = vsel %vm416_vm0, %v5518_v46, 0.0  ;;  %v3638_v22 = vpop.permute.xlu0 %3637 }
 0x4ca   : > { %v5564_v38 = vadd.f32 %v5563_v1, %v5562_v15  ;;  %v5524_v36 = vmul.f32 %v5421_v62, %v11365_v2  ;;  %v5569_v25 = vsel %vm416_vm0, %v5520_v48, 0.0 }
 0x4cb   : > { %5901 = vmatprep.subr.msk.mxu0 %vm416_vm0, %v5623_v17  ;;  %v5571_v14 = vsel %vm416_vm0, %v5522_v41, 0.0 }
 0x4cc   : > { %v5566_v54 = vadd.f32 %v5565_v18, %v5564_v38  ;;  %v5573_v59 = vsel %vm416_vm0, %v5524_v36, 0.0 }
 0x4cd   : > { %v4965_v30 = vpop.permute.xlu0 %4964 }
 0x4ce   : > { %v5568_v60 = vadd.f32 %v5567_v9, %v5566_v54 }
 0x4d0   : > { %v5570_v32 = vadd.f32 %v5569_v25, %v5568_v60 }
 0x4d2   : > { %v5572_v6 = vadd.f32 %v5571_v14, %v5570_v32 }
 0x4d4   : > { %v5574_v56 = vadd.f32 %v5573_v59, %v5572_v6 }
 0x4d6   : > { %5902 = vmatpush1.msk.msra.mxu0 %vm416_vm0, %v5574_v56 }
 0x4d7   : > { %5903 = vmatmul.mubr.msk.f32.vlgmr.msra.gmra.mrb[54].mxu0 %vm391_vm1, %v5624_v10 }
 0x53b   : > { %v3715_v2 = vpop.f32.mrb[48].mxu0 }
 0x53c   : > { %v3716_v21 = vadd.f32 %v3715_v2, %v3638_v22  ;;  %v3717_v4 = vpop.f32.mrb[49].mxu0 }
 0x53d   : > { %v3718_v58 = vadd.f32 %v3717_v4, %v3638_v22 }
 0x53f   : > { %v3722_v44 = vcombine.low %v3716_v21, %v3718_v58 }
 0x541   : > { %3724 = vst [vmem:[%s325_s24] sm:$0xff] %v3722_v44 }
 0x55b   : > { %v4378_v20 = vpop.f32.mrb[50].mxu0 }
 0x55c   : > { %v4379_v19 = vadd.f32 %v4378_v20, %v4301_v43  ;;  %v4380_v27 = vpop.f32.mrb[51].mxu0 }
 0x55d   : > { %v4381_v8 = vadd.f32 %v4380_v27, %v4301_v43 }
 0x55f   : > { %v4385_v35 = vcombine.low %v4379_v19, %v4381_v8 }
 0x561   : > { %5896 = vst [vmem:[%s325_s24 + $0x8] sm:$0xff] %v4385_v35 }
 0x583   : > { %v5042_v0 = vpop.f32.mrb[52].mxu0 }
 0x584   : > { %v5043_v29 = vadd.f32 %v5042_v0, %v4965_v30  ;;  %v5044_v31 = vpop.f32.mrb[53].mxu0 }
 0x585   : > { %v5045_v63 = vadd.f32 %v5044_v31, %v4965_v30 }
 0x587   : > { %v5049_v45 = vcombine.low %v5043_v29, %v5045_v63 }
 0x589   : > { %5900 = vst [vmem:[%s325_s24 + $0x10] sm:$0xff] %v5049_v45 }
 0x5aa   : > { %v5706_v61 = vpop.f32.mrb[54].mxu0 }
 0x5ab   : > { %v5707_v26 = vadd.f32 %v5706_v61, %v5629_v52  ;;  %v5708_v57 = vpop.f32.mrb[55].mxu0 }
 0x5ac   : > { %v5709_v39 = vadd.f32 %v5708_v57, %v5629_v52 }
 0x5ae   : > { %v5713_v47 = vcombine.low %v5707_v26, %v5709_v39 }
 0x5b0   : > { %5904 = vst [vmem:[%s325_s24 + $0x18] sm:$0xff] %v5713_v47 }
 0x5b1   : > { %6262 = shalt.err (!%p6259_p3)
}
 0x5b2   : > { %s6263_s21 = scalar_lea.hbm %s10595_s22, 512  ;;  %s6267_s29 = scalar_lea.hbm %s10649_s9, 1024 }
 0x5b3   : > { %p6264_p4 = scmp.ne.s32.totalorder %s10595_s22, %s6263_s21  ;;  %p6268_p9 = scmp.lt.u32.totalorder %s10595_s22, %s10649_s9 }
 0x5b4   : > { %p6269_p10 = scmp.lt.u32.totalorder %s6267_s29, %s6263_s21  ;;  %p6271_p12 = scmp.lt.u32.totalorder %s6263_s21, %s10595_s22 }
 0x5b5   : > { %p6265_p7 = pnand %p6264_p4, %p6431_p5 }
 0x5b6   : > { %p6270_p11 = por %p6269_p10, %p6268_p9 }
 0x5b7   : > { %p6266_p8 = pneg %p6265_p7 }
 0x5b8   : > { %p6272_p13 = por %p6271_p12, %p6270_p11 }
 0x5ba   : > { %p6273_p0 = pnand %p6272_p13, %p6266_p8 }
 0x5bc   : > { %6276 = shalt.err (!%p6273_p0)
}
 0x5bd   : > { %s6341_s16 = smov 128   ;;  %s6342_s13 = smov 8  }
 0x5be   : > { %6040 = dma.vmem_to_hbm [thread:$0]  (%p6431_p5), %s10590_s26, 512, %s10595_s22, %s10599_s27, %s6341_s16, %s6341_s16, %s6342_s13  }
 0x5bf PF: > { %p6046_p1 = scmp.ge.s32.totalorder %s6311_s12, 2  ;;  %s5746_s17 = sand.u32 1, %s6299_s30  }
 0x5c0   : > { %s5747_s14 = scalar_lea.sflag [#allocation3], %s5746_s17 }
 0x5c1   : > { %p6043_p2 = pnand %p6046_p1, %p6435_p6 }
 0x5c3   : > { %6294 = dma.done.wait (!%p6043_p2), %s5747_s14, 512  }
 0x5c4   : > { %6296 = vsyncadd (!%p6043_p2), %s5747_s14, 4294966784  ;;  %p19_p3 = scmp.ge.s32.totalorder %s6418_s15, 4   ;;  %s11476_s30 = smov %s6303_s10 }
 0x5c5   : > { %s11477_s10 = smov %s6307_s11  ;;  %s11478_s11 = smov %s6429_s18 }
 0x5c6   : > { %s11479_s12 = smov %s6418_s15  ;;  %21 = sbr.rel (!%p19_p3) target bundleno = 3 (0x3), region = 126 }
 0x5cd   :  { %5752 = vsyncpa [#allocation3], 1 }
 0x5ce   :  { %5754 = vsyncpa [#allocation3 + $0x1], 1 }

</bundles_post_ra>
